<compile_context>
chip_gen: v7x
topology: tpu7x:2x2x1
jax: 0.10.0
libtpu: 0.0.40
codegen_flags: <defaults>
</compile_context>

<pallas_src>
import functools

import jax
import jax.numpy as jnp
from jax.experimental import pallas as pl
from jax.experimental.pallas import tpu as pltpu

# v7x has 64 MiB physical VMEM per TensorCore; keep the scoped limit below it.
_VMEM_LIMIT = 48 * 1024 * 1024


# ----------------------------------------------------------------------------
# Pallas kernels
# ----------------------------------------------------------------------------
def _matmul_bias_acc_kernel(x_ref, w_ref, b_ref, o_ref, acc_ref, *, relu):
    """Tiled matmul, K-reduction over grid axis 2, fused bias (+ReLU)."""
    @pl.when(pl.program_id(2) == 0)
    def _():
        acc_ref[...] = jnp.zeros_like(acc_ref)

    acc_ref[...] += jnp.dot(
        x_ref[...], w_ref[...], preferred_element_type=jnp.float32
    )

    @pl.when(pl.program_id(2) == pl.num_programs(2) - 1)
    def _():
        y = acc_ref[...] + b_ref[...]          # (tm, tn) + (1, tn) broadcast
        if relu:
            y = jnp.maximum(y, 0.0)
        o_ref[...] = y.astype(o_ref.dtype)


def _matmul_bias_direct_kernel(x_ref, w_ref, b_ref, o_ref, *, relu):
    """Single-K-step matmul: no scratch, no init/finalize round trip."""
    y = jnp.dot(x_ref[...], w_ref[...], preferred_element_type=jnp.float32)
    y = y + b_ref[...]
    if relu:
        y = jnp.maximum(y, 0.0)
    o_ref[...] = y.astype(o_ref.dtype)


def _max4_kernel(a_ref, b_ref, c_ref, d_ref, o_ref):
    """Elementwise max of the 4 taps of a 2x2 max-pool window."""
    o_ref[...] = jnp.maximum(
        jnp.maximum(a_ref[...], b_ref[...]),
        jnp.maximum(c_ref[...], d_ref[...]),
    )


# ----------------------------------------------------------------------------
# Wrappers
# ----------------------------------------------------------------------------
def _pick_tm(m, max_tm=4096):
    """Largest multiple of 8 that divides m and is <= max_tm (else m itself)."""
    best = None
    for t in range(8, min(m, max_tm) + 1, 8):
        if m % t == 0:
            best = t
    return best if best is not None else m


def pallas_linear(x, w, b, *, relu=False, tm=None, tk=None, tn=None,
                  out_dtype=None):
    """y = relu?(x @ w + b).  x: (M, K), w: (K, N), b: (N,).

    Tile sizes must divide the array dims exactly (no padding copies).
    """
    M, K = x.shape
    K2, N = w.shape
    assert K == K2, (K, K2)
    tm = M if tm is None else tm
    tk = K if tk is None else tk
    tn = N if tn is None else tn
    assert M % tm == 0, (M, tm)
    assert K % tk == 0, (K, tk)
    assert N % tn == 0, (N, tn)
    out_dtype = x.dtype if out_dtype is None else out_dtype

    b2 = b.reshape(1, N).astype(jnp.float32)
    nk = K // tk

    if nk == 1:
        # Specialized path: single K step, no accumulator scratch.
        grid = (M // tm, N // tn)
        kernel = functools.partial(_matmul_bias_direct_kernel, relu=relu)
        return pl.pallas_call(
            kernel,
            out_shape=jax.ShapeDtypeStruct((M, N), out_dtype),
            grid_spec=pltpu.PrefetchScalarGridSpec(
                num_scalar_prefetch=0,
                grid=grid,
                in_specs=[
                    pl.BlockSpec((tm, tk), lambda i, j: (i, 0)),
                    pl.BlockSpec((tk, tn), lambda i, j: (0, j)),
                    pl.BlockSpec((1, tn), lambda i, j: (0, j)),
                ],
                out_specs=pl.BlockSpec((tm, tn), lambda i, j: (i, j)),
            ),
            compiler_params=pltpu.CompilerParams(
                dimension_semantics=("parallel", "parallel"),
                vmem_limit_bytes=_VMEM_LIMIT,
            ),
        )(x, w, b2)

    # General path: K split over the last (reduction) grid axis.
    grid = (M // tm, N // tn, nk)
    kernel = functools.partial(_matmul_bias_acc_kernel, relu=relu)
    return pl.pallas_call(
        kernel,
        out_shape=jax.ShapeDtypeStruct((M, N), out_dtype),
        grid_spec=pltpu.PrefetchScalarGridSpec(
            num_scalar_prefetch=0,
            grid=grid,
            in_specs=[
                pl.BlockSpec((tm, tk), lambda i, j, k: (i, k)),
                pl.BlockSpec((tk, tn), lambda i, j, k: (k, j)),
                pl.BlockSpec((1, tn), lambda i, j, k: (0, j)),
            ],
            out_specs=pl.BlockSpec((tm, tn), lambda i, j, k: (i, j)),
            scratch_shapes=[pltpu.VMEM((tm, tn), jnp.float32)],
        ),
        compiler_params=pltpu.CompilerParams(
            dimension_semantics=("parallel", "parallel", "arbitrary"),
            vmem_limit_bytes=_VMEM_LIMIT,
        ),
    )(x, w, b2)


def conv2d_relu(x, w, b):
    """Valid conv (stride 1) + bias + ReLU via im2col matmul (bf16).

    x: (N, H, W, Cin) NHWC.  w: (KH, KW, Cin, Cout) HWIO.  b: (Cout,).
    """
    N, H, W, Cin = x.shape
    KH, KW, _, Cout = w.shape
    Ho, Wo = H - KH + 1, W - KW + 1
    # TODO(synk): im2col patches are still materialized in HBM (bf16 halves the
    # traffic and exact tiling removes the pad/slice copies); a fully fused
    # in-VMEM patch build was left out for lowering robustness.
    cols = [x[:, i:i + Ho, j:j + Wo, :] for i in range(KH) for j in range(KW)]
    patches = jnp.concatenate(cols, axis=-1).reshape(N * Ho * Wo, KH * KW * Cin)
    wm = w.reshape(KH * KW * Cin, Cout)
    M = N * Ho * Wo
    out = pallas_linear(patches, wm, b, relu=True, tm=_pick_tm(M))
    return out.reshape(N, Ho, Wo, Cout)


def maxpool2x2(x):
    """2x2, stride-2 max pool on NHWC input (H, W even).

    Taps are presented to the kernel as (N*H2, W2*C) so the output lane width
    is a multiple of 128 (lane-dense, unmasked stores).
    """
    N, H, W, C = x.shape
    H2, W2 = H // 2, W // 2
    R, L = N * H2, W2 * C
    parts = [
        x[:, i::2, j::2, :].reshape(R, L)
        for i in (0, 1)
        for j in (0, 1)
    ]
    tm = _pick_tm(R, max_tm=128)   # divides R exactly; R itself if no divisor

    spec = pl.BlockSpec((tm, L), lambda i: (i, 0))
    out = pl.pallas_call(
        _max4_kernel,
        out_shape=jax.ShapeDtypeStruct((R, L), x.dtype),
        grid=(R // tm,),
        in_specs=[spec, spec, spec, spec],
        out_specs=spec,
        compiler_params=pltpu.CompilerParams(
            dimension_semantics=("parallel",),
            vmem_limit_bytes=_VMEM_LIMIT,
        ),
    )(*parts)
    return out.reshape(N, H2, W2, C)


# ----------------------------------------------------------------------------
# Parameters (deterministic synthetic init, PyTorch-shaped)
# ----------------------------------------------------------------------------
def init_params(key):
    def uniform(k, shape, fan_in):
        bound = 1.0 / jnp.sqrt(jnp.float32(fan_in))
        return jax.random.uniform(k, shape, jnp.float32, -bound, bound)

    keys = jax.random.split(key, 12)
    p = {}
    # Conv weights stored HWIO (KH, KW, Cin, Cout); weights cast to bf16 so the
    # MXU runs at native bf16 rate and weight HBM traffic is halved; biases
    # stay f32 (added to the f32 accumulator).
    p["w_conv1"] = uniform(keys[0], (5, 5, 1, 32), 5 * 5 * 1).astype(jnp.bfloat16)
    p["b_conv1"] = uniform(keys[1], (32,), 5 * 5 * 1)
    p["w_conv2"] = uniform(keys[2], (5, 5, 32, 64), 5 * 5 * 32).astype(jnp.bfloat16)
    p["b_conv2"] = uniform(keys[3], (64,), 5 * 5 * 32)
    p["w_conv3"] = uniform(keys[4], (3, 3, 64, 128), 3 * 3 * 64).astype(jnp.bfloat16)
    p["b_conv3"] = uniform(keys[5], (128,), 3 * 3 * 64)
    # fc weights stored (in, out)
    p["w_fc1"] = uniform(keys[6], (80000, 1024), 80000).astype(jnp.bfloat16)
    p["b_fc1"] = uniform(keys[7], (1024,), 80000)
    p["w_fc2"] = uniform(keys[8], (1024, 512), 1024).astype(jnp.bfloat16)
    p["b_fc2"] = uniform(keys[9], (512,), 1024)
    p["w_fc3"] = uniform(keys[10], (512, 136), 512).astype(jnp.bfloat16)
    p["b_fc3"] = uniform(keys[11], (136,), 512)
    return p


# ----------------------------------------------------------------------------
# Net5 forward
# ----------------------------------------------------------------------------
def net5_forward(params, x_nchw):
    # NCHW -> NHWC (glue), cast to bf16 once at the boundary.
    x = jnp.transpose(x_nchw, (0, 2, 3, 1)).astype(jnp.bfloat16)  # (N,220,220,1)

    x = conv2d_relu(x, params["w_conv1"], params["b_conv1"])  # (N, 216, 216, 32)
    x = maxpool2x2(x)                                         # (N, 108, 108, 32)
    x = conv2d_relu(x, params["w_conv2"], params["b_conv2"])  # (N, 104, 104, 64)
    x = maxpool2x2(x)                                         # (N, 52, 52, 64)
    x = conv2d_relu(x, params["w_conv3"], params["b_conv3"])  # (N, 50, 50, 128)
    x = maxpool2x2(x)                                         # (N, 25, 25, 128)

    # Flatten in PyTorch NCHW order: (N, C*H*W) = (N, 80000)
    N = x.shape[0]
    x = jnp.transpose(x, (0, 3, 1, 2)).reshape(N, 128 * 25 * 25)

    # fc1: grid (1, 2, 20) -> N axis of 2 keeps both v7x TensorCores busy;
    # tk=4000 -> 4 MiB bf16 weight blocks, double-buffered, near-roofline DMA.
    x = pallas_linear(x, params["w_fc1"], params["b_fc1"], relu=True,
                      tk=4000, tn=512)
    # TODO(synk): nn.Dropout(p=0.2) treated as identity (eval-mode semantics);
    # training-mode stochastic masking not implemented.
    x = pallas_linear(x, params["w_fc2"], params["b_fc2"], relu=True)
    x = pallas_linear(x, params["w_fc3"], params["b_fc3"], relu=False,
                      out_dtype=jnp.float32)
    return x                                                  # (N, 136) f32


if __name__ == "__main__":
    key = jax.random.PRNGKey(0)
    k_params, k_input = jax.random.split(key)
    params = init_params(k_params)

    # Input shape implied by the forward pass: fc1 expects 80000 = 128*25*25,
    # which back-solves to a (N, 1, 220, 220) NCHW input.  Batch = 2.
    x = jax.random.normal(k_input, (2, 1, 220, 220), jnp.float32)

    out = net5_forward(params, x)
    out = jax.block_until_ready(out)
    assert out.shape == (2, 136), out.shape
    assert out.dtype == jnp.float32
    print("KERNEL_OK")
</pallas_src>

<mosaic_0001>
module attributes {stable_mosaic.version = 11 : i64} {
  func.func @_matmul_bias_direct_kernel(%arg0: i32, %arg1: i32, %arg2: memref<3888x25xbf16, #tpu.memory_space<vmem>>, %arg3: memref<25x32xbf16, #tpu.memory_space<vmem>>, %arg4: memref<1x32xf32, #tpu.memory_space<vmem>>, %arg5: memref<3888x32xbf16, #tpu.memory_space<vmem>>) attributes {dimension_semantics = [#tpu.dimension_semantics<parallel>, #tpu.dimension_semantics<parallel>], iteration_bounds = array<i64: 24, 1>, scalar_prefetch = 0 : i64, scratch_operands = 0 : i64, tpu.core_type = #tpu.core_type<tc>, window_params = [{transform_indices = @transform_0, window_bounds = array<i64: 3888, 25>}, {transform_indices = @transform_1, window_bounds = array<i64: 25, 32>}, {transform_indices = @transform_2, window_bounds = array<i64: 1, 32>}, {transform_indices = @transform_3, window_bounds = array<i64: 3888, 32>}]} {
    %c0 = arith.constant 0 : index
    %c0_0 = arith.constant 0 : index
    %0 = vector.load %arg2[%c0, %c0_0] : memref<3888x25xbf16, #tpu.memory_space<vmem>>, vector<3888x25xbf16>
    %c0_1 = arith.constant 0 : index
    %c0_2 = arith.constant 0 : index
    %1 = vector.load %arg3[%c0_1, %c0_2] : memref<25x32xbf16, #tpu.memory_space<vmem>>, vector<25x32xbf16>
    %cst = arith.constant dense<0.000000e+00> : vector<3888x32xf32>
    %2 = tpu.matmul %0, %1, %cst {dimension_numbers = #tpu.dot_dimension_numbers<[1], [0], [0], [1], [0, 0, 1, 1], [], []>} : vector<3888x25xbf16>, vector<25x32xbf16>, vector<3888x32xf32> -> vector<3888x32xf32>
    %c0_3 = arith.constant 0 : index
    %c0_4 = arith.constant 0 : index
    %3 = vector.load %arg4[%c0_3, %c0_4] : memref<1x32xf32, #tpu.memory_space<vmem>>, vector<1x32xf32>
    %4 = vector.broadcast %3 : vector<1x32xf32> to vector<3888x32xf32>
    %5 = arith.addf %2, %4 : vector<3888x32xf32>
    %cst_5 = arith.constant 0.000000e+00 : f32
    %6 = vector.broadcast %cst_5 : f32 to vector<3888x32xf32>
    %7 = arith.maximumf %5, %6 : vector<3888x32xf32>
    %8 = arith.truncf %7 : vector<3888x32xf32> to vector<3888x32xbf16>
    %c0_6 = arith.constant 0 : index
    %c0_7 = arith.constant 0 : index
    %9 = vector.load %arg5[%c0_6, %c0_7] : memref<3888x32xbf16, #tpu.memory_space<vmem>>, vector<3888x32xbf16>
    tpu.vector_store %arg5[%c0_6, %c0_7], %8 {strides = array<i32>} : memref<3888x32xbf16, #tpu.memory_space<vmem>>, vector<3888x32xbf16>,
    return
  }
  func.func @transform_0(%arg0: i32, %arg1: i32) -> (i32, i32) {
    %c0_i32 = arith.constant 0 : i32
    %c0_i32_0 = arith.constant 0 : i32
    return %arg0, %c0_i32 : i32, i32
  }
  func.func @transform_1(%arg0: i32, %arg1: i32) -> (i32, i32) {
    %c0_i32 = arith.constant 0 : i32
    %c0_i32_0 = arith.constant 0 : i32
    return %c0_i32, %arg1 : i32, i32
  }
  func.func @transform_2(%arg0: i32, %arg1: i32) -> (i32, i32) {
    %c0_i32 = arith.constant 0 : i32
    %c0_i32_0 = arith.constant 0 : i32
    return %c0_i32, %arg1 : i32, i32
  }
  func.func @transform_3(%arg0: i32, %arg1: i32) -> (i32, i32) {
    %c0_i32 = arith.constant 0 : i32
    return %arg0, %arg1 : i32, i32
  }
}

</mosaic_0001>

<bundles_post_ra>
// kernel: tpu_custom_call.1
= control target key start
LH: loop header
LB: loop body
LE: loop exit
PB: predicated region body
PF: predicated region fallthrough
CT: control target
= control target key end

     0   :  { %8 = vsyncpa [#allocation3], 0  ;;  %s13537_s0 = inlined_call_operand.hbm [shape: bf16[93312,25], index: 0, kind: input, shape index: {}]   ;;  %s13538_s1 = inlined_call_operand.vmem [shape: bf16[25,32], index: 1, kind: input, shape index: {}]   ;;  %s13539_s2 = inlined_call_operand.vmem [shape: f32[1,32], index: 2, kind: input, shape index: {}]   ;;  %s13540_s3 = inlined_call_operand.hbm [shape: bf16[93312,32], index: 3, kind: output, shape index: {}]  }
   0x1   :  { %10 = vsyncpa [#allocation3 + $0x1], 0 }
   0x2   :  { %11 = vsyncpa [#allocation4], 0 }
   0x3   :  { %13 = vsyncpa [#allocation4 + $0x1], 0  ;;  %s10880_s12 = smov 0   ;;  %s10882_s13 = smov 0  }
   0x4   :  { %s10884_s14 = smov 0   ;;  %s10886_s15 = smov 0  }
   0x5   :  { %s10888_s16 = smov 0   ;;  %s10890_s17 = smov 0  }
   0x6 LB: > { %s7716_s18 = sadd.s32 4294967295, %s10849_s17   ;;  %s7717_s19 = sadd.s32 4294967294, %s10849_s17   ;;  %s10849_s17 = sphi %s10890_s17, %s19_s17   ;;  %s10845_s16 = sphi %s10888_s16, %s13554_s16   ;;  %s10841_s15 = sphi %s10886_s15, %s13553_s15   ;;  %s10837_s14 = sphi %s10884_s14, %s13552_s14   ;;  %s10833_s13 = sphi %s10882_s13, %s13551_s13   ;;  %s10829_s12 = sphi %s10880_s12, %s13550_s12  }
   0x7   : > { %s31_s20 = sadd.s32 1, %s10845_s16  ;;  %s38_s21 = sadd.s32 1, %s10837_s14 }
   0x8   : > { %p33_p0 = scmp.ge.s32.totalorder %s31_s20, 24  ;;  %p45_p1 = scmp.ne.s32.totalorder %s10837_s14, %s10833_s13 }
   0x9   : > { %p46_p2 = scmp.eq.s32.totalorder %s10849_s17, 0  ;;  %p51_p3 = scmp.ne.s32.totalorder %s10833_s13, %s10829_s12 }
   0xa   : > { %s13556_s20 = smov (%p33_p0, %s31_s20), 0  ;;  %p52_p5 = scmp.eq.s32.totalorder %s7716_s18, 0 }
   0xb   : > { %p10921_p4 = por %p46_p2, %p45_p1  ;;  %s35_s23 = ssub.s32 %s10845_s16, %s13556_s20 }
   0xc   : > { %p129_p6 = scmp.eq.s32.totalorder %s7716_s18, 23  ;;  %p36_p7 = scmp.eq.s32.totalorder %s35_s23, 0 }
   0xd   : > { %p10927_p8 = por %p52_p5, %p51_p3  ;;  %p135_p10 = scmp.eq.s32.totalorder %s7717_s19, 23 }
   0xe   : > { %p10931_p9 = por %p129_p6, %p45_p1  ;;  %p10429_p12 = scmp.lt.s32.totalorder %s10849_s17, 24 }
   0xf   : > { %s10936_s26 = scalar_select %p36_p7, %s10837_s14, %s38_s21  }
  0x10   : > { %s13544_s25 = scalar_select %p10931_p9, 1, 0 }
  0x11   : > { %p10938_p11 = por %p135_p10, %p51_p3  ;;  %s168_s28 = sand.u32 1, %s10837_s14  }
  0x12   : > { %s10415_s29 = smul.u32 1944, %s168_s28  ;;  %p10947_p13 = pnand %p10429_p12, %p10921_p4 }
  0x13   : > { %s13545_s27 = scalar_select %p10938_p11, 1, 0 }
  0x14   : > { %s8702_s30 = smul.u32 31104, %s10845_s16  ;;  %s172_s8 = scalar_lea.vmem [#allocation2], %s10415_s29 }
  0x15   : > { %s179_s9 = sshll.u32 %s172_s8, 4  ;;  %s10959_s10 = scalar_lea.sflag [#allocation3], %s168_s28  ;;  %s10956_s9 = int_to_ptr.vmem [resolvable:$true] %s179_s9 }
  0x16   : > { %s10954_s7 = scalar_lea.hbm %s13537_s0, %s8702_s30  ;;  %p10739_p2 = pneg %p10947_p13 }
  0x17   : > { %s10737_s11 = scalar_lea.hbm %s10954_s7, 31104  ;;  %s10742_s21 = scalar_lea.hbm %s13537_s0, 746496 }
  0x18   : > { %p10738_p1 = scmp.ne.s32.totalorder %s10954_s7, %s10737_s11  ;;  %p10743_p5 = scmp.lt.u32.totalorder %s10954_s7, %s13537_s0 }
  0x19   : > { %p10744_p6 = scmp.lt.u32.totalorder %s10742_s21, %s10737_s11  ;;  %p10746_p10 = scmp.lt.u32.totalorder %s10737_s11, %s10954_s7 }
  0x1a   : > { %p10740_p3 = pnand %p10739_p2, %p10738_p1 }
  0x1b   : > { %p10745_p7 = por %p10744_p6, %p10743_p5 }
  0x1c   : > { %p10741_p4 = pneg %p10740_p3 }
  0x1d   : > { %p10747_p12 = por %p10746_p10, %p10745_p7 }
  0x1f   : > { %p10748_p0 = pnand %p10747_p12, %p10741_p4 }
  0x21   : > { %10751 = shalt.err (!%p10748_p0)
}
  0x22   : > { %s10752_s28 = scalar_lea.vmem %s10956_s9, 31104  ;;  %s10851_s29 = smov [#allocation2]  }
  0x23   : > { %p10753_p1 = scmp.ne.s32.totalorder %s10956_s9, %s10752_s28  ;;  %s10757_s30 = sshll.u32 %s10851_s29, 4  ;;  %s10758_s30 = int_to_ptr.vmem [resolvable:$false] %s10757_s30 }
  0x24   : > { %s10759_s5 = scalar_lea.vmem %s10758_s30, 62208  ;;  %p10760_p9 = scmp.lt.s32.totalorder %s10956_s9, %s10758_s30 }
  0x25   : > { %p10755_p3 = pnand %p10753_p1, %p10739_p2  ;;  %p10761_p5 = scmp.lt.s32.totalorder %s10759_s5, %s10752_s28 }
  0x27   : > { %p10756_p11 = pneg %p10755_p3  ;;  %p10762_p6 = por %p10761_p5, %p10760_p9 }
  0x29   : > { %p10763_p7 = pnand %p10762_p6, %p10756_p11 }
  0x2b   : > { %10766 = shalt.err (!%p10763_p7)
}
  0x2c   : > { %s10852_s6 = smov 64   ;;  %s10853_s8 = smov 4  }
  0x2d   : > { %10424 = dma.hbm_to_vmem [thread:$0]  (!%p10947_p13), %s10954_s7, 31104, %s10956_s9, %s10959_s10, %s10852_s6, %s10852_s6, %s10853_s8  }
  0x2e   : > { %p187_p0 = scmp.lt.s32.totalorder %s10849_s17, 25  ;;  %p13547_p2 = scmp.ge.s32.totalorder %s10849_s17, 1 }
  0x30   : > { %p188_p4 = pnand %p13547_p2, %p187_p0 }
  0x31   : > { %s10991_s11 = sand.u32 (!%p188_p4), 1, %s10833_s13  }
  0x32   : > { %191 = sbr.rel (%p188_p4) target bundleno = 1271 (0x4f7), region = 32  ;;  %s194_s19 = scalar_lea.sflag (!%p188_p4), [#allocation3], %s10991_s11 }
  0x33   : > { %s10416_s18 = smul.u32 (!%p188_p4), 1944, %s10991_s11 }
  0x35   : > { %s10997_s21 = scalar_lea.vmem (!%p188_p4), [#allocation2], %s10416_s18 }
  0x39   : > { %10820 = dma.done.wait (%p10927_p8), %s194_s19, 31104  }
  0x3a   : > { %10822 = vsyncadd (%p10927_p8), %s194_s19, 4294936192  ;;  %v10854_v0 = vmov 0.0   ;;  %vm2690_vm0 = vcmask 1043456   ;;  %vm10855_vm1 = vmmov 0   ;;  %vm2691_vm2 = vcmask 1044480   ;;  %v10486_v3 = vld [vmem:[%s13538_s1] sm:$0xff]  }
  0x3b   : > { %9435 = vmatprep.subr.bf16.mxu0 %v10854_v0  ;;  %10411 = vmatprep.subr.bf16.mxu1 %v10854_v0  ;;  %v10856_v1 = vmov 65535   ;;  %v10487_v5 = vld [vmem:[%s13538_s1 + $0x8] sm:$0x1f]   ;;  %v10488_v7 = vld [vmem:[%s10997_s21] sm:$0xff]   ;;  %vm1960_vm3 = vcmask 203776   ;;  %v10491_v10 = vld [vmem:[%s10997_s21 + $0x3d8] sm:$0xff]  }
  0x3c   : > { %9439 = vmatprep.mubr.msk.bf16.mxu0 %vm10855_vm1, %v10854_v0  ;;  %9927 = vmatprep.mubr.msk.bf16.mxu1 %vm10855_vm1, %v10854_v0  ;;  %v2692_v2 = vsel %vm2690_vm0, 4294967295, %v10856_v1  ;;  %v10489_v8 = vld [vmem:[%s10997_s21 + $0x3d0] sm:$0xff]   ;;  %v10490_v9 = vld [vmem:[%s10997_s21 + $0x8] sm:$0xff]   ;;  %v10493_v12 = vld [vmem:[%s10997_s21 + $0x3e0] sm:$0xff]   ;;  %vm7104_vm4 = vcmask 257024   ;;  %s11252_s23 = scalar_lea.vmem [#allocation5], %s10416_s18 }
  0x3d   : > { %v2693_v4 = vsel %vm2691_vm2, %v2692_v2, 0  ;;  %9436 = vmatpush3.bf16.msra.mxu0 %v10486_v3  ;;  %10413 = vmatpush3.bf16.msra.mxu1 %v10486_v3  ;;  %v10492_v11 = vld [vmem:[%s10997_s21 + $0x10] sm:$0xff]   ;;  %v10494_v13 = vld [vmem:[%s10997_s21 + $0x18] sm:$0xff]   ;;  %v10495_v14 = vld [vmem:[%s10997_s21 + $0x3e8] sm:$0xff]   ;;  %s9189_s9 = smul.u32 31104, %s10841_s15  ;;  %s7606_s10 = sshll.u32 %s11252_s23, 4  ;;  %s13485_s10 = int_to_ptr.vmem [resolvable:$true] %s7606_s10 }
  0x3e   : > { %9437 = vmatprep.subr.bf16.mxu0 %v10854_v0  ;;  %v2695_v6 = vand.u32 %v10487_v5, %v2693_v4  ;;  %10412 = vmatprep.subr.bf16.mxu1 %v10854_v0  ;;  %v10496_v15 = vld [vmem:[%s10997_s21 + $0x20] sm:$0xff]   ;;  %v10497_v16 = vld [vmem:[%s10997_s21 + $0x3f0] sm:$0xff]   ;;  %v10498_v17 = vld [vmem:[%s10997_s21 + $0x28] sm:$0xff]   ;;  %s7592_s15 = scalar_lea.sflag [#allocation4], %s10991_s11  ;;  %s10767_s30 = scalar_lea.vmem %s13485_s10, 31104 }
  0x3f   : > { %v10499_v18 = vld [vmem:[%s10997_s21 + $0x3f8] sm:$0xff]   ;;  %v10500_v19 = vld [vmem:[%s10997_s21 + $0x30] sm:$0xff]   ;;  %v10501_v20 = vld [vmem:[%s10997_s21 + $0x400] sm:$0xff]   ;;  %s13483_s29 = scalar_lea.hbm %s13540_s3, %s9189_s9  ;;  %p10768_p8 = scmp.ne.s32.totalorder %s13485_s10, %s10767_s30 }
  0x40   : > { %v10502_v21 = vld [vmem:[%s10997_s21 + $0x38] sm:$0xff]   ;;  %v10503_v22 = vld [vmem:[%s10997_s21 + $0x408] sm:$0xff]   ;;  %v10504_v23 = vld [vmem:[%s10997_s21 + $0x40] sm:$0xff]   ;;  %p13548_p9 = scmp.ne.s32.totalorder %s13544_s25, 0  ;;  %s10857_s5 = smov [#allocation5]  }
  0x41   : > { %9438 = vmatpush3.bf16.msra.mxu0 %v2695_v6  ;;  %10414 = vmatpush3.bf16.msra.mxu1 %v2695_v6  ;;  %v10505_v24 = vld [vmem:[%s10997_s21 + $0x410] sm:$0xff]   ;;  %v10506_v25 = vld [vmem:[%s10997_s21 + $0x48] sm:$0xff]   ;;  %v10507_v26 = vld [vmem:[%s10997_s21 + $0x418] sm:$0xff]   ;;  %s10771_s6 = sshll.u32 %s10857_s5, 4  ;;  %s10772_s6 = int_to_ptr.vmem [resolvable:$false] %s10771_s6 }
  0x42   : > { %v10508_v27 = vld [vmem:[%s10997_s21 + $0x50] sm:$0xff]   ;;  %v10509_v28 = vld [vmem:[%s10997_s21 + $0x420] sm:$0xff]   ;;  %v10510_v29 = vld [vmem:[%s10997_s21 + $0x58] sm:$0xff]   ;;  %p10769_p11 = pnand %p10768_p8, %p13548_p9  ;;  %s10773_s8 = scalar_lea.vmem %s10772_s6, 62208 }
  0x43   : > { %v10511_v30 = vld [vmem:[%s10997_s21 + $0x428] sm:$0xff]   ;;  %v10512_v31 = vld [vmem:[%s10997_s21 + $0x60] sm:$0xff]   ;;  %v10513_v32 = vld [vmem:[%s10997_s21 + $0x430] sm:$0xff]   ;;  %p10774_p10 = scmp.lt.s32.totalorder %s13485_s10, %s10772_s6  ;;  %p10775_p12 = scmp.lt.s32.totalorder %s10773_s8, %s10767_s30 }
  0x44   : > { %9440 = vmatmul.mubr.msk.bf16.vlgmr.msra.gmra.mrb[0].mxu0 %vm1960_vm3, %v10488_v7  ;;  %9928 = vmatmul.mubr.msk.bf16.vlgmr.msra.gmra.mrb[0].mxu1 %vm1960_vm3, %v10489_v8  ;;  %v10514_v33 = vld [vmem:[%s10997_s21 + $0x68] sm:$0xff]   ;;  %v10515_v34 = vld [vmem:[%s10997_s21 + $0x438] sm:$0xff]   ;;  %v10516_v35 = vld [vmem:[%s10997_s21 + $0x70] sm:$0xff]   ;;  %p10770_p13 = pneg %p10769_p11 }
  0x45   : > { %9443 = vmatprep.mubr.msk.bf16.mxu0 %vm10855_vm1, %v10854_v0  ;;  %9931 = vmatprep.mubr.msk.bf16.mxu1 %vm10855_vm1, %v10854_v0  ;;  %v10517_v36 = vld [vmem:[%s10997_s21 + $0x440] sm:$0xff]   ;;  %v10518_v37 = vld [vmem:[%s10997_s21 + $0x78] sm:$0xff]   ;;  %v10519_v38 = vld [vmem:[%s10997_s21 + $0x448] sm:$0xff]   ;;  %p10776_p1 = por %p10775_p12, %p10774_p10 }
  0x46   : > { %v10520_v39 = vld [vmem:[%s10997_s21 + $0x80] sm:$0xff]   ;;  %v10521_v40 = vld [vmem:[%s10997_s21 + $0x450] sm:$0xff]   ;;  %v10522_v41 = vld [vmem:[%s10997_s21 + $0x88] sm:$0xff]  }
  0x47   : > { %v10523_v42 = vld [vmem:[%s10997_s21 + $0x458] sm:$0xff]   ;;  %v10524_v43 = vld [vmem:[%s10997_s21 + $0x90] sm:$0xff]   ;;  %v10525_v44 = vld [vmem:[%s10997_s21 + $0x460] sm:$0xff]   ;;  %p10777_p3 = pnand %p10776_p1, %p10770_p13 }
  0x48   : > { %v10526_v45 = vld [vmem:[%s10997_s21 + $0x98] sm:$0xff]   ;;  %v10527_v46 = vld [vmem:[%s10997_s21 + $0x468] sm:$0xff]   ;;  %v10528_v47 = vld [vmem:[%s10997_s21 + $0xa0] sm:$0xff]  }
  0x49   : > { %v10529_v48 = vld [vmem:[%s10997_s21 + $0x470] sm:$0xff]   ;;  %v10530_v49 = vld [vmem:[%s10997_s21 + $0xa8] sm:$0xff]   ;;  %v10531_v50 = vld [vmem:[%s10997_s21 + $0x478] sm:$0xff]  }
  0x4a   : > { %v10532_v51 = vld [vmem:[%s10997_s21 + $0xb0] sm:$0xff]   ;;  %v10533_v52 = vld [vmem:[%s10997_s21 + $0x480] sm:$0xff]   ;;  %v10534_v53 = vld [vmem:[%s10997_s21 + $0xb8] sm:$0xff]  }
  0x4b   : > { %v10535_v54 = vld [vmem:[%s10997_s21 + $0x488] sm:$0xff]   ;;  %v10536_v55 = vld [vmem:[%s10997_s21 + $0xc0] sm:$0xff]   ;;  %v10537_v56 = vld [vmem:[%s10997_s21 + $0x490] sm:$0xff]  }
  0x4c   : > { %9444 = vmatmul.mubr.msk.bf16.gmra.mrb[4].mxu0 %vm1960_vm3, %v10490_v9  ;;  %9932 = vmatmul.mubr.msk.bf16.gmra.mrb[4].mxu1 %vm1960_vm3, %v10491_v10  ;;  %v10538_v57 = vld [vmem:[%s10997_s21 + $0xc8] sm:$0xff]   ;;  %v10539_v58 = vld [vmem:[%s10997_s21 + $0x498] sm:$0xff]   ;;  %v10540_v59 = vld [vmem:[%s10997_s21 + $0xd0] sm:$0xff]  }
  0x4d   : > { %9447 = vmatprep.mubr.msk.bf16.mxu0 %vm10855_vm1, %v10854_v0  ;;  %9935 = vmatprep.mubr.msk.bf16.mxu1 %vm10855_vm1, %v10854_v0  ;;  %v10541_v60 = vld [vmem:[%s10997_s21 + $0x4a0] sm:$0xff]   ;;  %v10542_v3 = vld [vmem:[%s10997_s21 + $0xd8] sm:$0xff]   ;;  %v10543_v6 = vld [vmem:[%s10997_s21 + $0x4a8] sm:$0xff]  }
  0x4e   : > { %v11232_v61 = vld [vmem:[%s13539_s2] ss:$0 sm:$0xff] }
  0x54   : > { %9448 = vmatmul.mubr.msk.bf16.gmra.mrb[8].mxu0 %vm1960_vm3, %v10492_v11  ;;  %9936 = vmatmul.mubr.msk.bf16.gmra.mrb[8].mxu1 %vm1960_vm3, %v10493_v12 }
  0x55   : > { %9451 = vmatprep.mubr.msk.bf16.mxu0 %vm10855_vm1, %v10854_v0  ;;  %9939 = vmatprep.mubr.msk.bf16.mxu1 %vm10855_vm1, %v10854_v0 }
  0x5c   : > { %9452 = vmatmul.mubr.msk.bf16.gmra.mrb[12].mxu0 %vm1960_vm3, %v10494_v13  ;;  %9940 = vmatmul.mubr.msk.bf16.gmra.mrb[12].mxu1 %vm1960_vm3, %v10495_v14 }
  0x5d   : > { %9455 = vmatprep.mubr.msk.bf16.mxu0 %vm10855_vm1, %v10854_v0  ;;  %9943 = vmatprep.mubr.msk.bf16.mxu1 %vm10855_vm1, %v10854_v0 }
  0x64   : > { %9456 = vmatmul.mubr.msk.bf16.gmra.mrb[16].mxu0 %vm1960_vm3, %v10496_v15  ;;  %9944 = vmatmul.mubr.msk.bf16.gmra.mrb[16].mxu1 %vm1960_vm3, %v10497_v16 }
  0x65   : > { %9459 = vmatprep.mubr.msk.bf16.mxu0 %vm10855_vm1, %v10854_v0  ;;  %9947 = vmatprep.mubr.msk.bf16.mxu1 %vm10855_vm1, %v10854_v0 }
  0x6c   : > { %9460 = vmatmul.mubr.msk.bf16.gmra.mrb[20].mxu0 %vm1960_vm3, %v10498_v17  ;;  %9948 = vmatmul.mubr.msk.bf16.gmra.mrb[20].mxu1 %vm1960_vm3, %v10499_v18 }
  0x6d   : > { %9463 = vmatprep.mubr.msk.bf16.mxu0 %vm10855_vm1, %v10854_v0  ;;  %9951 = vmatprep.mubr.msk.bf16.mxu1 %vm10855_vm1, %v10854_v0 }
  0x74   : > { %9464 = vmatmul.mubr.msk.bf16.gmra.mrb[24].mxu0 %vm1960_vm3, %v10500_v19  ;;  %9952 = vmatmul.mubr.msk.bf16.gmra.mrb[24].mxu1 %vm1960_vm3, %v10501_v20 }
  0x75   : > { %9467 = vmatprep.mubr.msk.bf16.mxu0 %vm10855_vm1, %v10854_v0  ;;  %9955 = vmatprep.mubr.msk.bf16.mxu1 %vm10855_vm1, %v10854_v0 }
  0x7c   : > { %9468 = vmatmul.mubr.msk.bf16.gmra.mrb[28].mxu0 %vm1960_vm3, %v10502_v21  ;;  %9956 = vmatmul.mubr.msk.bf16.gmra.mrb[28].mxu1 %vm1960_vm3, %v10503_v22 }
  0x7d   : > { %9471 = vmatprep.mubr.msk.bf16.mxu0 %vm10855_vm1, %v10854_v0  ;;  %9959 = vmatprep.mubr.msk.bf16.mxu1 %vm10855_vm1, %v10854_v0 }
  0x84   : > { %9472 = vmatmul.mubr.msk.bf16.gmra.mrb[32].mxu0 %vm1960_vm3, %v10504_v23  ;;  %9960 = vmatmul.mubr.msk.bf16.gmra.mrb[32].mxu1 %vm1960_vm3, %v10505_v24 }
  0x85   : > { %9475 = vmatprep.mubr.msk.bf16.mxu0 %vm10855_vm1, %v10854_v0  ;;  %9963 = vmatprep.mubr.msk.bf16.mxu1 %vm10855_vm1, %v10854_v0 }
  0x8c   : > { %9476 = vmatmul.mubr.msk.bf16.gmra.mrb[36].mxu0 %vm1960_vm3, %v10506_v25  ;;  %9964 = vmatmul.mubr.msk.bf16.gmra.mrb[36].mxu1 %vm1960_vm3, %v10507_v26  ;;  %v10544_v25 = vld [vmem:[%s10997_s21 + $0xe0] sm:$0xff]  }
  0x8d   : > { %9479 = vmatprep.mubr.msk.bf16.mxu0 %vm10855_vm1, %v10854_v0  ;;  %9967 = vmatprep.mubr.msk.bf16.mxu1 %vm10855_vm1, %v10854_v0 }
  0x94   : > { %9480 = vmatmul.mubr.msk.bf16.gmra.mrb[40].mxu0 %vm1960_vm3, %v10508_v27  ;;  %9968 = vmatmul.mubr.msk.bf16.gmra.mrb[40].mxu1 %vm1960_vm3, %v10509_v28  ;;  %v10545_v28 = vld [vmem:[%s10997_s21 + $0x4b0] sm:$0xff]  }
  0x95   : > { %9483 = vmatprep.mubr.msk.bf16.mxu0 %vm10855_vm1, %v10854_v0  ;;  %9971 = vmatprep.mubr.msk.bf16.mxu1 %vm10855_vm1, %v10854_v0 }
  0x9c   : > { %9484 = vmatmul.mubr.msk.bf16.gmra.mrb[44].mxu0 %vm1960_vm3, %v10510_v29  ;;  %9972 = vmatmul.mubr.msk.bf16.gmra.mrb[44].mxu1 %vm1960_vm3, %v10511_v30 }
  0x9d   : > { %9487 = vmatprep.mubr.msk.bf16.mxu0 %vm10855_vm1, %v10854_v0  ;;  %9975 = vmatprep.mubr.msk.bf16.mxu1 %vm10855_vm1, %v10854_v0 }
  0xa4   : > { %9488 = vmatmul.mubr.msk.bf16.gmra.mrb[48].mxu0 %vm1960_vm3, %v10512_v31  ;;  %9976 = vmatmul.mubr.msk.bf16.gmra.mrb[48].mxu1 %vm1960_vm3, %v10513_v32 }
  0xa5   : > { %9491 = vmatprep.mubr.msk.bf16.mxu0 %vm10855_vm1, %v10854_v0  ;;  %9979 = vmatprep.mubr.msk.bf16.mxu1 %vm10855_vm1, %v10854_v0 }
  0xac   : > { %9492 = vmatmul.mubr.msk.bf16.gmra.mrb[52].mxu0 %vm1960_vm3, %v10514_v33  ;;  %9980 = vmatmul.mubr.msk.bf16.gmra.mrb[52].mxu1 %vm1960_vm3, %v10515_v34 }
  0xad   : > { %9495 = vmatprep.mubr.msk.bf16.mxu0 %vm10855_vm1, %v10854_v0  ;;  %9983 = vmatprep.mubr.msk.bf16.mxu1 %vm10855_vm1, %v10854_v0 }
  0xb4   : > { %9496 = vmatmul.mubr.msk.bf16.gmra.mrb[56].mxu0 %vm1960_vm3, %v10516_v35  ;;  %9984 = vmatmul.mubr.msk.bf16.gmra.mrb[56].mxu1 %vm1960_vm3, %v10517_v36 }
  0xb5   : > { %9499 = vmatprep.mubr.msk.bf16.mxu0 %vm10855_vm1, %v10854_v0  ;;  %9987 = vmatprep.mubr.msk.bf16.mxu1 %vm10855_vm1, %v10854_v0 }
  0xbc   : > { %9500 = vmatmul.mubr.msk.bf16.gmra.mrb[60].mxu0 %vm1960_vm3, %v10518_v37  ;;  %9988 = vmatmul.mubr.msk.bf16.gmra.mrb[60].mxu1 %vm1960_vm3, %v10519_v38 }
  0xbd   : > { %9503 = vmatprep.mubr.msk.bf16.mxu0 %vm10855_vm1, %v10854_v0  ;;  %9991 = vmatprep.mubr.msk.bf16.mxu1 %vm10855_vm1, %v10854_v0 }
  0xc4   : > { %9504 = vmatmul.mubr.msk.bf16.gmra.mrb[64].mxu0 %vm1960_vm3, %v10520_v39  ;;  %9992 = vmatmul.mubr.msk.bf16.gmra.mrb[64].mxu1 %vm1960_vm3, %v10521_v40 }
  0xc5   : > { %9507 = vmatprep.mubr.msk.bf16.mxu0 %vm10855_vm1, %v10854_v0  ;;  %9995 = vmatprep.mubr.msk.bf16.mxu1 %vm10855_vm1, %v10854_v0 }
  0xcc   : > { %9508 = vmatmul.mubr.msk.bf16.gmra.mrb[68].mxu0 %vm1960_vm3, %v10522_v41  ;;  %9996 = vmatmul.mubr.msk.bf16.gmra.mrb[68].mxu1 %vm1960_vm3, %v10523_v42 }
  0xcd   : > { %9511 = vmatprep.mubr.msk.bf16.mxu0 %vm10855_vm1, %v10854_v0  ;;  %9999 = vmatprep.mubr.msk.bf16.mxu1 %vm10855_vm1, %v10854_v0 }
  0xd4   : > { %9512 = vmatmul.mubr.msk.bf16.gmra.mrb[72].mxu0 %vm1960_vm3, %v10524_v43  ;;  %10000 = vmatmul.mubr.msk.bf16.gmra.mrb[72].mxu1 %vm1960_vm3, %v10525_v44 }
  0xd5   : > { %9515 = vmatprep.mubr.msk.bf16.mxu0 %vm10855_vm1, %v10854_v0  ;;  %10003 = vmatprep.mubr.msk.bf16.mxu1 %vm10855_vm1, %v10854_v0 }
  0xdc   : > { %9516 = vmatmul.mubr.msk.bf16.gmra.mrb[76].mxu0 %vm1960_vm3, %v10526_v45  ;;  %10004 = vmatmul.mubr.msk.bf16.gmra.mrb[76].mxu1 %vm1960_vm3, %v10527_v46 }
  0xdd   : > { %9519 = vmatprep.mubr.msk.bf16.mxu0 %vm10855_vm1, %v10854_v0  ;;  %10007 = vmatprep.mubr.msk.bf16.mxu1 %vm10855_vm1, %v10854_v0 }
  0xe4   : > { %9520 = vmatmul.mubr.msk.bf16.gmra.mrb[80].mxu0 %vm1960_vm3, %v10528_v47  ;;  %10008 = vmatmul.mubr.msk.bf16.gmra.mrb[80].mxu1 %vm1960_vm3, %v10529_v48  ;;  %v10546_v47 = vld [vmem:[%s10997_s21 + $0xe8] sm:$0xff]  }
  0xe5   : > { %9523 = vmatprep.mubr.msk.bf16.mxu0 %vm10855_vm1, %v10854_v0  ;;  %10011 = vmatprep.mubr.msk.bf16.mxu1 %vm10855_vm1, %v10854_v0 }
  0xec   : > { %9524 = vmatmul.mubr.msk.bf16.gmra.mrb[84].mxu0 %vm1960_vm3, %v10530_v49  ;;  %10012 = vmatmul.mubr.msk.bf16.gmra.mrb[84].mxu1 %vm1960_vm3, %v10531_v50  ;;  %v10547_v50 = vld [vmem:[%s10997_s21 + $0x4b8] sm:$0xff]  }
  0xed   : > { %9527 = vmatprep.mubr.msk.bf16.mxu0 %vm10855_vm1, %v10854_v0  ;;  %10015 = vmatprep.mubr.msk.bf16.mxu1 %vm10855_vm1, %v10854_v0 }
  0xf4   : > { %9528 = vmatmul.mubr.msk.bf16.gmra.mrb[88].mxu0 %vm1960_vm3, %v10532_v51  ;;  %10016 = vmatmul.mubr.msk.bf16.gmra.mrb[88].mxu1 %vm1960_vm3, %v10533_v52 }
  0xf5   : > { %9531 = vmatprep.mubr.msk.bf16.mxu0 %vm10855_vm1, %v10854_v0  ;;  %10019 = vmatprep.mubr.msk.bf16.mxu1 %vm10855_vm1, %v10854_v0 }
  0xfc   : > { %9532 = vmatmul.mubr.msk.bf16.gmra.mrb[92].mxu0 %vm1960_vm3, %v10534_v53  ;;  %10020 = vmatmul.mubr.msk.bf16.gmra.mrb[92].mxu1 %vm1960_vm3, %v10535_v54 }
  0xfd   : > { %9535 = vmatprep.mubr.msk.bf16.mxu0 %vm10855_vm1, %v10854_v0  ;;  %10023 = vmatprep.mubr.msk.bf16.mxu1 %vm10855_vm1, %v10854_v0 }
 0x104   : > { %9536 = vmatmul.mubr.msk.bf16.gmra.mrb[96].mxu0 %vm1960_vm3, %v10536_v55  ;;  %10024 = vmatmul.mubr.msk.bf16.gmra.mrb[96].mxu1 %vm1960_vm3, %v10537_v56 }
 0x105   : > { %9539 = vmatprep.mubr.msk.bf16.mxu0 %vm10855_vm1, %v10854_v0  ;;  %10027 = vmatprep.mubr.msk.bf16.mxu1 %vm10855_vm1, %v10854_v0 }
 0x10c   : > { %9540 = vmatmul.mubr.msk.bf16.gmra.mrb[100].mxu0 %vm1960_vm3, %v10538_v57  ;;  %10028 = vmatmul.mubr.msk.bf16.gmra.mrb[100].mxu1 %vm1960_vm3, %v10539_v58 }
 0x10d   : > { %9543 = vmatprep.mubr.msk.bf16.mxu0 %vm10855_vm1, %v10854_v0  ;;  %10031 = vmatprep.mubr.msk.bf16.mxu1 %vm10855_vm1, %v10854_v0 }
 0x114   : > { %9544 = vmatmul.mubr.msk.bf16.gmra.mrb[104].mxu0 %vm1960_vm3, %v10540_v59  ;;  %10032 = vmatmul.mubr.msk.bf16.gmra.mrb[104].mxu1 %vm1960_vm3, %v10541_v60 }
 0x115   : > { %9547 = vmatprep.mubr.msk.bf16.mxu0 %vm10855_vm1, %v10854_v0  ;;  %10035 = vmatprep.mubr.msk.bf16.mxu1 %vm10855_vm1, %v10854_v0 }
 0x117   : > { %v2731_v62 = vpop.f32.mrb[0].mxu0  ;;  %v3707_v63 = vpop.f32.mrb[0].mxu1 }
 0x118   : > { %v2732_v1 = vadd.f32 %v11232_v61, %v2731_v62  ;;  %v9441_v2 = vpop.f32.mrb[1].mxu0  ;;  %v3708_v4 = vadd.f32 %v11232_v61, %v3707_v63  ;;  %v9929_v5 = vpop.f32.mrb[1].mxu1 }
 0x119   : > { %v2734_v7 = vpop.f32.mrb[2].mxu0  ;;  %v3710_v8 = vpop.f32.mrb[2].mxu1 }
 0x11a   : > { %v4674_v9 = vmax.f32 %v2732_v1, 0.0  ;;  %v2735_v10 = vadd.f32 %v11232_v61, %v2734_v7  ;;  %v9442_v11 = vpop.f32.mrb[3].mxu0  ;;  %v4918_v12 = vmax.f32 %v3708_v4, 0.0  ;;  %v3711_v13 = vadd.f32 %v11232_v61, %v3710_v8  ;;  %v9930_v14 = vpop.f32.mrb[3].mxu1  ;;  %v10548_v7 = vld [vmem:[%s10997_s21 + $0xf0] sm:$0xff]  }
 0x11c   : > { %v8703_v15 = vpack.c.bf16 %v4674_v9, %v4674_v9  ;;  %v4675_v16 = vmax.f32 %v2735_v10, 0.0  ;;  %9548 = vmatmul.mubr.msk.bf16.gmra.mrb[108].mxu0 %vm1960_vm3, %v10542_v3  ;;  %v8947_v17 = vpack.c.bf16 %v4918_v12, %v4918_v12  ;;  %v4919_v18 = vmax.f32 %v3711_v13, 0.0  ;;  %10036 = vmatmul.mubr.msk.bf16.gmra.mrb[108].mxu1 %vm1960_vm3, %v10543_v6  ;;  %v10549_v10 = vld [vmem:[%s10997_s21 + $0x4c0] sm:$0xff]  }
 0x11d   : > { %9551 = vmatprep.mubr.msk.bf16.mxu0 %vm10855_vm1, %v10854_v0  ;;  %10039 = vmatprep.mubr.msk.bf16.mxu1 %vm10855_vm1, %v10854_v0 }
 0x11e   : > { %7105 = vst.msk [vmem:[%s11252_s23] sm:$0xf] %vm7104_vm4, %v8703_v15  ;;  %v8704_v19 = vpack.c.bf16 %v4675_v16, %v4675_v16  ;;  %7349 = vst.msk [vmem:[%s11252_s23 + $0x3d0] sm:$0xf] %vm7104_vm4, %v8947_v17  ;;  %v8948_v20 = vpack.c.bf16 %v4919_v18, %v4919_v18 }
 0x11f   : > { %v2739_v21 = vpop.f32.mrb[4].mxu0  ;;  %v3715_v22 = vpop.f32.mrb[4].mxu1 }
 0x120   : > { %7106 = vst.msk [vmem:[%s11252_s23 + $0x4] sm:$0xf] %vm7104_vm4, %v8704_v19  ;;  %7350 = vst.msk [vmem:[%s11252_s23 + $0x3d4] sm:$0xf] %vm7104_vm4, %v8948_v20  ;;  %v2740_v23 = vadd.f32 %v11232_v61, %v2739_v21  ;;  %v9445_v24 = vpop.f32.mrb[5].mxu0  ;;  %v3716_v26 = vadd.f32 %v11232_v61, %v3715_v22  ;;  %v9933_v27 = vpop.f32.mrb[5].mxu1 }
 0x121   : > { %v2742_v29 = vpop.f32.mrb[6].mxu0  ;;  %v3718_v30 = vpop.f32.mrb[6].mxu1 }
 0x122   : > { %v4676_v31 = vmax.f32 %v2740_v23, 0.0  ;;  %v2743_v32 = vadd.f32 %v11232_v61, %v2742_v29  ;;  %v9446_v33 = vpop.f32.mrb[7].mxu0  ;;  %v4920_v34 = vmax.f32 %v3716_v26, 0.0  ;;  %v3719_v35 = vadd.f32 %v11232_v61, %v3718_v30  ;;  %v9934_v36 = vpop.f32.mrb[7].mxu1  ;;  %v10550_v29 = vld [vmem:[%s10997_s21 + $0xf8] sm:$0xff]  }
 0x124   : > { %v8705_v37 = vpack.c.bf16 %v4676_v31, %v4676_v31  ;;  %v4677_v38 = vmax.f32 %v2743_v32, 0.0  ;;  %9552 = vmatmul.mubr.msk.bf16.gmra.mrb[112].mxu0 %vm1960_vm3, %v10544_v25  ;;  %v8949_v39 = vpack.c.bf16 %v4920_v34, %v4920_v34  ;;  %v4921_v40 = vmax.f32 %v3719_v35, 0.0  ;;  %10040 = vmatmul.mubr.msk.bf16.gmra.mrb[112].mxu1 %vm1960_vm3, %v10545_v28  ;;  %v10551_v32 = vld [vmem:[%s10997_s21 + $0x4c8] sm:$0xff]  }
 0x125   : > { %9555 = vmatprep.mubr.msk.bf16.mxu0 %vm10855_vm1, %v10854_v0  ;;  %10043 = vmatprep.mubr.msk.bf16.mxu1 %vm10855_vm1, %v10854_v0 }
 0x126   : > { %7107 = vst.msk [vmem:[%s11252_s23 + $0x8] sm:$0xf] %vm7104_vm4, %v8705_v37  ;;  %v8706_v41 = vpack.c.bf16 %v4677_v38, %v4677_v38  ;;  %7351 = vst.msk [vmem:[%s11252_s23 + $0x3d8] sm:$0xf] %vm7104_vm4, %v8949_v39  ;;  %v8950_v42 = vpack.c.bf16 %v4921_v40, %v4921_v40 }
 0x127   : > { %v2747_v43 = vpop.f32.mrb[8].mxu0  ;;  %v3723_v44 = vpop.f32.mrb[8].mxu1 }
 0x128   : > { %7108 = vst.msk [vmem:[%s11252_s23 + $0xc] sm:$0xf] %vm7104_vm4, %v8706_v41  ;;  %7352 = vst.msk [vmem:[%s11252_s23 + $0x3dc] sm:$0xf] %vm7104_vm4, %v8950_v42  ;;  %v2748_v45 = vadd.f32 %v11232_v61, %v2747_v43  ;;  %v9449_v46 = vpop.f32.mrb[9].mxu0  ;;  %v3724_v48 = vadd.f32 %v11232_v61, %v3723_v44  ;;  %v9937_v49 = vpop.f32.mrb[9].mxu1 }
 0x129   : > { %v2750_v51 = vpop.f32.mrb[10].mxu0  ;;  %v3726_v52 = vpop.f32.mrb[10].mxu1 }
 0x12a   : > { %v4678_v53 = vmax.f32 %v2748_v45, 0.0  ;;  %v2751_v54 = vadd.f32 %v11232_v61, %v2750_v51  ;;  %v9450_v55 = vpop.f32.mrb[11].mxu0  ;;  %v4922_v56 = vmax.f32 %v3724_v48, 0.0  ;;  %v3727_v57 = vadd.f32 %v11232_v61, %v3726_v52  ;;  %v9938_v58 = vpop.f32.mrb[11].mxu1  ;;  %v10552_v51 = vld [vmem:[%s10997_s21 + $0x100] sm:$0xff]  }
 0x12c   : > { %v8707_v59 = vpack.c.bf16 %v4678_v53, %v4678_v53  ;;  %v4679_v60 = vmax.f32 %v2751_v54, 0.0  ;;  %9556 = vmatmul.mubr.msk.bf16.gmra.mrb[116].mxu0 %vm1960_vm3, %v10546_v47  ;;  %v8951_v62 = vpack.c.bf16 %v4922_v56, %v4922_v56  ;;  %v4923_v63 = vmax.f32 %v3727_v57, 0.0  ;;  %10044 = vmatmul.mubr.msk.bf16.gmra.mrb[116].mxu1 %vm1960_vm3, %v10547_v50  ;;  %v10553_v54 = vld [vmem:[%s10997_s21 + $0x4d0] sm:$0xff]  }
 0x12d   : > { %9559 = vmatprep.mubr.msk.bf16.mxu0 %vm10855_vm1, %v10854_v0  ;;  %10047 = vmatprep.mubr.msk.bf16.mxu1 %vm10855_vm1, %v10854_v0 }
 0x12e   : > { %7109 = vst.msk [vmem:[%s11252_s23 + $0x10] sm:$0xf] %vm7104_vm4, %v8707_v59  ;;  %v8708_v1 = vpack.c.bf16 %v4679_v60, %v4679_v60  ;;  %7353 = vst.msk [vmem:[%s11252_s23 + $0x3e0] sm:$0xf] %vm7104_vm4, %v8951_v62  ;;  %v8952_v2 = vpack.c.bf16 %v4923_v63, %v4923_v63 }
 0x12f   : > { %v2755_v3 = vpop.f32.mrb[12].mxu0  ;;  %v3731_v4 = vpop.f32.mrb[12].mxu1 }
 0x130   : > { %7110 = vst.msk [vmem:[%s11252_s23 + $0x14] sm:$0xf] %vm7104_vm4, %v8708_v1  ;;  %7354 = vst.msk [vmem:[%s11252_s23 + $0x3e4] sm:$0xf] %vm7104_vm4, %v8952_v2  ;;  %v2756_v5 = vadd.f32 %v11232_v61, %v2755_v3  ;;  %v9453_v6 = vpop.f32.mrb[13].mxu0  ;;  %v3732_v8 = vadd.f32 %v11232_v61, %v3731_v4  ;;  %v9941_v9 = vpop.f32.mrb[13].mxu1 }
 0x131   : > { %v2758_v11 = vpop.f32.mrb[14].mxu0  ;;  %v3734_v12 = vpop.f32.mrb[14].mxu1 }
 0x132   : > { %v4680_v13 = vmax.f32 %v2756_v5, 0.0  ;;  %v2759_v14 = vadd.f32 %v11232_v61, %v2758_v11  ;;  %v9454_v15 = vpop.f32.mrb[15].mxu0  ;;  %v4924_v16 = vmax.f32 %v3732_v8, 0.0  ;;  %v3735_v17 = vadd.f32 %v11232_v61, %v3734_v12  ;;  %v9942_v18 = vpop.f32.mrb[15].mxu1  ;;  %v10554_v11 = vld [vmem:[%s10997_s21 + $0x108] sm:$0xff]  }
 0x134   : > { %v8709_v19 = vpack.c.bf16 %v4680_v13, %v4680_v13  ;;  %v4681_v20 = vmax.f32 %v2759_v14, 0.0  ;;  %9560 = vmatmul.mubr.msk.bf16.gmra.mrb[120].mxu0 %vm1960_vm3, %v10548_v7  ;;  %v8953_v21 = vpack.c.bf16 %v4924_v16, %v4924_v16  ;;  %v4925_v22 = vmax.f32 %v3735_v17, 0.0  ;;  %10048 = vmatmul.mubr.msk.bf16.gmra.mrb[120].mxu1 %vm1960_vm3, %v10549_v10  ;;  %v10555_v14 = vld [vmem:[%s10997_s21 + $0x4d8] sm:$0xff]  }
 0x135   : > { %9563 = vmatprep.mubr.msk.bf16.mxu0 %vm10855_vm1, %v10854_v0  ;;  %10051 = vmatprep.mubr.msk.bf16.mxu1 %vm10855_vm1, %v10854_v0 }
 0x136   : > { %7111 = vst.msk [vmem:[%s11252_s23 + $0x18] sm:$0xf] %vm7104_vm4, %v8709_v19  ;;  %v8710_v23 = vpack.c.bf16 %v4681_v20, %v4681_v20  ;;  %7355 = vst.msk [vmem:[%s11252_s23 + $0x3e8] sm:$0xf] %vm7104_vm4, %v8953_v21  ;;  %v8954_v24 = vpack.c.bf16 %v4925_v22, %v4925_v22 }
 0x137   : > { %v2763_v25 = vpop.f32.mrb[16].mxu0  ;;  %v3739_v26 = vpop.f32.mrb[16].mxu1 }
 0x138   : > { %7112 = vst.msk [vmem:[%s11252_s23 + $0x1c] sm:$0xf] %vm7104_vm4, %v8710_v23  ;;  %7356 = vst.msk [vmem:[%s11252_s23 + $0x3ec] sm:$0xf] %vm7104_vm4, %v8954_v24  ;;  %v2764_v27 = vadd.f32 %v11232_v61, %v2763_v25  ;;  %v9457_v28 = vpop.f32.mrb[17].mxu0  ;;  %v3740_v30 = vadd.f32 %v11232_v61, %v3739_v26  ;;  %v9945_v31 = vpop.f32.mrb[17].mxu1 }
 0x139   : > { %v2766_v33 = vpop.f32.mrb[18].mxu0  ;;  %v3742_v34 = vpop.f32.mrb[18].mxu1 }
 0x13a   : > { %v4682_v35 = vmax.f32 %v2764_v27, 0.0  ;;  %v2767_v36 = vadd.f32 %v11232_v61, %v2766_v33  ;;  %v9458_v37 = vpop.f32.mrb[19].mxu0  ;;  %v4926_v38 = vmax.f32 %v3740_v30, 0.0  ;;  %v3743_v39 = vadd.f32 %v11232_v61, %v3742_v34  ;;  %v9946_v40 = vpop.f32.mrb[19].mxu1  ;;  %v10556_v33 = vld [vmem:[%s10997_s21 + $0x110] sm:$0xff]  }
 0x13c   : > { %v8711_v41 = vpack.c.bf16 %v4682_v35, %v4682_v35  ;;  %v4683_v42 = vmax.f32 %v2767_v36, 0.0  ;;  %9564 = vmatmul.mubr.msk.bf16.gmra.mrb[124].mxu0 %vm1960_vm3, %v10550_v29  ;;  %v8955_v43 = vpack.c.bf16 %v4926_v38, %v4926_v38  ;;  %v4927_v44 = vmax.f32 %v3743_v39, 0.0  ;;  %10052 = vmatmul.mubr.msk.bf16.gmra.mrb[124].mxu1 %vm1960_vm3, %v10551_v32  ;;  %v10557_v36 = vld [vmem:[%s10997_s21 + $0x4e0] sm:$0xff]  }
 0x13d   : > { %9567 = vmatprep.mubr.msk.bf16.mxu0 %vm10855_vm1, %v10854_v0  ;;  %10055 = vmatprep.mubr.msk.bf16.mxu1 %vm10855_vm1, %v10854_v0 }
 0x13e   : > { %7113 = vst.msk [vmem:[%s11252_s23 + $0x20] sm:$0xf] %vm7104_vm4, %v8711_v41  ;;  %v8712_v45 = vpack.c.bf16 %v4683_v42, %v4683_v42  ;;  %7357 = vst.msk [vmem:[%s11252_s23 + $0x3f0] sm:$0xf] %vm7104_vm4, %v8955_v43  ;;  %v8956_v46 = vpack.c.bf16 %v4927_v44, %v4927_v44 }
 0x13f   : > { %v2771_v47 = vpop.f32.mrb[20].mxu0  ;;  %v3747_v48 = vpop.f32.mrb[20].mxu1 }
 0x140   : > { %7114 = vst.msk [vmem:[%s11252_s23 + $0x24] sm:$0xf] %vm7104_vm4, %v8712_v45  ;;  %7358 = vst.msk [vmem:[%s11252_s23 + $0x3f4] sm:$0xf] %vm7104_vm4, %v8956_v46  ;;  %v2772_v49 = vadd.f32 %v11232_v61, %v2771_v47  ;;  %v9461_v50 = vpop.f32.mrb[21].mxu0  ;;  %v3748_v52 = vadd.f32 %v11232_v61, %v3747_v48  ;;  %v9949_v53 = vpop.f32.mrb[21].mxu1 }
 0x141   : > { %v2774_v55 = vpop.f32.mrb[22].mxu0  ;;  %v3750_v56 = vpop.f32.mrb[22].mxu1 }
 0x142   : > { %v4684_v57 = vmax.f32 %v2772_v49, 0.0  ;;  %v2775_v58 = vadd.f32 %v11232_v61, %v2774_v55  ;;  %v9462_v59 = vpop.f32.mrb[23].mxu0  ;;  %v4928_v60 = vmax.f32 %v3748_v52, 0.0  ;;  %v3751_v62 = vadd.f32 %v11232_v61, %v3750_v56  ;;  %v9950_v63 = vpop.f32.mrb[23].mxu1  ;;  %v10558_v55 = vld [vmem:[%s10997_s21 + $0x118] sm:$0xff]  }
 0x144   : > { %v8713_v1 = vpack.c.bf16 %v4684_v57, %v4684_v57  ;;  %v4685_v2 = vmax.f32 %v2775_v58, 0.0  ;;  %9568 = vmatmul.mubr.msk.bf16.gmra.mrb[128].mxu0 %vm1960_vm3, %v10552_v51  ;;  %v8957_v3 = vpack.c.bf16 %v4928_v60, %v4928_v60  ;;  %v4929_v4 = vmax.f32 %v3751_v62, 0.0  ;;  %10056 = vmatmul.mubr.msk.bf16.gmra.mrb[128].mxu1 %vm1960_vm3, %v10553_v54  ;;  %v10559_v58 = vld [vmem:[%s10997_s21 + $0x4e8] sm:$0xff]  }
 0x145   : > { %9571 = vmatprep.mubr.msk.bf16.mxu0 %vm10855_vm1, %v10854_v0  ;;  %10059 = vmatprep.mubr.msk.bf16.mxu1 %vm10855_vm1, %v10854_v0 }
 0x146   : > { %7115 = vst.msk [vmem:[%s11252_s23 + $0x28] sm:$0xf] %vm7104_vm4, %v8713_v1  ;;  %v8714_v5 = vpack.c.bf16 %v4685_v2, %v4685_v2  ;;  %7359 = vst.msk [vmem:[%s11252_s23 + $0x3f8] sm:$0xf] %vm7104_vm4, %v8957_v3  ;;  %v8958_v6 = vpack.c.bf16 %v4929_v4, %v4929_v4 }
 0x147   : > { %v2779_v7 = vpop.f32.mrb[24].mxu0  ;;  %v3755_v8 = vpop.f32.mrb[24].mxu1 }
 0x148   : > { %7116 = vst.msk [vmem:[%s11252_s23 + $0x2c] sm:$0xf] %vm7104_vm4, %v8714_v5  ;;  %7360 = vst.msk [vmem:[%s11252_s23 + $0x3fc] sm:$0xf] %vm7104_vm4, %v8958_v6  ;;  %v2780_v9 = vadd.f32 %v11232_v61, %v2779_v7  ;;  %v9465_v10 = vpop.f32.mrb[25].mxu0  ;;  %v3756_v12 = vadd.f32 %v11232_v61, %v3755_v8  ;;  %v9953_v13 = vpop.f32.mrb[25].mxu1 }
 0x149   : > { %v2782_v15 = vpop.f32.mrb[26].mxu0  ;;  %v3758_v16 = vpop.f32.mrb[26].mxu1 }
 0x14a   : > { %v4686_v17 = vmax.f32 %v2780_v9, 0.0  ;;  %v2783_v18 = vadd.f32 %v11232_v61, %v2782_v15  ;;  %v9466_v19 = vpop.f32.mrb[27].mxu0  ;;  %v4930_v20 = vmax.f32 %v3756_v12, 0.0  ;;  %v3759_v21 = vadd.f32 %v11232_v61, %v3758_v16  ;;  %v9954_v22 = vpop.f32.mrb[27].mxu1  ;;  %v10560_v15 = vld [vmem:[%s10997_s21 + $0x120] sm:$0xff]  }
 0x14c   : > { %v8715_v23 = vpack.c.bf16 %v4686_v17, %v4686_v17  ;;  %v4687_v24 = vmax.f32 %v2783_v18, 0.0  ;;  %9572 = vmatmul.mubr.msk.bf16.gmra.mrb[132].mxu0 %vm1960_vm3, %v10554_v11  ;;  %v8959_v25 = vpack.c.bf16 %v4930_v20, %v4930_v20  ;;  %v4931_v26 = vmax.f32 %v3759_v21, 0.0  ;;  %10060 = vmatmul.mubr.msk.bf16.gmra.mrb[132].mxu1 %vm1960_vm3, %v10555_v14  ;;  %v10561_v18 = vld [vmem:[%s10997_s21 + $0x4f0] sm:$0xff]  }
 0x14d   : > { %9575 = vmatprep.mubr.msk.bf16.mxu0 %vm10855_vm1, %v10854_v0  ;;  %10063 = vmatprep.mubr.msk.bf16.mxu1 %vm10855_vm1, %v10854_v0 }
 0x14e   : > { %7117 = vst.msk [vmem:[%s11252_s23 + $0x30] sm:$0xf] %vm7104_vm4, %v8715_v23  ;;  %v8716_v27 = vpack.c.bf16 %v4687_v24, %v4687_v24  ;;  %7361 = vst.msk [vmem:[%s11252_s23 + $0x400] sm:$0xf] %vm7104_vm4, %v8959_v25  ;;  %v8960_v28 = vpack.c.bf16 %v4931_v26, %v4931_v26 }
 0x14f   : > { %v2787_v29 = vpop.f32.mrb[28].mxu0  ;;  %v3763_v30 = vpop.f32.mrb[28].mxu1 }
 0x150   : > { %7118 = vst.msk [vmem:[%s11252_s23 + $0x34] sm:$0xf] %vm7104_vm4, %v8716_v27  ;;  %7362 = vst.msk [vmem:[%s11252_s23 + $0x404] sm:$0xf] %vm7104_vm4, %v8960_v28  ;;  %v2788_v31 = vadd.f32 %v11232_v61, %v2787_v29  ;;  %v9469_v32 = vpop.f32.mrb[29].mxu0  ;;  %v3764_v34 = vadd.f32 %v11232_v61, %v3763_v30  ;;  %v9957_v35 = vpop.f32.mrb[29].mxu1 }
 0x151   : > { %v2790_v37 = vpop.f32.mrb[30].mxu0  ;;  %v3766_v38 = vpop.f32.mrb[30].mxu1 }
 0x152   : > { %v4688_v39 = vmax.f32 %v2788_v31, 0.0  ;;  %v2791_v40 = vadd.f32 %v11232_v61, %v2790_v37  ;;  %v9470_v41 = vpop.f32.mrb[31].mxu0  ;;  %v4932_v42 = vmax.f32 %v3764_v34, 0.0  ;;  %v3767_v43 = vadd.f32 %v11232_v61, %v3766_v38  ;;  %v9958_v44 = vpop.f32.mrb[31].mxu1  ;;  %v10562_v37 = vld [vmem:[%s10997_s21 + $0x128] sm:$0xff]  }
 0x154   : > { %v8717_v45 = vpack.c.bf16 %v4688_v39, %v4688_v39  ;;  %v4689_v46 = vmax.f32 %v2791_v40, 0.0  ;;  %9576 = vmatmul.mubr.msk.bf16.gmra.mrb[136].mxu0 %vm1960_vm3, %v10556_v33  ;;  %v8961_v47 = vpack.c.bf16 %v4932_v42, %v4932_v42  ;;  %v4933_v48 = vmax.f32 %v3767_v43, 0.0  ;;  %10064 = vmatmul.mubr.msk.bf16.gmra.mrb[136].mxu1 %vm1960_vm3, %v10557_v36  ;;  %v10563_v40 = vld [vmem:[%s10997_s21 + $0x4f8] sm:$0xff]  }
 0x155   : > { %9579 = vmatprep.mubr.msk.bf16.mxu0 %vm10855_vm1, %v10854_v0  ;;  %10067 = vmatprep.mubr.msk.bf16.mxu1 %vm10855_vm1, %v10854_v0 }
 0x156   : > { %7119 = vst.msk [vmem:[%s11252_s23 + $0x38] sm:$0xf] %vm7104_vm4, %v8717_v45  ;;  %v8718_v49 = vpack.c.bf16 %v4689_v46, %v4689_v46  ;;  %7363 = vst.msk [vmem:[%s11252_s23 + $0x408] sm:$0xf] %vm7104_vm4, %v8961_v47  ;;  %v8962_v50 = vpack.c.bf16 %v4933_v48, %v4933_v48 }
 0x157   : > { %v2795_v51 = vpop.f32.mrb[32].mxu0  ;;  %v3771_v52 = vpop.f32.mrb[32].mxu1 }
 0x158   : > { %7120 = vst.msk [vmem:[%s11252_s23 + $0x3c] sm:$0xf] %vm7104_vm4, %v8718_v49  ;;  %7364 = vst.msk [vmem:[%s11252_s23 + $0x40c] sm:$0xf] %vm7104_vm4, %v8962_v50  ;;  %v2796_v53 = vadd.f32 %v11232_v61, %v2795_v51  ;;  %v9473_v54 = vpop.f32.mrb[33].mxu0  ;;  %v3772_v56 = vadd.f32 %v11232_v61, %v3771_v52  ;;  %v9961_v57 = vpop.f32.mrb[33].mxu1 }
 0x159   : > { %v2798_v59 = vpop.f32.mrb[34].mxu0  ;;  %v3774_v60 = vpop.f32.mrb[34].mxu1 }
 0x15a   : > { %v4690_v62 = vmax.f32 %v2796_v53, 0.0  ;;  %v2799_v63 = vadd.f32 %v11232_v61, %v2798_v59  ;;  %v9474_v1 = vpop.f32.mrb[35].mxu0  ;;  %v4934_v2 = vmax.f32 %v3772_v56, 0.0  ;;  %v3775_v3 = vadd.f32 %v11232_v61, %v3774_v60  ;;  %v9962_v4 = vpop.f32.mrb[35].mxu1  ;;  %v10564_v59 = vld [vmem:[%s10997_s21 + $0x130] sm:$0xff]  }
 0x15c   : > { %v8719_v5 = vpack.c.bf16 %v4690_v62, %v4690_v62  ;;  %v4691_v6 = vmax.f32 %v2799_v63, 0.0  ;;  %9580 = vmatmul.mubr.msk.bf16.gmra.mrb[140].mxu0 %vm1960_vm3, %v10558_v55  ;;  %v8963_v7 = vpack.c.bf16 %v4934_v2, %v4934_v2  ;;  %v4935_v8 = vmax.f32 %v3775_v3, 0.0  ;;  %10068 = vmatmul.mubr.msk.bf16.gmra.mrb[140].mxu1 %vm1960_vm3, %v10559_v58  ;;  %v10565_v63 = vld [vmem:[%s10997_s21 + $0x500] sm:$0xff]  }
 0x15d   : > { %9583 = vmatprep.mubr.msk.bf16.mxu0 %vm10855_vm1, %v10854_v0  ;;  %10071 = vmatprep.mubr.msk.bf16.mxu1 %vm10855_vm1, %v10854_v0 }
 0x15e   : > { %7121 = vst.msk [vmem:[%s11252_s23 + $0x40] sm:$0xf] %vm7104_vm4, %v8719_v5  ;;  %v8720_v9 = vpack.c.bf16 %v4691_v6, %v4691_v6  ;;  %7365 = vst.msk [vmem:[%s11252_s23 + $0x410] sm:$0xf] %vm7104_vm4, %v8963_v7  ;;  %v8964_v10 = vpack.c.bf16 %v4935_v8, %v4935_v8 }
 0x15f   : > { %v2803_v11 = vpop.f32.mrb[36].mxu0  ;;  %v3779_v12 = vpop.f32.mrb[36].mxu1 }
 0x160   : > { %7122 = vst.msk [vmem:[%s11252_s23 + $0x44] sm:$0xf] %vm7104_vm4, %v8720_v9  ;;  %7366 = vst.msk [vmem:[%s11252_s23 + $0x414] sm:$0xf] %vm7104_vm4, %v8964_v10  ;;  %v2804_v13 = vadd.f32 %v11232_v61, %v2803_v11  ;;  %v9477_v14 = vpop.f32.mrb[37].mxu0  ;;  %v3780_v16 = vadd.f32 %v11232_v61, %v3779_v12  ;;  %v9965_v17 = vpop.f32.mrb[37].mxu1 }
 0x161   : > { %v2806_v19 = vpop.f32.mrb[38].mxu0  ;;  %v3782_v20 = vpop.f32.mrb[38].mxu1 }
 0x162   : > { %v4692_v21 = vmax.f32 %v2804_v13, 0.0  ;;  %v2807_v22 = vadd.f32 %v11232_v61, %v2806_v19  ;;  %v9478_v23 = vpop.f32.mrb[39].mxu0  ;;  %v4936_v24 = vmax.f32 %v3780_v16, 0.0  ;;  %v3783_v25 = vadd.f32 %v11232_v61, %v3782_v20  ;;  %v9966_v26 = vpop.f32.mrb[39].mxu1  ;;  %v10566_v19 = vld [vmem:[%s10997_s21 + $0x138] sm:$0xff]  }
 0x164   : > { %v8721_v27 = vpack.c.bf16 %v4692_v21, %v4692_v21  ;;  %v4693_v28 = vmax.f32 %v2807_v22, 0.0  ;;  %9584 = vmatmul.mubr.msk.bf16.gmra.mrb[144].mxu0 %vm1960_vm3, %v10560_v15  ;;  %v8965_v29 = vpack.c.bf16 %v4936_v24, %v4936_v24  ;;  %v4937_v30 = vmax.f32 %v3783_v25, 0.0  ;;  %10072 = vmatmul.mubr.msk.bf16.gmra.mrb[144].mxu1 %vm1960_vm3, %v10561_v18  ;;  %v10567_v22 = vld [vmem:[%s10997_s21 + $0x508] sm:$0xff]  }
 0x165   : > { %9587 = vmatprep.mubr.msk.bf16.mxu0 %vm10855_vm1, %v10854_v0  ;;  %10075 = vmatprep.mubr.msk.bf16.mxu1 %vm10855_vm1, %v10854_v0 }
 0x166   : > { %7123 = vst.msk [vmem:[%s11252_s23 + $0x48] sm:$0xf] %vm7104_vm4, %v8721_v27  ;;  %v8722_v31 = vpack.c.bf16 %v4693_v28, %v4693_v28  ;;  %7367 = vst.msk [vmem:[%s11252_s23 + $0x418] sm:$0xf] %vm7104_vm4, %v8965_v29  ;;  %v8966_v32 = vpack.c.bf16 %v4937_v30, %v4937_v30 }
 0x167   : > { %v2811_v33 = vpop.f32.mrb[40].mxu0  ;;  %v3787_v34 = vpop.f32.mrb[40].mxu1 }
 0x168   : > { %7124 = vst.msk [vmem:[%s11252_s23 + $0x4c] sm:$0xf] %vm7104_vm4, %v8722_v31  ;;  %7368 = vst.msk [vmem:[%s11252_s23 + $0x41c] sm:$0xf] %vm7104_vm4, %v8966_v32  ;;  %v2812_v35 = vadd.f32 %v11232_v61, %v2811_v33  ;;  %v9481_v36 = vpop.f32.mrb[41].mxu0  ;;  %v3788_v38 = vadd.f32 %v11232_v61, %v3787_v34  ;;  %v9969_v39 = vpop.f32.mrb[41].mxu1 }
 0x169   : > { %v2814_v41 = vpop.f32.mrb[42].mxu0  ;;  %v3790_v42 = vpop.f32.mrb[42].mxu1 }
 0x16a   : > { %v4694_v43 = vmax.f32 %v2812_v35, 0.0  ;;  %v2815_v44 = vadd.f32 %v11232_v61, %v2814_v41  ;;  %v9482_v45 = vpop.f32.mrb[43].mxu0  ;;  %v4938_v46 = vmax.f32 %v3788_v38, 0.0  ;;  %v3791_v47 = vadd.f32 %v11232_v61, %v3790_v42  ;;  %v9970_v48 = vpop.f32.mrb[43].mxu1  ;;  %v10568_v41 = vld [vmem:[%s10997_s21 + $0x140] sm:$0xff]  }
 0x16c   : > { %v8723_v49 = vpack.c.bf16 %v4694_v43, %v4694_v43  ;;  %v4695_v50 = vmax.f32 %v2815_v44, 0.0  ;;  %9588 = vmatmul.mubr.msk.bf16.gmra.mrb[148].mxu0 %vm1960_vm3, %v10562_v37  ;;  %v8967_v51 = vpack.c.bf16 %v4938_v46, %v4938_v46  ;;  %v4939_v52 = vmax.f32 %v3791_v47, 0.0  ;;  %10076 = vmatmul.mubr.msk.bf16.gmra.mrb[148].mxu1 %vm1960_vm3, %v10563_v40  ;;  %v10569_v44 = vld [vmem:[%s10997_s21 + $0x510] sm:$0xff]  }
 0x16d   : > { %9591 = vmatprep.mubr.msk.bf16.mxu0 %vm10855_vm1, %v10854_v0  ;;  %10079 = vmatprep.mubr.msk.bf16.mxu1 %vm10855_vm1, %v10854_v0 }
 0x16e   : > { %7125 = vst.msk [vmem:[%s11252_s23 + $0x50] sm:$0xf] %vm7104_vm4, %v8723_v49  ;;  %v8724_v53 = vpack.c.bf16 %v4695_v50, %v4695_v50  ;;  %7369 = vst.msk [vmem:[%s11252_s23 + $0x420] sm:$0xf] %vm7104_vm4, %v8967_v51  ;;  %v8968_v54 = vpack.c.bf16 %v4939_v52, %v4939_v52 }
 0x16f   : > { %v2819_v55 = vpop.f32.mrb[44].mxu0  ;;  %v3795_v56 = vpop.f32.mrb[44].mxu1 }
 0x170   : > { %7126 = vst.msk [vmem:[%s11252_s23 + $0x54] sm:$0xf] %vm7104_vm4, %v8724_v53  ;;  %7370 = vst.msk [vmem:[%s11252_s23 + $0x424] sm:$0xf] %vm7104_vm4, %v8968_v54  ;;  %v2820_v57 = vadd.f32 %v11232_v61, %v2819_v55  ;;  %v9485_v58 = vpop.f32.mrb[45].mxu0  ;;  %v3796_v60 = vadd.f32 %v11232_v61, %v3795_v56  ;;  %v9973_v62 = vpop.f32.mrb[45].mxu1 }
 0x171   : > { %v2822_v1 = vpop.f32.mrb[46].mxu0  ;;  %v3798_v2 = vpop.f32.mrb[46].mxu1 }
 0x172   : > { %v4696_v3 = vmax.f32 %v2820_v57, 0.0  ;;  %v2823_v4 = vadd.f32 %v11232_v61, %v2822_v1  ;;  %v9486_v5 = vpop.f32.mrb[47].mxu0  ;;  %v4940_v6 = vmax.f32 %v3796_v60, 0.0  ;;  %v3799_v7 = vadd.f32 %v11232_v61, %v3798_v2  ;;  %v9974_v8 = vpop.f32.mrb[47].mxu1  ;;  %v10570_v1 = vld [vmem:[%s10997_s21 + $0x148] sm:$0xff]  }
 0x174   : > { %v8725_v9 = vpack.c.bf16 %v4696_v3, %v4696_v3  ;;  %v4697_v10 = vmax.f32 %v2823_v4, 0.0  ;;  %9592 = vmatmul.mubr.msk.bf16.gmra.mrb[152].mxu0 %vm1960_vm3, %v10564_v59  ;;  %v8969_v11 = vpack.c.bf16 %v4940_v6, %v4940_v6  ;;  %v4941_v12 = vmax.f32 %v3799_v7, 0.0  ;;  %10080 = vmatmul.mubr.msk.bf16.gmra.mrb[152].mxu1 %vm1960_vm3, %v10565_v63  ;;  %v10571_v4 = vld [vmem:[%s10997_s21 + $0x518] sm:$0xff]  }
 0x175   : > { %9595 = vmatprep.mubr.msk.bf16.mxu0 %vm10855_vm1, %v10854_v0  ;;  %10083 = vmatprep.mubr.msk.bf16.mxu1 %vm10855_vm1, %v10854_v0 }
 0x176   : > { %7127 = vst.msk [vmem:[%s11252_s23 + $0x58] sm:$0xf] %vm7104_vm4, %v8725_v9  ;;  %v8726_v13 = vpack.c.bf16 %v4697_v10, %v4697_v10  ;;  %7371 = vst.msk [vmem:[%s11252_s23 + $0x428] sm:$0xf] %vm7104_vm4, %v8969_v11  ;;  %v8970_v14 = vpack.c.bf16 %v4941_v12, %v4941_v12 }
 0x177   : > { %v2827_v15 = vpop.f32.mrb[48].mxu0  ;;  %v3803_v16 = vpop.f32.mrb[48].mxu1 }
 0x178   : > { %7128 = vst.msk [vmem:[%s11252_s23 + $0x5c] sm:$0xf] %vm7104_vm4, %v8726_v13  ;;  %7372 = vst.msk [vmem:[%s11252_s23 + $0x42c] sm:$0xf] %vm7104_vm4, %v8970_v14  ;;  %v2828_v17 = vadd.f32 %v11232_v61, %v2827_v15  ;;  %v9489_v18 = vpop.f32.mrb[49].mxu0  ;;  %v3804_v20 = vadd.f32 %v11232_v61, %v3803_v16  ;;  %v9977_v21 = vpop.f32.mrb[49].mxu1 }
 0x179   : > { %v2830_v23 = vpop.f32.mrb[50].mxu0  ;;  %v3806_v24 = vpop.f32.mrb[50].mxu1 }
 0x17a   : > { %v4698_v25 = vmax.f32 %v2828_v17, 0.0  ;;  %v2831_v26 = vadd.f32 %v11232_v61, %v2830_v23  ;;  %v9490_v27 = vpop.f32.mrb[51].mxu0  ;;  %v4942_v28 = vmax.f32 %v3804_v20, 0.0  ;;  %v3807_v29 = vadd.f32 %v11232_v61, %v3806_v24  ;;  %v9978_v30 = vpop.f32.mrb[51].mxu1  ;;  %v10572_v23 = vld [vmem:[%s10997_s21 + $0x150] sm:$0xff]  }
 0x17c   : > { %v8727_v31 = vpack.c.bf16 %v4698_v25, %v4698_v25  ;;  %v4699_v32 = vmax.f32 %v2831_v26, 0.0  ;;  %9596 = vmatmul.mubr.msk.bf16.gmra.mrb[156].mxu0 %vm1960_vm3, %v10566_v19  ;;  %v8971_v33 = vpack.c.bf16 %v4942_v28, %v4942_v28  ;;  %v4943_v34 = vmax.f32 %v3807_v29, 0.0  ;;  %10084 = vmatmul.mubr.msk.bf16.gmra.mrb[156].mxu1 %vm1960_vm3, %v10567_v22  ;;  %v10573_v26 = vld [vmem:[%s10997_s21 + $0x520] sm:$0xff]  }
 0x17d   : > { %9599 = vmatprep.mubr.msk.bf16.mxu0 %vm10855_vm1, %v10854_v0  ;;  %10087 = vmatprep.mubr.msk.bf16.mxu1 %vm10855_vm1, %v10854_v0 }
 0x17e   : > { %7129 = vst.msk [vmem:[%s11252_s23 + $0x60] sm:$0xf] %vm7104_vm4, %v8727_v31  ;;  %v8728_v35 = vpack.c.bf16 %v4699_v32, %v4699_v32  ;;  %7373 = vst.msk [vmem:[%s11252_s23 + $0x430] sm:$0xf] %vm7104_vm4, %v8971_v33  ;;  %v8972_v36 = vpack.c.bf16 %v4943_v34, %v4943_v34 }
 0x17f   : > { %v2835_v37 = vpop.f32.mrb[52].mxu0  ;;  %v3811_v38 = vpop.f32.mrb[52].mxu1 }
 0x180   : > { %7130 = vst.msk [vmem:[%s11252_s23 + $0x64] sm:$0xf] %vm7104_vm4, %v8728_v35  ;;  %7374 = vst.msk [vmem:[%s11252_s23 + $0x434] sm:$0xf] %vm7104_vm4, %v8972_v36  ;;  %v2836_v39 = vadd.f32 %v11232_v61, %v2835_v37  ;;  %v9493_v40 = vpop.f32.mrb[53].mxu0  ;;  %v3812_v42 = vadd.f32 %v11232_v61, %v3811_v38  ;;  %v9981_v43 = vpop.f32.mrb[53].mxu1 }
 0x181   : > { %v2838_v45 = vpop.f32.mrb[54].mxu0  ;;  %v3814_v46 = vpop.f32.mrb[54].mxu1 }
 0x182   : > { %v4700_v47 = vmax.f32 %v2836_v39, 0.0  ;;  %v2839_v48 = vadd.f32 %v11232_v61, %v2838_v45  ;;  %v9494_v49 = vpop.f32.mrb[55].mxu0  ;;  %v4944_v50 = vmax.f32 %v3812_v42, 0.0  ;;  %v3815_v51 = vadd.f32 %v11232_v61, %v3814_v46  ;;  %v9982_v52 = vpop.f32.mrb[55].mxu1  ;;  %v10574_v45 = vld [vmem:[%s10997_s21 + $0x158] sm:$0xff]  }
 0x184   : > { %v8729_v53 = vpack.c.bf16 %v4700_v47, %v4700_v47  ;;  %v4701_v54 = vmax.f32 %v2839_v48, 0.0  ;;  %9600 = vmatmul.mubr.msk.bf16.gmra.mrb[160].mxu0 %vm1960_vm3, %v10568_v41  ;;  %v8973_v55 = vpack.c.bf16 %v4944_v50, %v4944_v50  ;;  %v4945_v56 = vmax.f32 %v3815_v51, 0.0  ;;  %10088 = vmatmul.mubr.msk.bf16.gmra.mrb[160].mxu1 %vm1960_vm3, %v10569_v44  ;;  %v10575_v48 = vld [vmem:[%s10997_s21 + $0x528] sm:$0xff]  }
 0x185   : > { %9603 = vmatprep.mubr.msk.bf16.mxu0 %vm10855_vm1, %v10854_v0  ;;  %10091 = vmatprep.mubr.msk.bf16.mxu1 %vm10855_vm1, %v10854_v0 }
 0x186   : > { %7131 = vst.msk [vmem:[%s11252_s23 + $0x68] sm:$0xf] %vm7104_vm4, %v8729_v53  ;;  %v8730_v57 = vpack.c.bf16 %v4701_v54, %v4701_v54  ;;  %7375 = vst.msk [vmem:[%s11252_s23 + $0x438] sm:$0xf] %vm7104_vm4, %v8973_v55  ;;  %v8974_v58 = vpack.c.bf16 %v4945_v56, %v4945_v56 }
 0x187   : > { %v2843_v59 = vpop.f32.mrb[56].mxu0  ;;  %v3819_v60 = vpop.f32.mrb[56].mxu1 }
 0x188   : > { %7132 = vst.msk [vmem:[%s11252_s23 + $0x6c] sm:$0xf] %vm7104_vm4, %v8730_v57  ;;  %7376 = vst.msk [vmem:[%s11252_s23 + $0x43c] sm:$0xf] %vm7104_vm4, %v8974_v58  ;;  %v2844_v62 = vadd.f32 %v11232_v61, %v2843_v59  ;;  %v9497_v63 = vpop.f32.mrb[57].mxu0  ;;  %v3820_v2 = vadd.f32 %v11232_v61, %v3819_v60  ;;  %v9985_v3 = vpop.f32.mrb[57].mxu1 }
 0x189   : > { %v2846_v5 = vpop.f32.mrb[58].mxu0  ;;  %v3822_v6 = vpop.f32.mrb[58].mxu1 }
 0x18a   : > { %v4702_v7 = vmax.f32 %v2844_v62, 0.0  ;;  %v2847_v8 = vadd.f32 %v11232_v61, %v2846_v5  ;;  %v9498_v9 = vpop.f32.mrb[59].mxu0  ;;  %v4946_v10 = vmax.f32 %v3820_v2, 0.0  ;;  %v3823_v11 = vadd.f32 %v11232_v61, %v3822_v6  ;;  %v9986_v12 = vpop.f32.mrb[59].mxu1  ;;  %v11585_v2 = vld [vmem:[%s13539_s2] ss:$0 sm:$0xff] }
 0x18b   : > { %v10576_v5 = vld [vmem:[%s10997_s21 + $0x160] sm:$0xff]  }
 0x18c   : > { %v8731_v13 = vpack.c.bf16 %v4702_v7, %v4702_v7  ;;  %v4703_v14 = vmax.f32 %v2847_v8, 0.0  ;;  %9604 = vmatmul.mubr.msk.bf16.gmra.mrb[164].mxu0 %vm1960_vm3, %v10570_v1  ;;  %v8975_v15 = vpack.c.bf16 %v4946_v10, %v4946_v10  ;;  %v4947_v16 = vmax.f32 %v3823_v11, 0.0  ;;  %10092 = vmatmul.mubr.msk.bf16.gmra.mrb[164].mxu1 %vm1960_vm3, %v10571_v4  ;;  %v10577_v8 = vld [vmem:[%s10997_s21 + $0x530] sm:$0xff]  }
 0x18d   : > { %9607 = vmatprep.mubr.msk.bf16.mxu0 %vm10855_vm1, %v10854_v0  ;;  %10095 = vmatprep.mubr.msk.bf16.mxu1 %vm10855_vm1, %v10854_v0 }
 0x18e   : > { %7133 = vst.msk [vmem:[%s11252_s23 + $0x70] sm:$0xf] %vm7104_vm4, %v8731_v13  ;;  %v8732_v17 = vpack.c.bf16 %v4703_v14, %v4703_v14  ;;  %7377 = vst.msk [vmem:[%s11252_s23 + $0x440] sm:$0xf] %vm7104_vm4, %v8975_v15  ;;  %v8976_v18 = vpack.c.bf16 %v4947_v16, %v4947_v16 }
 0x18f   : > { %v2851_v19 = vpop.f32.mrb[60].mxu0  ;;  %v3827_v20 = vpop.f32.mrb[60].mxu1 }
 0x190   : > { %7134 = vst.msk [vmem:[%s11252_s23 + $0x74] sm:$0xf] %vm7104_vm4, %v8732_v17  ;;  %7378 = vst.msk [vmem:[%s11252_s23 + $0x444] sm:$0xf] %vm7104_vm4, %v8976_v18  ;;  %v2852_v21 = vadd.f32 %v11232_v61, %v2851_v19  ;;  %v9501_v22 = vpop.f32.mrb[61].mxu0  ;;  %v3828_v24 = vadd.f32 %v11232_v61, %v3827_v20  ;;  %v9989_v25 = vpop.f32.mrb[61].mxu1 }
 0x191   : > { %v2854_v27 = vpop.f32.mrb[62].mxu0  ;;  %v3830_v28 = vpop.f32.mrb[62].mxu1 }
 0x192   : > { %v4704_v29 = vmax.f32 %v2852_v21, 0.0  ;;  %v2855_v30 = vadd.f32 %v11232_v61, %v2854_v27  ;;  %v9502_v31 = vpop.f32.mrb[63].mxu0  ;;  %v4948_v32 = vmax.f32 %v3828_v24, 0.0  ;;  %v3831_v33 = vadd.f32 %v11232_v61, %v3830_v28  ;;  %v9990_v34 = vpop.f32.mrb[63].mxu1  ;;  %v10578_v27 = vld [vmem:[%s10997_s21 + $0x168] sm:$0xff]  }
 0x194   : > { %v8733_v35 = vpack.c.bf16 %v4704_v29, %v4704_v29  ;;  %v4705_v36 = vmax.f32 %v2855_v30, 0.0  ;;  %9608 = vmatmul.mubr.msk.bf16.gmra.mrb[168].mxu0 %vm1960_vm3, %v10572_v23  ;;  %v8977_v37 = vpack.c.bf16 %v4948_v32, %v4948_v32  ;;  %v4949_v38 = vmax.f32 %v3831_v33, 0.0  ;;  %10096 = vmatmul.mubr.msk.bf16.gmra.mrb[168].mxu1 %vm1960_vm3, %v10573_v26  ;;  %v10579_v30 = vld [vmem:[%s10997_s21 + $0x538] sm:$0xff]  }
 0x195   : > { %9611 = vmatprep.mubr.msk.bf16.mxu0 %vm10855_vm1, %v10854_v0  ;;  %10099 = vmatprep.mubr.msk.bf16.mxu1 %vm10855_vm1, %v10854_v0 }
 0x196   : > { %7135 = vst.msk [vmem:[%s11252_s23 + $0x78] sm:$0xf] %vm7104_vm4, %v8733_v35  ;;  %v8734_v39 = vpack.c.bf16 %v4705_v36, %v4705_v36  ;;  %7379 = vst.msk [vmem:[%s11252_s23 + $0x448] sm:$0xf] %vm7104_vm4, %v8977_v37  ;;  %v8978_v40 = vpack.c.bf16 %v4949_v38, %v4949_v38 }
 0x197   : > { %v2859_v41 = vpop.f32.mrb[64].mxu0  ;;  %v3835_v42 = vpop.f32.mrb[64].mxu1 }
 0x198   : > { %7136 = vst.msk [vmem:[%s11252_s23 + $0x7c] sm:$0xf] %vm7104_vm4, %v8734_v39  ;;  %7380 = vst.msk [vmem:[%s11252_s23 + $0x44c] sm:$0xf] %vm7104_vm4, %v8978_v40  ;;  %v2860_v43 = vadd.f32 %v11232_v61, %v2859_v41  ;;  %v9505_v44 = vpop.f32.mrb[65].mxu0  ;;  %v3836_v46 = vadd.f32 %v11232_v61, %v3835_v42  ;;  %v9993_v47 = vpop.f32.mrb[65].mxu1 }
 0x199   : > { %v2862_v49 = vpop.f32.mrb[66].mxu0  ;;  %v3838_v50 = vpop.f32.mrb[66].mxu1 }
 0x19a   : > { %v4706_v51 = vmax.f32 %v2860_v43, 0.0  ;;  %v2863_v52 = vadd.f32 %v11232_v61, %v2862_v49  ;;  %v9506_v53 = vpop.f32.mrb[67].mxu0  ;;  %v4950_v54 = vmax.f32 %v3836_v46, 0.0  ;;  %v3839_v55 = vadd.f32 %v11232_v61, %v3838_v50  ;;  %v9994_v56 = vpop.f32.mrb[67].mxu1  ;;  %v10580_v49 = vld [vmem:[%s10997_s21 + $0x170] sm:$0xff]  }
 0x19c   : > { %v8735_v57 = vpack.c.bf16 %v4706_v51, %v4706_v51  ;;  %v4707_v58 = vmax.f32 %v2863_v52, 0.0  ;;  %9612 = vmatmul.mubr.msk.bf16.gmra.mrb[172].mxu0 %vm1960_vm3, %v10574_v45  ;;  %v8979_v59 = vpack.c.bf16 %v4950_v54, %v4950_v54  ;;  %v4951_v60 = vmax.f32 %v3839_v55, 0.0  ;;  %10100 = vmatmul.mubr.msk.bf16.gmra.mrb[172].mxu1 %vm1960_vm3, %v10575_v48  ;;  %v10581_v52 = vld [vmem:[%s10997_s21 + $0x540] sm:$0xff]  }
 0x19d   : > { %9615 = vmatprep.mubr.msk.bf16.mxu0 %vm10855_vm1, %v10854_v0  ;;  %10103 = vmatprep.mubr.msk.bf16.mxu1 %vm10855_vm1, %v10854_v0 }
 0x19e   : > { %7137 = vst.msk [vmem:[%s11252_s23 + $0x80] sm:$0xf] %vm7104_vm4, %v8735_v57  ;;  %v8736_v61 = vpack.c.bf16 %v4707_v58, %v4707_v58  ;;  %7381 = vst.msk [vmem:[%s11252_s23 + $0x450] sm:$0xf] %vm7104_vm4, %v8979_v59  ;;  %v8980_v62 = vpack.c.bf16 %v4951_v60, %v4951_v60 }
 0x19f   : > { %v2867_v63 = vpop.f32.mrb[68].mxu0  ;;  %v3843_v1 = vpop.f32.mrb[68].mxu1 }
 0x1a0   : > { %7138 = vst.msk [vmem:[%s11252_s23 + $0x84] sm:$0xf] %vm7104_vm4, %v8736_v61  ;;  %7382 = vst.msk [vmem:[%s11252_s23 + $0x454] sm:$0xf] %vm7104_vm4, %v8980_v62  ;;  %v2868_v3 = vadd.f32 %v11585_v2, %v2867_v63  ;;  %v9509_v4 = vpop.f32.mrb[69].mxu0  ;;  %v3844_v6 = vadd.f32 %v11585_v2, %v3843_v1  ;;  %v9997_v7 = vpop.f32.mrb[69].mxu1 }
 0x1a1   : > { %v2870_v9 = vpop.f32.mrb[70].mxu0  ;;  %v3846_v10 = vpop.f32.mrb[70].mxu1 }
 0x1a2   : > { %v4708_v11 = vmax.f32 %v2868_v3, 0.0  ;;  %v2871_v12 = vadd.f32 %v11585_v2, %v2870_v9  ;;  %v9510_v13 = vpop.f32.mrb[71].mxu0  ;;  %v4952_v14 = vmax.f32 %v3844_v6, 0.0  ;;  %v3847_v15 = vadd.f32 %v11585_v2, %v3846_v10  ;;  %v9998_v16 = vpop.f32.mrb[71].mxu1  ;;  %v10582_v9 = vld [vmem:[%s10997_s21 + $0x178] sm:$0xff]  }
 0x1a4   : > { %v8737_v17 = vpack.c.bf16 %v4708_v11, %v4708_v11  ;;  %v4709_v18 = vmax.f32 %v2871_v12, 0.0  ;;  %9616 = vmatmul.mubr.msk.bf16.gmra.mrb[176].mxu0 %vm1960_vm3, %v10576_v5  ;;  %v8981_v19 = vpack.c.bf16 %v4952_v14, %v4952_v14  ;;  %v4953_v20 = vmax.f32 %v3847_v15, 0.0  ;;  %10104 = vmatmul.mubr.msk.bf16.gmra.mrb[176].mxu1 %vm1960_vm3, %v10577_v8  ;;  %v10583_v12 = vld [vmem:[%s10997_s21 + $0x548] sm:$0xff]  }
 0x1a5   : > { %9619 = vmatprep.mubr.msk.bf16.mxu0 %vm10855_vm1, %v10854_v0  ;;  %10107 = vmatprep.mubr.msk.bf16.mxu1 %vm10855_vm1, %v10854_v0 }
 0x1a6   : > { %7139 = vst.msk [vmem:[%s11252_s23 + $0x88] sm:$0xf] %vm7104_vm4, %v8737_v17  ;;  %v8738_v21 = vpack.c.bf16 %v4709_v18, %v4709_v18  ;;  %7383 = vst.msk [vmem:[%s11252_s23 + $0x458] sm:$0xf] %vm7104_vm4, %v8981_v19  ;;  %v8982_v22 = vpack.c.bf16 %v4953_v20, %v4953_v20 }
 0x1a7   : > { %v2875_v23 = vpop.f32.mrb[72].mxu0  ;;  %v3851_v24 = vpop.f32.mrb[72].mxu1 }
 0x1a8   : > { %7140 = vst.msk [vmem:[%s11252_s23 + $0x8c] sm:$0xf] %vm7104_vm4, %v8738_v21  ;;  %7384 = vst.msk [vmem:[%s11252_s23 + $0x45c] sm:$0xf] %vm7104_vm4, %v8982_v22  ;;  %v2876_v25 = vadd.f32 %v11585_v2, %v2875_v23  ;;  %v9513_v26 = vpop.f32.mrb[73].mxu0  ;;  %v3852_v28 = vadd.f32 %v11585_v2, %v3851_v24  ;;  %v10001_v29 = vpop.f32.mrb[73].mxu1 }
 0x1a9   : > { %v2878_v31 = vpop.f32.mrb[74].mxu0  ;;  %v3854_v32 = vpop.f32.mrb[74].mxu1 }
 0x1aa   : > { %v4710_v33 = vmax.f32 %v2876_v25, 0.0  ;;  %v2879_v34 = vadd.f32 %v11585_v2, %v2878_v31  ;;  %v9514_v35 = vpop.f32.mrb[75].mxu0  ;;  %v4954_v36 = vmax.f32 %v3852_v28, 0.0  ;;  %v3855_v37 = vadd.f32 %v11585_v2, %v3854_v32  ;;  %v10002_v38 = vpop.f32.mrb[75].mxu1  ;;  %v10584_v31 = vld [vmem:[%s10997_s21 + $0x180] sm:$0xff]  }
 0x1ac   : > { %v8739_v39 = vpack.c.bf16 %v4710_v33, %v4710_v33  ;;  %v4711_v40 = vmax.f32 %v2879_v34, 0.0  ;;  %9620 = vmatmul.mubr.msk.bf16.gmra.mrb[180].mxu0 %vm1960_vm3, %v10578_v27  ;;  %v8983_v41 = vpack.c.bf16 %v4954_v36, %v4954_v36  ;;  %v4955_v42 = vmax.f32 %v3855_v37, 0.0  ;;  %10108 = vmatmul.mubr.msk.bf16.gmra.mrb[180].mxu1 %vm1960_vm3, %v10579_v30  ;;  %v10585_v34 = vld [vmem:[%s10997_s21 + $0x550] sm:$0xff]  }
 0x1ad   : > { %9623 = vmatprep.mubr.msk.bf16.mxu0 %vm10855_vm1, %v10854_v0  ;;  %10111 = vmatprep.mubr.msk.bf16.mxu1 %vm10855_vm1, %v10854_v0 }
 0x1ae   : > { %7141 = vst.msk [vmem:[%s11252_s23 + $0x90] sm:$0xf] %vm7104_vm4, %v8739_v39  ;;  %v8740_v43 = vpack.c.bf16 %v4711_v40, %v4711_v40  ;;  %7385 = vst.msk [vmem:[%s11252_s23 + $0x460] sm:$0xf] %vm7104_vm4, %v8983_v41  ;;  %v8984_v44 = vpack.c.bf16 %v4955_v42, %v4955_v42 }
 0x1af   : > { %v2883_v45 = vpop.f32.mrb[76].mxu0  ;;  %v3859_v46 = vpop.f32.mrb[76].mxu1 }
 0x1b0   : > { %7142 = vst.msk [vmem:[%s11252_s23 + $0x94] sm:$0xf] %vm7104_vm4, %v8740_v43  ;;  %7386 = vst.msk [vmem:[%s11252_s23 + $0x464] sm:$0xf] %vm7104_vm4, %v8984_v44  ;;  %v2884_v47 = vadd.f32 %v11585_v2, %v2883_v45  ;;  %v9517_v48 = vpop.f32.mrb[77].mxu0  ;;  %v3860_v50 = vadd.f32 %v11585_v2, %v3859_v46  ;;  %v10005_v51 = vpop.f32.mrb[77].mxu1 }
 0x1b1   : > { %v2886_v53 = vpop.f32.mrb[78].mxu0  ;;  %v3862_v54 = vpop.f32.mrb[78].mxu1 }
 0x1b2   : > { %v4712_v55 = vmax.f32 %v2884_v47, 0.0  ;;  %v2887_v56 = vadd.f32 %v11585_v2, %v2886_v53  ;;  %v9518_v57 = vpop.f32.mrb[79].mxu0  ;;  %v4956_v58 = vmax.f32 %v3860_v50, 0.0  ;;  %v3863_v59 = vadd.f32 %v11585_v2, %v3862_v54  ;;  %v10006_v60 = vpop.f32.mrb[79].mxu1  ;;  %v10586_v53 = vld [vmem:[%s10997_s21 + $0x188] sm:$0xff]  }
 0x1b4   : > { %v8741_v61 = vpack.c.bf16 %v4712_v55, %v4712_v55  ;;  %v4713_v62 = vmax.f32 %v2887_v56, 0.0  ;;  %9624 = vmatmul.mubr.msk.bf16.gmra.mrb[184].mxu0 %vm1960_vm3, %v10580_v49  ;;  %v8985_v63 = vpack.c.bf16 %v4956_v58, %v4956_v58  ;;  %v4957_v1 = vmax.f32 %v3863_v59, 0.0  ;;  %10112 = vmatmul.mubr.msk.bf16.gmra.mrb[184].mxu1 %vm1960_vm3, %v10581_v52  ;;  %v10587_v56 = vld [vmem:[%s10997_s21 + $0x558] sm:$0xff]  }
 0x1b5   : > { %9627 = vmatprep.mubr.msk.bf16.mxu0 %vm10855_vm1, %v10854_v0  ;;  %10115 = vmatprep.mubr.msk.bf16.mxu1 %vm10855_vm1, %v10854_v0 }
 0x1b6   : > { %7143 = vst.msk [vmem:[%s11252_s23 + $0x98] sm:$0xf] %vm7104_vm4, %v8741_v61  ;;  %v8742_v3 = vpack.c.bf16 %v4713_v62, %v4713_v62  ;;  %7387 = vst.msk [vmem:[%s11252_s23 + $0x468] sm:$0xf] %vm7104_vm4, %v8985_v63  ;;  %v8986_v4 = vpack.c.bf16 %v4957_v1, %v4957_v1 }
 0x1b7   : > { %v2891_v5 = vpop.f32.mrb[80].mxu0  ;;  %v3867_v6 = vpop.f32.mrb[80].mxu1 }
 0x1b8   : > { %7144 = vst.msk [vmem:[%s11252_s23 + $0x9c] sm:$0xf] %vm7104_vm4, %v8742_v3  ;;  %7388 = vst.msk [vmem:[%s11252_s23 + $0x46c] sm:$0xf] %vm7104_vm4, %v8986_v4  ;;  %v2892_v7 = vadd.f32 %v11585_v2, %v2891_v5  ;;  %v9521_v8 = vpop.f32.mrb[81].mxu0  ;;  %v3868_v10 = vadd.f32 %v11585_v2, %v3867_v6  ;;  %v10009_v11 = vpop.f32.mrb[81].mxu1 }
 0x1b9   : > { %v2894_v13 = vpop.f32.mrb[82].mxu0  ;;  %v3870_v14 = vpop.f32.mrb[82].mxu1 }
 0x1ba   : > { %v4714_v15 = vmax.f32 %v2892_v7, 0.0  ;;  %v2895_v16 = vadd.f32 %v11585_v2, %v2894_v13  ;;  %v9522_v17 = vpop.f32.mrb[83].mxu0  ;;  %v4958_v18 = vmax.f32 %v3868_v10, 0.0  ;;  %v3871_v19 = vadd.f32 %v11585_v2, %v3870_v14  ;;  %v10010_v20 = vpop.f32.mrb[83].mxu1  ;;  %v10588_v13 = vld [vmem:[%s10997_s21 + $0x190] sm:$0xff]  }
 0x1bc   : > { %v8743_v21 = vpack.c.bf16 %v4714_v15, %v4714_v15  ;;  %v4715_v22 = vmax.f32 %v2895_v16, 0.0  ;;  %9628 = vmatmul.mubr.msk.bf16.gmra.mrb[188].mxu0 %vm1960_vm3, %v10582_v9  ;;  %v8987_v23 = vpack.c.bf16 %v4958_v18, %v4958_v18  ;;  %v4959_v24 = vmax.f32 %v3871_v19, 0.0  ;;  %10116 = vmatmul.mubr.msk.bf16.gmra.mrb[188].mxu1 %vm1960_vm3, %v10583_v12  ;;  %v10589_v16 = vld [vmem:[%s10997_s21 + $0x560] sm:$0xff]  }
 0x1bd   : > { %9631 = vmatprep.mubr.msk.bf16.mxu0 %vm10855_vm1, %v10854_v0  ;;  %10119 = vmatprep.mubr.msk.bf16.mxu1 %vm10855_vm1, %v10854_v0 }
 0x1be   : > { %7145 = vst.msk [vmem:[%s11252_s23 + $0xa0] sm:$0xf] %vm7104_vm4, %v8743_v21  ;;  %v8744_v25 = vpack.c.bf16 %v4715_v22, %v4715_v22  ;;  %7389 = vst.msk [vmem:[%s11252_s23 + $0x470] sm:$0xf] %vm7104_vm4, %v8987_v23  ;;  %v8988_v26 = vpack.c.bf16 %v4959_v24, %v4959_v24 }
 0x1bf   : > { %v2899_v27 = vpop.f32.mrb[84].mxu0  ;;  %v3875_v28 = vpop.f32.mrb[84].mxu1 }
 0x1c0   : > { %7146 = vst.msk [vmem:[%s11252_s23 + $0xa4] sm:$0xf] %vm7104_vm4, %v8744_v25  ;;  %7390 = vst.msk [vmem:[%s11252_s23 + $0x474] sm:$0xf] %vm7104_vm4, %v8988_v26  ;;  %v2900_v29 = vadd.f32 %v11585_v2, %v2899_v27  ;;  %v9525_v30 = vpop.f32.mrb[85].mxu0  ;;  %v3876_v32 = vadd.f32 %v11585_v2, %v3875_v28  ;;  %v10013_v33 = vpop.f32.mrb[85].mxu1 }
 0x1c1   : > { %v2902_v35 = vpop.f32.mrb[86].mxu0  ;;  %v3878_v36 = vpop.f32.mrb[86].mxu1 }
 0x1c2   : > { %v4716_v37 = vmax.f32 %v2900_v29, 0.0  ;;  %v2903_v38 = vadd.f32 %v11585_v2, %v2902_v35  ;;  %v9526_v39 = vpop.f32.mrb[87].mxu0  ;;  %v4960_v40 = vmax.f32 %v3876_v32, 0.0  ;;  %v3879_v41 = vadd.f32 %v11585_v2, %v3878_v36  ;;  %v10014_v42 = vpop.f32.mrb[87].mxu1  ;;  %v10590_v35 = vld [vmem:[%s10997_s21 + $0x198] sm:$0xff]  }
 0x1c4   : > { %v8745_v43 = vpack.c.bf16 %v4716_v37, %v4716_v37  ;;  %v4717_v44 = vmax.f32 %v2903_v38, 0.0  ;;  %9632 = vmatmul.mubr.msk.bf16.gmra.mrb[192].mxu0 %vm1960_vm3, %v10584_v31  ;;  %v8989_v45 = vpack.c.bf16 %v4960_v40, %v4960_v40  ;;  %v4961_v46 = vmax.f32 %v3879_v41, 0.0  ;;  %10120 = vmatmul.mubr.msk.bf16.gmra.mrb[192].mxu1 %vm1960_vm3, %v10585_v34  ;;  %v10591_v38 = vld [vmem:[%s10997_s21 + $0x568] sm:$0xff]  }
 0x1c5   : > { %9635 = vmatprep.mubr.msk.bf16.mxu0 %vm10855_vm1, %v10854_v0  ;;  %10123 = vmatprep.mubr.msk.bf16.mxu1 %vm10855_vm1, %v10854_v0 }
 0x1c6   : > { %7147 = vst.msk [vmem:[%s11252_s23 + $0xa8] sm:$0xf] %vm7104_vm4, %v8745_v43  ;;  %v8746_v47 = vpack.c.bf16 %v4717_v44, %v4717_v44  ;;  %7391 = vst.msk [vmem:[%s11252_s23 + $0x478] sm:$0xf] %vm7104_vm4, %v8989_v45  ;;  %v8990_v48 = vpack.c.bf16 %v4961_v46, %v4961_v46 }
 0x1c7   : > { %v2907_v49 = vpop.f32.mrb[88].mxu0  ;;  %v3883_v50 = vpop.f32.mrb[88].mxu1 }
 0x1c8   : > { %7148 = vst.msk [vmem:[%s11252_s23 + $0xac] sm:$0xf] %vm7104_vm4, %v8746_v47  ;;  %7392 = vst.msk [vmem:[%s11252_s23 + $0x47c] sm:$0xf] %vm7104_vm4, %v8990_v48  ;;  %v2908_v51 = vadd.f32 %v11585_v2, %v2907_v49  ;;  %v9529_v52 = vpop.f32.mrb[89].mxu0  ;;  %v3884_v54 = vadd.f32 %v11585_v2, %v3883_v50  ;;  %v10017_v55 = vpop.f32.mrb[89].mxu1 }
 0x1c9   : > { %v2910_v57 = vpop.f32.mrb[90].mxu0  ;;  %v3886_v58 = vpop.f32.mrb[90].mxu1 }
 0x1ca   : > { %v4718_v59 = vmax.f32 %v2908_v51, 0.0  ;;  %v2911_v60 = vadd.f32 %v11585_v2, %v2910_v57  ;;  %v9530_v61 = vpop.f32.mrb[91].mxu0  ;;  %v4962_v62 = vmax.f32 %v3884_v54, 0.0  ;;  %v3887_v63 = vadd.f32 %v11585_v2, %v3886_v58  ;;  %v10018_v1 = vpop.f32.mrb[91].mxu1  ;;  %v10592_v57 = vld [vmem:[%s10997_s21 + $0x1a0] sm:$0xff]  }
 0x1cc   : > { %v8747_v3 = vpack.c.bf16 %v4718_v59, %v4718_v59  ;;  %v4719_v4 = vmax.f32 %v2911_v60, 0.0  ;;  %9636 = vmatmul.mubr.msk.bf16.gmra.mrb[196].mxu0 %vm1960_vm3, %v10586_v53  ;;  %v8991_v5 = vpack.c.bf16 %v4962_v62, %v4962_v62  ;;  %v4963_v6 = vmax.f32 %v3887_v63, 0.0  ;;  %10124 = vmatmul.mubr.msk.bf16.gmra.mrb[196].mxu1 %vm1960_vm3, %v10587_v56  ;;  %v10593_v60 = vld [vmem:[%s10997_s21 + $0x570] sm:$0xff]  }
 0x1cd   : > { %9639 = vmatprep.mubr.msk.bf16.mxu0 %vm10855_vm1, %v10854_v0  ;;  %10127 = vmatprep.mubr.msk.bf16.mxu1 %vm10855_vm1, %v10854_v0 }
 0x1ce   : > { %7149 = vst.msk [vmem:[%s11252_s23 + $0xb0] sm:$0xf] %vm7104_vm4, %v8747_v3  ;;  %v8748_v7 = vpack.c.bf16 %v4719_v4, %v4719_v4  ;;  %7393 = vst.msk [vmem:[%s11252_s23 + $0x480] sm:$0xf] %vm7104_vm4, %v8991_v5  ;;  %v8992_v8 = vpack.c.bf16 %v4963_v6, %v4963_v6 }
 0x1cf   : > { %v2915_v9 = vpop.f32.mrb[92].mxu0  ;;  %v3891_v10 = vpop.f32.mrb[92].mxu1 }
 0x1d0   : > { %7150 = vst.msk [vmem:[%s11252_s23 + $0xb4] sm:$0xf] %vm7104_vm4, %v8748_v7  ;;  %7394 = vst.msk [vmem:[%s11252_s23 + $0x484] sm:$0xf] %vm7104_vm4, %v8992_v8  ;;  %v2916_v11 = vadd.f32 %v11585_v2, %v2915_v9  ;;  %v9533_v12 = vpop.f32.mrb[93].mxu0  ;;  %v3892_v14 = vadd.f32 %v11585_v2, %v3891_v10  ;;  %v10021_v15 = vpop.f32.mrb[93].mxu1 }
 0x1d1   : > { %v2918_v17 = vpop.f32.mrb[94].mxu0  ;;  %v3894_v18 = vpop.f32.mrb[94].mxu1 }
 0x1d2   : > { %v4720_v19 = vmax.f32 %v2916_v11, 0.0  ;;  %v2919_v20 = vadd.f32 %v11585_v2, %v2918_v17  ;;  %v9534_v21 = vpop.f32.mrb[95].mxu0  ;;  %v4964_v22 = vmax.f32 %v3892_v14, 0.0  ;;  %v3895_v23 = vadd.f32 %v11585_v2, %v3894_v18  ;;  %v10022_v24 = vpop.f32.mrb[95].mxu1  ;;  %v10594_v17 = vld [vmem:[%s10997_s21 + $0x1a8] sm:$0xff]  }
 0x1d4   : > { %v8749_v25 = vpack.c.bf16 %v4720_v19, %v4720_v19  ;;  %v4721_v26 = vmax.f32 %v2919_v20, 0.0  ;;  %9640 = vmatmul.mubr.msk.bf16.gmra.mrb[200].mxu0 %vm1960_vm3, %v10588_v13  ;;  %v8993_v27 = vpack.c.bf16 %v4964_v22, %v4964_v22  ;;  %v4965_v28 = vmax.f32 %v3895_v23, 0.0  ;;  %10128 = vmatmul.mubr.msk.bf16.gmra.mrb[200].mxu1 %vm1960_vm3, %v10589_v16  ;;  %v10595_v20 = vld [vmem:[%s10997_s21 + $0x578] sm:$0xff]  }
 0x1d5   : > { %9643 = vmatprep.mubr.msk.bf16.mxu0 %vm10855_vm1, %v10854_v0  ;;  %10131 = vmatprep.mubr.msk.bf16.mxu1 %vm10855_vm1, %v10854_v0 }
 0x1d6   : > { %7151 = vst.msk [vmem:[%s11252_s23 + $0xb8] sm:$0xf] %vm7104_vm4, %v8749_v25  ;;  %v8750_v29 = vpack.c.bf16 %v4721_v26, %v4721_v26  ;;  %7395 = vst.msk [vmem:[%s11252_s23 + $0x488] sm:$0xf] %vm7104_vm4, %v8993_v27  ;;  %v8994_v30 = vpack.c.bf16 %v4965_v28, %v4965_v28 }
 0x1d7   : > { %v2923_v31 = vpop.f32.mrb[96].mxu0  ;;  %v3899_v32 = vpop.f32.mrb[96].mxu1 }
 0x1d8   : > { %7152 = vst.msk [vmem:[%s11252_s23 + $0xbc] sm:$0xf] %vm7104_vm4, %v8750_v29  ;;  %7396 = vst.msk [vmem:[%s11252_s23 + $0x48c] sm:$0xf] %vm7104_vm4, %v8994_v30  ;;  %v2924_v33 = vadd.f32 %v11585_v2, %v2923_v31  ;;  %v9537_v34 = vpop.f32.mrb[97].mxu0  ;;  %v3900_v36 = vadd.f32 %v11585_v2, %v3899_v32  ;;  %v10025_v37 = vpop.f32.mrb[97].mxu1 }
 0x1d9   : > { %v2926_v39 = vpop.f32.mrb[98].mxu0  ;;  %v3902_v40 = vpop.f32.mrb[98].mxu1 }
 0x1da   : > { %v4722_v41 = vmax.f32 %v2924_v33, 0.0  ;;  %v2927_v42 = vadd.f32 %v11585_v2, %v2926_v39  ;;  %v9538_v43 = vpop.f32.mrb[99].mxu0  ;;  %v4966_v44 = vmax.f32 %v3900_v36, 0.0  ;;  %v3903_v45 = vadd.f32 %v11585_v2, %v3902_v40  ;;  %v10026_v46 = vpop.f32.mrb[99].mxu1  ;;  %v10596_v39 = vld [vmem:[%s10997_s21 + $0x1b0] sm:$0xff]  }
 0x1dc   : > { %v8751_v47 = vpack.c.bf16 %v4722_v41, %v4722_v41  ;;  %v4723_v48 = vmax.f32 %v2927_v42, 0.0  ;;  %9644 = vmatmul.mubr.msk.bf16.gmra.mrb[204].mxu0 %vm1960_vm3, %v10590_v35  ;;  %v8995_v49 = vpack.c.bf16 %v4966_v44, %v4966_v44  ;;  %v4967_v50 = vmax.f32 %v3903_v45, 0.0  ;;  %10132 = vmatmul.mubr.msk.bf16.gmra.mrb[204].mxu1 %vm1960_vm3, %v10591_v38  ;;  %v10597_v42 = vld [vmem:[%s10997_s21 + $0x580] sm:$0xff]  }
 0x1dd   : > { %9647 = vmatprep.mubr.msk.bf16.mxu0 %vm10855_vm1, %v10854_v0  ;;  %10135 = vmatprep.mubr.msk.bf16.mxu1 %vm10855_vm1, %v10854_v0 }
 0x1de   : > { %7153 = vst.msk [vmem:[%s11252_s23 + $0xc0] sm:$0xf] %vm7104_vm4, %v8751_v47  ;;  %v8752_v51 = vpack.c.bf16 %v4723_v48, %v4723_v48  ;;  %7397 = vst.msk [vmem:[%s11252_s23 + $0x490] sm:$0xf] %vm7104_vm4, %v8995_v49  ;;  %v8996_v52 = vpack.c.bf16 %v4967_v50, %v4967_v50 }
 0x1df   : > { %v2931_v53 = vpop.f32.mrb[100].mxu0  ;;  %v3907_v54 = vpop.f32.mrb[100].mxu1 }
 0x1e0   : > { %7154 = vst.msk [vmem:[%s11252_s23 + $0xc4] sm:$0xf] %vm7104_vm4, %v8752_v51  ;;  %7398 = vst.msk [vmem:[%s11252_s23 + $0x494] sm:$0xf] %vm7104_vm4, %v8996_v52  ;;  %v2932_v55 = vadd.f32 %v11585_v2, %v2931_v53  ;;  %v9541_v56 = vpop.f32.mrb[101].mxu0  ;;  %v3908_v58 = vadd.f32 %v11585_v2, %v3907_v54  ;;  %v10029_v59 = vpop.f32.mrb[101].mxu1 }
 0x1e1   : > { %v2934_v61 = vpop.f32.mrb[102].mxu0  ;;  %v3910_v62 = vpop.f32.mrb[102].mxu1 }
 0x1e2   : > { %v4724_v63 = vmax.f32 %v2932_v55, 0.0  ;;  %v2935_v1 = vadd.f32 %v11585_v2, %v2934_v61  ;;  %v9542_v3 = vpop.f32.mrb[103].mxu0  ;;  %v4968_v4 = vmax.f32 %v3908_v58, 0.0  ;;  %v3911_v5 = vadd.f32 %v11585_v2, %v3910_v62  ;;  %v10030_v6 = vpop.f32.mrb[103].mxu1  ;;  %v10598_v61 = vld [vmem:[%s10997_s21 + $0x1b8] sm:$0xff]  }
 0x1e4   : > { %v8753_v7 = vpack.c.bf16 %v4724_v63, %v4724_v63  ;;  %v4725_v8 = vmax.f32 %v2935_v1, 0.0  ;;  %9648 = vmatmul.mubr.msk.bf16.gmra.mrb[208].mxu0 %vm1960_vm3, %v10592_v57  ;;  %v8997_v9 = vpack.c.bf16 %v4968_v4, %v4968_v4  ;;  %v4969_v10 = vmax.f32 %v3911_v5, 0.0  ;;  %10136 = vmatmul.mubr.msk.bf16.gmra.mrb[208].mxu1 %vm1960_vm3, %v10593_v60  ;;  %v10599_v1 = vld [vmem:[%s10997_s21 + $0x588] sm:$0xff]  }
 0x1e5   : > { %9651 = vmatprep.mubr.msk.bf16.mxu0 %vm10855_vm1, %v10854_v0  ;;  %10139 = vmatprep.mubr.msk.bf16.mxu1 %vm10855_vm1, %v10854_v0 }
 0x1e6   : > { %7155 = vst.msk [vmem:[%s11252_s23 + $0xc8] sm:$0xf] %vm7104_vm4, %v8753_v7  ;;  %v8754_v11 = vpack.c.bf16 %v4725_v8, %v4725_v8  ;;  %7399 = vst.msk [vmem:[%s11252_s23 + $0x498] sm:$0xf] %vm7104_vm4, %v8997_v9  ;;  %v8998_v12 = vpack.c.bf16 %v4969_v10, %v4969_v10 }
 0x1e7   : > { %v2939_v13 = vpop.f32.mrb[104].mxu0  ;;  %v3915_v14 = vpop.f32.mrb[104].mxu1 }
 0x1e8   : > { %7156 = vst.msk [vmem:[%s11252_s23 + $0xcc] sm:$0xf] %vm7104_vm4, %v8754_v11  ;;  %7400 = vst.msk [vmem:[%s11252_s23 + $0x49c] sm:$0xf] %vm7104_vm4, %v8998_v12  ;;  %v2940_v15 = vadd.f32 %v11585_v2, %v2939_v13  ;;  %v9545_v16 = vpop.f32.mrb[105].mxu0  ;;  %v3916_v18 = vadd.f32 %v11585_v2, %v3915_v14  ;;  %v10033_v19 = vpop.f32.mrb[105].mxu1 }
 0x1e9   : > { %v2942_v21 = vpop.f32.mrb[106].mxu0  ;;  %v3918_v22 = vpop.f32.mrb[106].mxu1 }
 0x1ea   : > { %v4726_v23 = vmax.f32 %v2940_v15, 0.0  ;;  %v2943_v24 = vadd.f32 %v11585_v2, %v2942_v21  ;;  %v9546_v25 = vpop.f32.mrb[107].mxu0  ;;  %v4970_v26 = vmax.f32 %v3916_v18, 0.0  ;;  %v3919_v27 = vadd.f32 %v11585_v2, %v3918_v22  ;;  %v10034_v28 = vpop.f32.mrb[107].mxu1  ;;  %v10600_v21 = vld [vmem:[%s10997_s21 + $0x1c0] sm:$0xff]  }
 0x1ec   : > { %v8755_v29 = vpack.c.bf16 %v4726_v23, %v4726_v23  ;;  %v4727_v30 = vmax.f32 %v2943_v24, 0.0  ;;  %9652 = vmatmul.mubr.msk.bf16.gmra.mrb[212].mxu0 %vm1960_vm3, %v10594_v17  ;;  %v8999_v31 = vpack.c.bf16 %v4970_v26, %v4970_v26  ;;  %v4971_v32 = vmax.f32 %v3919_v27, 0.0  ;;  %10140 = vmatmul.mubr.msk.bf16.gmra.mrb[212].mxu1 %vm1960_vm3, %v10595_v20  ;;  %v10601_v24 = vld [vmem:[%s10997_s21 + $0x590] sm:$0xff]  }
 0x1ed   : > { %9655 = vmatprep.mubr.msk.bf16.mxu0 %vm10855_vm1, %v10854_v0  ;;  %10143 = vmatprep.mubr.msk.bf16.mxu1 %vm10855_vm1, %v10854_v0 }
 0x1ee   : > { %7157 = vst.msk [vmem:[%s11252_s23 + $0xd0] sm:$0xf] %vm7104_vm4, %v8755_v29  ;;  %v8756_v33 = vpack.c.bf16 %v4727_v30, %v4727_v30  ;;  %7401 = vst.msk [vmem:[%s11252_s23 + $0x4a0] sm:$0xf] %vm7104_vm4, %v8999_v31  ;;  %v9000_v34 = vpack.c.bf16 %v4971_v32, %v4971_v32 }
 0x1ef   : > { %v2947_v35 = vpop.f32.mrb[108].mxu0  ;;  %v3923_v36 = vpop.f32.mrb[108].mxu1 }
 0x1f0   : > { %7158 = vst.msk [vmem:[%s11252_s23 + $0xd4] sm:$0xf] %vm7104_vm4, %v8756_v33  ;;  %7402 = vst.msk [vmem:[%s11252_s23 + $0x4a4] sm:$0xf] %vm7104_vm4, %v9000_v34  ;;  %v2948_v37 = vadd.f32 %v11585_v2, %v2947_v35  ;;  %v9549_v38 = vpop.f32.mrb[109].mxu0  ;;  %v3924_v40 = vadd.f32 %v11585_v2, %v3923_v36  ;;  %v10037_v41 = vpop.f32.mrb[109].mxu1 }
 0x1f1   : > { %v2950_v43 = vpop.f32.mrb[110].mxu0  ;;  %v3926_v44 = vpop.f32.mrb[110].mxu1 }
 0x1f2   : > { %v4728_v45 = vmax.f32 %v2948_v37, 0.0  ;;  %v2951_v46 = vadd.f32 %v11585_v2, %v2950_v43  ;;  %v9550_v47 = vpop.f32.mrb[111].mxu0  ;;  %v4972_v48 = vmax.f32 %v3924_v40, 0.0  ;;  %v3927_v49 = vadd.f32 %v11585_v2, %v3926_v44  ;;  %v10038_v50 = vpop.f32.mrb[111].mxu1  ;;  %v10602_v43 = vld [vmem:[%s10997_s21 + $0x1c8] sm:$0xff]  }
 0x1f4   : > { %v8757_v51 = vpack.c.bf16 %v4728_v45, %v4728_v45  ;;  %v4729_v52 = vmax.f32 %v2951_v46, 0.0  ;;  %9656 = vmatmul.mubr.msk.bf16.gmra.mrb[216].mxu0 %vm1960_vm3, %v10596_v39  ;;  %v9001_v53 = vpack.c.bf16 %v4972_v48, %v4972_v48  ;;  %v4973_v54 = vmax.f32 %v3927_v49, 0.0  ;;  %10144 = vmatmul.mubr.msk.bf16.gmra.mrb[216].mxu1 %vm1960_vm3, %v10597_v42  ;;  %v10603_v46 = vld [vmem:[%s10997_s21 + $0x598] sm:$0xff]  }
 0x1f5   : > { %9659 = vmatprep.mubr.msk.bf16.mxu0 %vm10855_vm1, %v10854_v0  ;;  %10147 = vmatprep.mubr.msk.bf16.mxu1 %vm10855_vm1, %v10854_v0 }
 0x1f6   : > { %7159 = vst.msk [vmem:[%s11252_s23 + $0xd8] sm:$0xf] %vm7104_vm4, %v8757_v51  ;;  %v8758_v55 = vpack.c.bf16 %v4729_v52, %v4729_v52  ;;  %7403 = vst.msk [vmem:[%s11252_s23 + $0x4a8] sm:$0xf] %vm7104_vm4, %v9001_v53  ;;  %v9002_v56 = vpack.c.bf16 %v4973_v54, %v4973_v54 }
 0x1f7   : > { %v2955_v57 = vpop.f32.mrb[112].mxu0  ;;  %v3931_v58 = vpop.f32.mrb[112].mxu1 }
 0x1f8   : > { %7160 = vst.msk [vmem:[%s11252_s23 + $0xdc] sm:$0xf] %vm7104_vm4, %v8758_v55  ;;  %7404 = vst.msk [vmem:[%s11252_s23 + $0x4ac] sm:$0xf] %vm7104_vm4, %v9002_v56  ;;  %v2956_v59 = vadd.f32 %v11585_v2, %v2955_v57  ;;  %v9553_v60 = vpop.f32.mrb[113].mxu0  ;;  %v3932_v62 = vadd.f32 %v11585_v2, %v3931_v58  ;;  %v10041_v63 = vpop.f32.mrb[113].mxu1 }
 0x1f9   : > { %v2958_v3 = vpop.f32.mrb[114].mxu0  ;;  %v3934_v4 = vpop.f32.mrb[114].mxu1 }
 0x1fa   : > { %v4730_v5 = vmax.f32 %v2956_v59, 0.0  ;;  %v2959_v6 = vadd.f32 %v11585_v2, %v2958_v3  ;;  %v9554_v7 = vpop.f32.mrb[115].mxu0  ;;  %v4974_v8 = vmax.f32 %v3932_v62, 0.0  ;;  %v3935_v9 = vadd.f32 %v11585_v2, %v3934_v4  ;;  %v10042_v10 = vpop.f32.mrb[115].mxu1  ;;  %v10604_v3 = vld [vmem:[%s10997_s21 + $0x1d0] sm:$0xff]  }
 0x1fc   : > { %v8759_v11 = vpack.c.bf16 %v4730_v5, %v4730_v5  ;;  %v4731_v12 = vmax.f32 %v2959_v6, 0.0  ;;  %9660 = vmatmul.mubr.msk.bf16.gmra.mrb[220].mxu0 %vm1960_vm3, %v10598_v61  ;;  %v9003_v13 = vpack.c.bf16 %v4974_v8, %v4974_v8  ;;  %v4975_v14 = vmax.f32 %v3935_v9, 0.0  ;;  %10148 = vmatmul.mubr.msk.bf16.gmra.mrb[220].mxu1 %vm1960_vm3, %v10599_v1  ;;  %v10605_v6 = vld [vmem:[%s10997_s21 + $0x5a0] sm:$0xff]  }
 0x1fd   : > { %9663 = vmatprep.mubr.msk.bf16.mxu0 %vm10855_vm1, %v10854_v0  ;;  %10151 = vmatprep.mubr.msk.bf16.mxu1 %vm10855_vm1, %v10854_v0 }
 0x1fe   : > { %7161 = vst.msk [vmem:[%s11252_s23 + $0xe0] sm:$0xf] %vm7104_vm4, %v8759_v11  ;;  %v8760_v15 = vpack.c.bf16 %v4731_v12, %v4731_v12  ;;  %7405 = vst.msk [vmem:[%s11252_s23 + $0x4b0] sm:$0xf] %vm7104_vm4, %v9003_v13  ;;  %v9004_v16 = vpack.c.bf16 %v4975_v14, %v4975_v14 }
 0x1ff   : > { %v2963_v17 = vpop.f32.mrb[116].mxu0  ;;  %v3939_v18 = vpop.f32.mrb[116].mxu1 }
 0x200   : > { %7162 = vst.msk [vmem:[%s11252_s23 + $0xe4] sm:$0xf] %vm7104_vm4, %v8760_v15  ;;  %7406 = vst.msk [vmem:[%s11252_s23 + $0x4b4] sm:$0xf] %vm7104_vm4, %v9004_v16  ;;  %v2964_v19 = vadd.f32 %v11585_v2, %v2963_v17  ;;  %v9557_v20 = vpop.f32.mrb[117].mxu0  ;;  %v3940_v22 = vadd.f32 %v11585_v2, %v3939_v18  ;;  %v10045_v23 = vpop.f32.mrb[117].mxu1 }
 0x201   : > { %v2966_v25 = vpop.f32.mrb[118].mxu0  ;;  %v3942_v26 = vpop.f32.mrb[118].mxu1 }
 0x202   : > { %v4732_v27 = vmax.f32 %v2964_v19, 0.0  ;;  %v2967_v28 = vadd.f32 %v11585_v2, %v2966_v25  ;;  %v9558_v29 = vpop.f32.mrb[119].mxu0  ;;  %v4976_v30 = vmax.f32 %v3940_v22, 0.0  ;;  %v3943_v31 = vadd.f32 %v11585_v2, %v3942_v26  ;;  %v10046_v32 = vpop.f32.mrb[119].mxu1  ;;  %v10606_v25 = vld [vmem:[%s10997_s21 + $0x1d8] sm:$0xff]  }
 0x204   : > { %v8761_v33 = vpack.c.bf16 %v4732_v27, %v4732_v27  ;;  %v4733_v34 = vmax.f32 %v2967_v28, 0.0  ;;  %9664 = vmatmul.mubr.msk.bf16.gmra.mrb[224].mxu0 %vm1960_vm3, %v10600_v21  ;;  %v9005_v35 = vpack.c.bf16 %v4976_v30, %v4976_v30  ;;  %v4977_v36 = vmax.f32 %v3943_v31, 0.0  ;;  %10152 = vmatmul.mubr.msk.bf16.gmra.mrb[224].mxu1 %vm1960_vm3, %v10601_v24  ;;  %v10607_v28 = vld [vmem:[%s10997_s21 + $0x5a8] sm:$0xff]  }
 0x205   : > { %9667 = vmatprep.mubr.msk.bf16.mxu0 %vm10855_vm1, %v10854_v0  ;;  %10155 = vmatprep.mubr.msk.bf16.mxu1 %vm10855_vm1, %v10854_v0 }
 0x206   : > { %7163 = vst.msk [vmem:[%s11252_s23 + $0xe8] sm:$0xf] %vm7104_vm4, %v8761_v33  ;;  %v8762_v37 = vpack.c.bf16 %v4733_v34, %v4733_v34  ;;  %7407 = vst.msk [vmem:[%s11252_s23 + $0x4b8] sm:$0xf] %vm7104_vm4, %v9005_v35  ;;  %v9006_v38 = vpack.c.bf16 %v4977_v36, %v4977_v36 }
 0x207   : > { %v2971_v39 = vpop.f32.mrb[120].mxu0  ;;  %v3947_v40 = vpop.f32.mrb[120].mxu1 }
 0x208   : > { %7164 = vst.msk [vmem:[%s11252_s23 + $0xec] sm:$0xf] %vm7104_vm4, %v8762_v37  ;;  %7408 = vst.msk [vmem:[%s11252_s23 + $0x4bc] sm:$0xf] %vm7104_vm4, %v9006_v38  ;;  %v2972_v41 = vadd.f32 %v11585_v2, %v2971_v39  ;;  %v9561_v42 = vpop.f32.mrb[121].mxu0  ;;  %v3948_v44 = vadd.f32 %v11585_v2, %v3947_v40  ;;  %v10049_v45 = vpop.f32.mrb[121].mxu1 }
 0x209   : > { %v2974_v47 = vpop.f32.mrb[122].mxu0  ;;  %v3950_v48 = vpop.f32.mrb[122].mxu1 }
 0x20a   : > { %v4734_v49 = vmax.f32 %v2972_v41, 0.0  ;;  %v2975_v50 = vadd.f32 %v11585_v2, %v2974_v47  ;;  %v9562_v51 = vpop.f32.mrb[123].mxu0  ;;  %v4978_v52 = vmax.f32 %v3948_v44, 0.0  ;;  %v3951_v53 = vadd.f32 %v11585_v2, %v3950_v48  ;;  %v10050_v54 = vpop.f32.mrb[123].mxu1  ;;  %v10608_v47 = vld [vmem:[%s10997_s21 + $0x1e0] sm:$0xff]  }
 0x20c   : > { %v8763_v55 = vpack.c.bf16 %v4734_v49, %v4734_v49  ;;  %v4735_v56 = vmax.f32 %v2975_v50, 0.0  ;;  %9668 = vmatmul.mubr.msk.bf16.gmra.mrb[228].mxu0 %vm1960_vm3, %v10602_v43  ;;  %v9007_v57 = vpack.c.bf16 %v4978_v52, %v4978_v52  ;;  %v4979_v58 = vmax.f32 %v3951_v53, 0.0  ;;  %10156 = vmatmul.mubr.msk.bf16.gmra.mrb[228].mxu1 %vm1960_vm3, %v10603_v46  ;;  %v10609_v50 = vld [vmem:[%s10997_s21 + $0x5b0] sm:$0xff]  }
 0x20d   : > { %9671 = vmatprep.mubr.msk.bf16.mxu0 %vm10855_vm1, %v10854_v0  ;;  %10159 = vmatprep.mubr.msk.bf16.mxu1 %vm10855_vm1, %v10854_v0 }
 0x20e   : > { %7165 = vst.msk [vmem:[%s11252_s23 + $0xf0] sm:$0xf] %vm7104_vm4, %v8763_v55  ;;  %v8764_v59 = vpack.c.bf16 %v4735_v56, %v4735_v56  ;;  %7409 = vst.msk [vmem:[%s11252_s23 + $0x4c0] sm:$0xf] %vm7104_vm4, %v9007_v57  ;;  %v9008_v60 = vpack.c.bf16 %v4979_v58, %v4979_v58 }
 0x20f   : > { %v2979_v61 = vpop.f32.mrb[124].mxu0  ;;  %v3955_v62 = vpop.f32.mrb[124].mxu1 }
 0x210   : > { %7166 = vst.msk [vmem:[%s11252_s23 + $0xf4] sm:$0xf] %vm7104_vm4, %v8764_v59  ;;  %7410 = vst.msk [vmem:[%s11252_s23 + $0x4c4] sm:$0xf] %vm7104_vm4, %v9008_v60  ;;  %v2980_v63 = vadd.f32 %v11585_v2, %v2979_v61  ;;  %v9565_v1 = vpop.f32.mrb[125].mxu0  ;;  %v3956_v4 = vadd.f32 %v11585_v2, %v3955_v62  ;;  %v10053_v5 = vpop.f32.mrb[125].mxu1 }
 0x211   : > { %v2982_v7 = vpop.f32.mrb[126].mxu0  ;;  %v3958_v8 = vpop.f32.mrb[126].mxu1 }
 0x212   : > { %v4736_v9 = vmax.f32 %v2980_v63, 0.0  ;;  %v2983_v10 = vadd.f32 %v11585_v2, %v2982_v7  ;;  %v9566_v11 = vpop.f32.mrb[127].mxu0  ;;  %v4980_v12 = vmax.f32 %v3956_v4, 0.0  ;;  %v3959_v13 = vadd.f32 %v11585_v2, %v3958_v8  ;;  %v10054_v14 = vpop.f32.mrb[127].mxu1  ;;  %v10610_v7 = vld [vmem:[%s10997_s21 + $0x1e8] sm:$0xff]  }
 0x213   : > { %v11932_v8 = vld [vmem:[%s13539_s2] ss:$0 sm:$0xff]  ;;  %v10611_v11 = vld [vmem:[%s10997_s21 + $0x5b8] sm:$0xff]  }
 0x214   : > { %v8765_v15 = vpack.c.bf16 %v4736_v9, %v4736_v9  ;;  %v4737_v16 = vmax.f32 %v2983_v10, 0.0  ;;  %9672 = vmatmul.mubr.msk.bf16.gmra.mrb[232].mxu0 %vm1960_vm3, %v10604_v3  ;;  %v9009_v17 = vpack.c.bf16 %v4980_v12, %v4980_v12  ;;  %v4981_v18 = vmax.f32 %v3959_v13, 0.0  ;;  %10160 = vmatmul.mubr.msk.bf16.gmra.mrb[232].mxu1 %vm1960_vm3, %v10605_v6 }
 0x215   : > { %9675 = vmatprep.mubr.msk.bf16.mxu0 %vm10855_vm1, %v10854_v0  ;;  %10163 = vmatprep.mubr.msk.bf16.mxu1 %vm10855_vm1, %v10854_v0 }
 0x216   : > { %7167 = vst.msk [vmem:[%s11252_s23 + $0xf8] sm:$0xf] %vm7104_vm4, %v8765_v15  ;;  %v8766_v19 = vpack.c.bf16 %v4737_v16, %v4737_v16  ;;  %7411 = vst.msk [vmem:[%s11252_s23 + $0x4c8] sm:$0xf] %vm7104_vm4, %v9009_v17  ;;  %v9010_v20 = vpack.c.bf16 %v4981_v18, %v4981_v18 }
 0x217   : > { %v2987_v21 = vpop.f32.mrb[128].mxu0  ;;  %v3963_v22 = vpop.f32.mrb[128].mxu1 }
 0x218   : > { %7168 = vst.msk [vmem:[%s11252_s23 + $0xfc] sm:$0xf] %vm7104_vm4, %v8766_v19  ;;  %7412 = vst.msk [vmem:[%s11252_s23 + $0x4cc] sm:$0xf] %vm7104_vm4, %v9010_v20  ;;  %v2988_v23 = vadd.f32 %v11585_v2, %v2987_v21  ;;  %v9569_v24 = vpop.f32.mrb[129].mxu0  ;;  %v3964_v26 = vadd.f32 %v11585_v2, %v3963_v22  ;;  %v10057_v27 = vpop.f32.mrb[129].mxu1 }
 0x219   : > { %v2990_v29 = vpop.f32.mrb[130].mxu0  ;;  %v3966_v30 = vpop.f32.mrb[130].mxu1 }
 0x21a   : > { %v4738_v31 = vmax.f32 %v2988_v23, 0.0  ;;  %v2991_v32 = vadd.f32 %v11585_v2, %v2990_v29  ;;  %v9570_v33 = vpop.f32.mrb[131].mxu0  ;;  %v4982_v34 = vmax.f32 %v3964_v26, 0.0  ;;  %v3967_v35 = vadd.f32 %v11585_v2, %v3966_v30  ;;  %v10058_v36 = vpop.f32.mrb[131].mxu1  ;;  %v10612_v29 = vld [vmem:[%s10997_s21 + $0x1f0] sm:$0xff]  }
 0x21c   : > { %v8767_v37 = vpack.c.bf16 %v4738_v31, %v4738_v31  ;;  %v4739_v38 = vmax.f32 %v2991_v32, 0.0  ;;  %9676 = vmatmul.mubr.msk.bf16.gmra.mrb[236].mxu0 %vm1960_vm3, %v10606_v25  ;;  %v9011_v39 = vpack.c.bf16 %v4982_v34, %v4982_v34  ;;  %v4983_v40 = vmax.f32 %v3967_v35, 0.0  ;;  %10164 = vmatmul.mubr.msk.bf16.gmra.mrb[236].mxu1 %vm1960_vm3, %v10607_v28  ;;  %v10613_v32 = vld [vmem:[%s10997_s21 + $0x5c0] sm:$0xff]  }
 0x21d   : > { %9679 = vmatprep.mubr.msk.bf16.mxu0 %vm10855_vm1, %v10854_v0  ;;  %10167 = vmatprep.mubr.msk.bf16.mxu1 %vm10855_vm1, %v10854_v0 }
 0x21e   : > { %7169 = vst.msk [vmem:[%s11252_s23 + $0x100] sm:$0xf] %vm7104_vm4, %v8767_v37  ;;  %v8768_v41 = vpack.c.bf16 %v4739_v38, %v4739_v38  ;;  %7413 = vst.msk [vmem:[%s11252_s23 + $0x4d0] sm:$0xf] %vm7104_vm4, %v9011_v39  ;;  %v9012_v42 = vpack.c.bf16 %v4983_v40, %v4983_v40 }
 0x21f   : > { %v2995_v43 = vpop.f32.mrb[132].mxu0  ;;  %v3971_v44 = vpop.f32.mrb[132].mxu1 }
 0x220   : > { %7170 = vst.msk [vmem:[%s11252_s23 + $0x104] sm:$0xf] %vm7104_vm4, %v8768_v41  ;;  %7414 = vst.msk [vmem:[%s11252_s23 + $0x4d4] sm:$0xf] %vm7104_vm4, %v9012_v42  ;;  %v2996_v45 = vadd.f32 %v11585_v2, %v2995_v43  ;;  %v9573_v46 = vpop.f32.mrb[133].mxu0  ;;  %v3972_v48 = vadd.f32 %v11585_v2, %v3971_v44  ;;  %v10061_v49 = vpop.f32.mrb[133].mxu1 }
 0x221   : > { %v2998_v51 = vpop.f32.mrb[134].mxu0  ;;  %v3974_v52 = vpop.f32.mrb[134].mxu1 }
 0x222   : > { %v4740_v53 = vmax.f32 %v2996_v45, 0.0  ;;  %v2999_v54 = vadd.f32 %v11585_v2, %v2998_v51  ;;  %v9574_v55 = vpop.f32.mrb[135].mxu0  ;;  %v4984_v56 = vmax.f32 %v3972_v48, 0.0  ;;  %v3975_v57 = vadd.f32 %v11585_v2, %v3974_v52  ;;  %v10062_v58 = vpop.f32.mrb[135].mxu1  ;;  %v10614_v51 = vld [vmem:[%s10997_s21 + $0x1f8] sm:$0xff]  }
 0x224   : > { %v8769_v59 = vpack.c.bf16 %v4740_v53, %v4740_v53  ;;  %v4741_v60 = vmax.f32 %v2999_v54, 0.0  ;;  %9680 = vmatmul.mubr.msk.bf16.gmra.mrb[240].mxu0 %vm1960_vm3, %v10608_v47  ;;  %v9013_v61 = vpack.c.bf16 %v4984_v56, %v4984_v56  ;;  %v4985_v62 = vmax.f32 %v3975_v57, 0.0  ;;  %10168 = vmatmul.mubr.msk.bf16.gmra.mrb[240].mxu1 %vm1960_vm3, %v10609_v50  ;;  %v10615_v54 = vld [vmem:[%s10997_s21 + $0x5c8] sm:$0xff]  }
 0x225   : > { %9683 = vmatprep.mubr.msk.bf16.mxu0 %vm10855_vm1, %v10854_v0  ;;  %10171 = vmatprep.mubr.msk.bf16.mxu1 %vm10855_vm1, %v10854_v0 }
 0x226   : > { %7171 = vst.msk [vmem:[%s11252_s23 + $0x108] sm:$0xf] %vm7104_vm4, %v8769_v59  ;;  %v8770_v63 = vpack.c.bf16 %v4741_v60, %v4741_v60  ;;  %7415 = vst.msk [vmem:[%s11252_s23 + $0x4d8] sm:$0xf] %vm7104_vm4, %v9013_v61  ;;  %v9014_v1 = vpack.c.bf16 %v4985_v62, %v4985_v62 }
 0x227   : > { %v3003_v3 = vpop.f32.mrb[136].mxu0  ;;  %v3979_v4 = vpop.f32.mrb[136].mxu1 }
 0x228   : > { %7172 = vst.msk [vmem:[%s11252_s23 + $0x10c] sm:$0xf] %vm7104_vm4, %v8770_v63  ;;  %7416 = vst.msk [vmem:[%s11252_s23 + $0x4dc] sm:$0xf] %vm7104_vm4, %v9014_v1  ;;  %v3004_v5 = vadd.f32 %v11585_v2, %v3003_v3  ;;  %v9577_v6 = vpop.f32.mrb[137].mxu0  ;;  %v3980_v9 = vadd.f32 %v11932_v8, %v3979_v4  ;;  %v10065_v10 = vpop.f32.mrb[137].mxu1 }
 0x229   : > { %v3006_v12 = vpop.f32.mrb[138].mxu0  ;;  %v3982_v13 = vpop.f32.mrb[138].mxu1 }
 0x22a   : > { %v4742_v14 = vmax.f32 %v3004_v5, 0.0  ;;  %v3007_v15 = vadd.f32 %v11932_v8, %v3006_v12  ;;  %v9578_v16 = vpop.f32.mrb[139].mxu0  ;;  %v4986_v2 = vmax.f32 %v3980_v9, 0.0  ;;  %v3983_v17 = vadd.f32 %v11932_v8, %v3982_v13  ;;  %v10066_v18 = vpop.f32.mrb[139].mxu1  ;;  %v10616_v12 = vld [vmem:[%s10997_s21 + $0x200] sm:$0xff]  }
 0x22c   : > { %v8771_v19 = vpack.c.bf16 %v4742_v14, %v4742_v14  ;;  %v4743_v20 = vmax.f32 %v3007_v15, 0.0  ;;  %9684 = vmatmul.mubr.msk.bf16.gmra.mrb[244].mxu0 %vm1960_vm3, %v10610_v7  ;;  %v9015_v21 = vpack.c.bf16 %v4986_v2, %v4986_v2  ;;  %v4987_v22 = vmax.f32 %v3983_v17, 0.0  ;;  %10172 = vmatmul.mubr.msk.bf16.gmra.mrb[244].mxu1 %vm1960_vm3, %v10611_v11  ;;  %v10617_v15 = vld [vmem:[%s10997_s21 + $0x5d0] sm:$0xff]  }
 0x22d   : > { %9687 = vmatprep.mubr.msk.bf16.mxu0 %vm10855_vm1, %v10854_v0  ;;  %10175 = vmatprep.mubr.msk.bf16.mxu1 %vm10855_vm1, %v10854_v0 }
 0x22e   : > { %7173 = vst.msk [vmem:[%s11252_s23 + $0x110] sm:$0xf] %vm7104_vm4, %v8771_v19  ;;  %v8772_v23 = vpack.c.bf16 %v4743_v20, %v4743_v20  ;;  %7417 = vst.msk [vmem:[%s11252_s23 + $0x4e0] sm:$0xf] %vm7104_vm4, %v9015_v21  ;;  %v9016_v24 = vpack.c.bf16 %v4987_v22, %v4987_v22 }
 0x22f   : > { %v3011_v25 = vpop.f32.mrb[140].mxu0  ;;  %v3987_v26 = vpop.f32.mrb[140].mxu1 }
 0x230   : > { %7174 = vst.msk [vmem:[%s11252_s23 + $0x114] sm:$0xf] %vm7104_vm4, %v8772_v23  ;;  %7418 = vst.msk [vmem:[%s11252_s23 + $0x4e4] sm:$0xf] %vm7104_vm4, %v9016_v24  ;;  %v3012_v27 = vadd.f32 %v11932_v8, %v3011_v25  ;;  %v9581_v28 = vpop.f32.mrb[141].mxu0  ;;  %v3988_v30 = vadd.f32 %v11932_v8, %v3987_v26  ;;  %v10069_v31 = vpop.f32.mrb[141].mxu1 }
 0x231   : > { %v3014_v33 = vpop.f32.mrb[142].mxu0  ;;  %v3990_v34 = vpop.f32.mrb[142].mxu1 }
 0x232   : > { %v4744_v35 = vmax.f32 %v3012_v27, 0.0  ;;  %v3015_v36 = vadd.f32 %v11932_v8, %v3014_v33  ;;  %v9582_v37 = vpop.f32.mrb[143].mxu0  ;;  %v4988_v38 = vmax.f32 %v3988_v30, 0.0  ;;  %v3991_v39 = vadd.f32 %v11932_v8, %v3990_v34  ;;  %v10070_v40 = vpop.f32.mrb[143].mxu1  ;;  %v10618_v33 = vld [vmem:[%s10997_s21 + $0x208] sm:$0xff]  }
 0x234   : > { %v8773_v41 = vpack.c.bf16 %v4744_v35, %v4744_v35  ;;  %v4745_v42 = vmax.f32 %v3015_v36, 0.0  ;;  %9688 = vmatmul.mubr.msk.bf16.gmra.mrb[248].mxu0 %vm1960_vm3, %v10612_v29  ;;  %v9017_v43 = vpack.c.bf16 %v4988_v38, %v4988_v38  ;;  %v4989_v44 = vmax.f32 %v3991_v39, 0.0  ;;  %10176 = vmatmul.mubr.msk.bf16.gmra.mrb[248].mxu1 %vm1960_vm3, %v10613_v32  ;;  %v10619_v36 = vld [vmem:[%s10997_s21 + $0x5d8] sm:$0xff]  }
 0x235   : > { %9691 = vmatprep.mubr.msk.bf16.mxu0 %vm10855_vm1, %v10854_v0  ;;  %10179 = vmatprep.mubr.msk.bf16.mxu1 %vm10855_vm1, %v10854_v0 }
 0x236   : > { %7175 = vst.msk [vmem:[%s11252_s23 + $0x118] sm:$0xf] %vm7104_vm4, %v8773_v41  ;;  %v8774_v45 = vpack.c.bf16 %v4745_v42, %v4745_v42  ;;  %7419 = vst.msk [vmem:[%s11252_s23 + $0x4e8] sm:$0xf] %vm7104_vm4, %v9017_v43  ;;  %v9018_v46 = vpack.c.bf16 %v4989_v44, %v4989_v44 }
 0x237   : > { %v3019_v47 = vpop.f32.mrb[144].mxu0  ;;  %v3995_v48 = vpop.f32.mrb[144].mxu1 }
 0x238   : > { %7176 = vst.msk [vmem:[%s11252_s23 + $0x11c] sm:$0xf] %vm7104_vm4, %v8774_v45  ;;  %7420 = vst.msk [vmem:[%s11252_s23 + $0x4ec] sm:$0xf] %vm7104_vm4, %v9018_v46  ;;  %v3020_v49 = vadd.f32 %v11932_v8, %v3019_v47  ;;  %v9585_v50 = vpop.f32.mrb[145].mxu0  ;;  %v3996_v52 = vadd.f32 %v11932_v8, %v3995_v48  ;;  %v10073_v53 = vpop.f32.mrb[145].mxu1 }
 0x239   : > { %v3022_v55 = vpop.f32.mrb[146].mxu0  ;;  %v3998_v56 = vpop.f32.mrb[146].mxu1 }
 0x23a   : > { %v4746_v57 = vmax.f32 %v3020_v49, 0.0  ;;  %v3023_v58 = vadd.f32 %v11932_v8, %v3022_v55  ;;  %v9586_v59 = vpop.f32.mrb[147].mxu0  ;;  %v4990_v60 = vmax.f32 %v3996_v52, 0.0  ;;  %v3999_v61 = vadd.f32 %v11932_v8, %v3998_v56  ;;  %v10074_v62 = vpop.f32.mrb[147].mxu1  ;;  %v10620_v55 = vld [vmem:[%s10997_s21 + $0x210] sm:$0xff]  }
 0x23c   : > { %v8775_v63 = vpack.c.bf16 %v4746_v57, %v4746_v57  ;;  %v4747_v1 = vmax.f32 %v3023_v58, 0.0  ;;  %9692 = vmatmul.mubr.msk.bf16.gmra.mrb[252].mxu0 %vm1960_vm3, %v10614_v51  ;;  %v9019_v3 = vpack.c.bf16 %v4990_v60, %v4990_v60  ;;  %v4991_v4 = vmax.f32 %v3999_v61, 0.0  ;;  %10180 = vmatmul.mubr.msk.bf16.gmra.mrb[252].mxu1 %vm1960_vm3, %v10615_v54  ;;  %v10621_v58 = vld [vmem:[%s10997_s21 + $0x5e0] sm:$0xff]  }
 0x23d   : > { %9695 = vmatprep.mubr.msk.bf16.mxu0 %vm10855_vm1, %v10854_v0  ;;  %10183 = vmatprep.mubr.msk.bf16.mxu1 %vm10855_vm1, %v10854_v0 }
 0x23e   : > { %7177 = vst.msk [vmem:[%s11252_s23 + $0x120] sm:$0xf] %vm7104_vm4, %v8775_v63  ;;  %v8776_v5 = vpack.c.bf16 %v4747_v1, %v4747_v1  ;;  %7421 = vst.msk [vmem:[%s11252_s23 + $0x4f0] sm:$0xf] %vm7104_vm4, %v9019_v3  ;;  %v9020_v6 = vpack.c.bf16 %v4991_v4, %v4991_v4 }
 0x23f   : > { %v3027_v7 = vpop.f32.mrb[148].mxu0  ;;  %v4003_v9 = vpop.f32.mrb[148].mxu1 }
 0x240   : > { %7178 = vst.msk [vmem:[%s11252_s23 + $0x124] sm:$0xf] %vm7104_vm4, %v8776_v5  ;;  %7422 = vst.msk [vmem:[%s11252_s23 + $0x4f4] sm:$0xf] %vm7104_vm4, %v9020_v6  ;;  %v3028_v10 = vadd.f32 %v11932_v8, %v3027_v7  ;;  %v9589_v11 = vpop.f32.mrb[149].mxu0  ;;  %v4004_v13 = vadd.f32 %v11932_v8, %v4003_v9  ;;  %v10077_v14 = vpop.f32.mrb[149].mxu1 }
 0x241   : > { %v3030_v16 = vpop.f32.mrb[150].mxu0  ;;  %v4006_v2 = vpop.f32.mrb[150].mxu1 }
 0x242   : > { %v4748_v17 = vmax.f32 %v3028_v10, 0.0  ;;  %v3031_v18 = vadd.f32 %v11932_v8, %v3030_v16  ;;  %v9590_v19 = vpop.f32.mrb[151].mxu0  ;;  %v4992_v20 = vmax.f32 %v4004_v13, 0.0  ;;  %v4007_v21 = vadd.f32 %v11932_v8, %v4006_v2  ;;  %v10078_v22 = vpop.f32.mrb[151].mxu1  ;;  %v10622_v16 = vld [vmem:[%s10997_s21 + $0x218] sm:$0xff]  }
 0x244   : > { %v8777_v23 = vpack.c.bf16 %v4748_v17, %v4748_v17  ;;  %v4749_v24 = vmax.f32 %v3031_v18, 0.0  ;;  %9696 = vmatmul.mubr.msk.bf16.gmra.mrb[0].mxu0 %vm1960_vm3, %v10616_v12  ;;  %v9021_v25 = vpack.c.bf16 %v4992_v20, %v4992_v20  ;;  %v4993_v26 = vmax.f32 %v4007_v21, 0.0  ;;  %10184 = vmatmul.mubr.msk.bf16.gmra.mrb[0].mxu1 %vm1960_vm3, %v10617_v15  ;;  %v10623_v18 = vld [vmem:[%s10997_s21 + $0x5e8] sm:$0xff]  }
 0x245   : > { %9699 = vmatprep.mubr.msk.bf16.mxu0 %vm10855_vm1, %v10854_v0  ;;  %10187 = vmatprep.mubr.msk.bf16.mxu1 %vm10855_vm1, %v10854_v0 }
 0x246   : > { %7179 = vst.msk [vmem:[%s11252_s23 + $0x128] sm:$0xf] %vm7104_vm4, %v8777_v23  ;;  %v8778_v27 = vpack.c.bf16 %v4749_v24, %v4749_v24  ;;  %7423 = vst.msk [vmem:[%s11252_s23 + $0x4f8] sm:$0xf] %vm7104_vm4, %v9021_v25  ;;  %v9022_v28 = vpack.c.bf16 %v4993_v26, %v4993_v26 }
 0x247   : > { %v3035_v29 = vpop.f32.mrb[152].mxu0  ;;  %v4011_v30 = vpop.f32.mrb[152].mxu1 }
 0x248   : > { %7180 = vst.msk [vmem:[%s11252_s23 + $0x12c] sm:$0xf] %vm7104_vm4, %v8778_v27  ;;  %7424 = vst.msk [vmem:[%s11252_s23 + $0x4fc] sm:$0xf] %vm7104_vm4, %v9022_v28  ;;  %v3036_v31 = vadd.f32 %v11932_v8, %v3035_v29  ;;  %v9593_v32 = vpop.f32.mrb[153].mxu0  ;;  %v4012_v34 = vadd.f32 %v11932_v8, %v4011_v30  ;;  %v10081_v35 = vpop.f32.mrb[153].mxu1 }
 0x249   : > { %v3038_v37 = vpop.f32.mrb[154].mxu0  ;;  %v4014_v38 = vpop.f32.mrb[154].mxu1 }
 0x24a   : > { %v4750_v39 = vmax.f32 %v3036_v31, 0.0  ;;  %v3039_v40 = vadd.f32 %v11932_v8, %v3038_v37  ;;  %v9594_v41 = vpop.f32.mrb[155].mxu0  ;;  %v4994_v42 = vmax.f32 %v4012_v34, 0.0  ;;  %v4015_v43 = vadd.f32 %v11932_v8, %v4014_v38  ;;  %v10082_v44 = vpop.f32.mrb[155].mxu1  ;;  %v10624_v37 = vld [vmem:[%s10997_s21 + $0x220] sm:$0xff]  }
 0x24c   : > { %v8779_v45 = vpack.c.bf16 %v4750_v39, %v4750_v39  ;;  %v4751_v46 = vmax.f32 %v3039_v40, 0.0  ;;  %9700 = vmatmul.mubr.msk.bf16.gmra.mrb[4].mxu0 %vm1960_vm3, %v10618_v33  ;;  %v9023_v47 = vpack.c.bf16 %v4994_v42, %v4994_v42  ;;  %v4995_v48 = vmax.f32 %v4015_v43, 0.0  ;;  %10188 = vmatmul.mubr.msk.bf16.gmra.mrb[4].mxu1 %vm1960_vm3, %v10619_v36  ;;  %v10625_v40 = vld [vmem:[%s10997_s21 + $0x5f0] sm:$0xff]  }
 0x24d   : > { %9703 = vmatprep.mubr.msk.bf16.mxu0 %vm10855_vm1, %v10854_v0  ;;  %10191 = vmatprep.mubr.msk.bf16.mxu1 %vm10855_vm1, %v10854_v0 }
 0x24e   : > { %7181 = vst.msk [vmem:[%s11252_s23 + $0x130] sm:$0xf] %vm7104_vm4, %v8779_v45  ;;  %v8780_v49 = vpack.c.bf16 %v4751_v46, %v4751_v46  ;;  %7425 = vst.msk [vmem:[%s11252_s23 + $0x500] sm:$0xf] %vm7104_vm4, %v9023_v47  ;;  %v9024_v50 = vpack.c.bf16 %v4995_v48, %v4995_v48 }
 0x24f   : > { %v3043_v51 = vpop.f32.mrb[156].mxu0  ;;  %v4019_v52 = vpop.f32.mrb[156].mxu1 }
 0x250   : > { %7182 = vst.msk [vmem:[%s11252_s23 + $0x134] sm:$0xf] %vm7104_vm4, %v8780_v49  ;;  %7426 = vst.msk [vmem:[%s11252_s23 + $0x504] sm:$0xf] %vm7104_vm4, %v9024_v50  ;;  %v3044_v53 = vadd.f32 %v11932_v8, %v3043_v51  ;;  %v9597_v54 = vpop.f32.mrb[157].mxu0  ;;  %v4020_v56 = vadd.f32 %v11932_v8, %v4019_v52  ;;  %v10085_v57 = vpop.f32.mrb[157].mxu1 }
 0x251   : > { %v3046_v59 = vpop.f32.mrb[158].mxu0  ;;  %v4022_v60 = vpop.f32.mrb[158].mxu1 }
 0x252   : > { %v4752_v61 = vmax.f32 %v3044_v53, 0.0  ;;  %v3047_v62 = vadd.f32 %v11932_v8, %v3046_v59  ;;  %v9598_v63 = vpop.f32.mrb[159].mxu0  ;;  %v4996_v1 = vmax.f32 %v4020_v56, 0.0  ;;  %v4023_v3 = vadd.f32 %v11932_v8, %v4022_v60  ;;  %v10086_v4 = vpop.f32.mrb[159].mxu1  ;;  %v10626_v59 = vld [vmem:[%s10997_s21 + $0x228] sm:$0xff]  }
 0x254   : > { %v8781_v5 = vpack.c.bf16 %v4752_v61, %v4752_v61  ;;  %v4753_v6 = vmax.f32 %v3047_v62, 0.0  ;;  %9704 = vmatmul.mubr.msk.bf16.gmra.mrb[8].mxu0 %vm1960_vm3, %v10620_v55  ;;  %v9025_v7 = vpack.c.bf16 %v4996_v1, %v4996_v1  ;;  %v4997_v9 = vmax.f32 %v4023_v3, 0.0  ;;  %10192 = vmatmul.mubr.msk.bf16.gmra.mrb[8].mxu1 %vm1960_vm3, %v10621_v58  ;;  %v10627_v62 = vld [vmem:[%s10997_s21 + $0x5f8] sm:$0xff]  }
 0x255   : > { %9707 = vmatprep.mubr.msk.bf16.mxu0 %vm10855_vm1, %v10854_v0  ;;  %10195 = vmatprep.mubr.msk.bf16.mxu1 %vm10855_vm1, %v10854_v0 }
 0x256   : > { %7183 = vst.msk [vmem:[%s11252_s23 + $0x138] sm:$0xf] %vm7104_vm4, %v8781_v5  ;;  %v8782_v10 = vpack.c.bf16 %v4753_v6, %v4753_v6  ;;  %7427 = vst.msk [vmem:[%s11252_s23 + $0x508] sm:$0xf] %vm7104_vm4, %v9025_v7  ;;  %v9026_v11 = vpack.c.bf16 %v4997_v9, %v4997_v9 }
 0x257   : > { %v3051_v12 = vpop.f32.mrb[160].mxu0  ;;  %v4027_v13 = vpop.f32.mrb[160].mxu1 }
 0x258   : > { %7184 = vst.msk [vmem:[%s11252_s23 + $0x13c] sm:$0xf] %vm7104_vm4, %v8782_v10  ;;  %7428 = vst.msk [vmem:[%s11252_s23 + $0x50c] sm:$0xf] %vm7104_vm4, %v9026_v11  ;;  %v3052_v14 = vadd.f32 %v11932_v8, %v3051_v12  ;;  %v9601_v15 = vpop.f32.mrb[161].mxu0  ;;  %v4028_v2 = vadd.f32 %v11932_v8, %v4027_v13  ;;  %v10089_v17 = vpop.f32.mrb[161].mxu1 }
 0x259   : > { %v3054_v19 = vpop.f32.mrb[162].mxu0  ;;  %v4030_v20 = vpop.f32.mrb[162].mxu1 }
 0x25a   : > { %v4754_v21 = vmax.f32 %v3052_v14, 0.0  ;;  %v3055_v22 = vadd.f32 %v11932_v8, %v3054_v19  ;;  %v9602_v23 = vpop.f32.mrb[163].mxu0  ;;  %v4998_v24 = vmax.f32 %v4028_v2, 0.0  ;;  %v4031_v25 = vadd.f32 %v11932_v8, %v4030_v20  ;;  %v10090_v26 = vpop.f32.mrb[163].mxu1  ;;  %v10628_v19 = vld [vmem:[%s10997_s21 + $0x230] sm:$0xff]  }
 0x25c   : > { %v8783_v27 = vpack.c.bf16 %v4754_v21, %v4754_v21  ;;  %v4755_v28 = vmax.f32 %v3055_v22, 0.0  ;;  %9708 = vmatmul.mubr.msk.bf16.gmra.mrb[12].mxu0 %vm1960_vm3, %v10622_v16  ;;  %v9027_v29 = vpack.c.bf16 %v4998_v24, %v4998_v24  ;;  %v4999_v30 = vmax.f32 %v4031_v25, 0.0  ;;  %10196 = vmatmul.mubr.msk.bf16.gmra.mrb[12].mxu1 %vm1960_vm3, %v10623_v18  ;;  %v10629_v22 = vld [vmem:[%s10997_s21 + $0x600] sm:$0xff]  }
 0x25d   : > { %9711 = vmatprep.mubr.msk.bf16.mxu0 %vm10855_vm1, %v10854_v0  ;;  %10199 = vmatprep.mubr.msk.bf16.mxu1 %vm10855_vm1, %v10854_v0 }
 0x25e   : > { %7185 = vst.msk [vmem:[%s11252_s23 + $0x140] sm:$0xf] %vm7104_vm4, %v8783_v27  ;;  %v8784_v31 = vpack.c.bf16 %v4755_v28, %v4755_v28  ;;  %7429 = vst.msk [vmem:[%s11252_s23 + $0x510] sm:$0xf] %vm7104_vm4, %v9027_v29  ;;  %v9028_v32 = vpack.c.bf16 %v4999_v30, %v4999_v30 }
 0x25f   : > { %v3059_v33 = vpop.f32.mrb[164].mxu0  ;;  %v4035_v34 = vpop.f32.mrb[164].mxu1 }
 0x260   : > { %7186 = vst.msk [vmem:[%s11252_s23 + $0x144] sm:$0xf] %vm7104_vm4, %v8784_v31  ;;  %7430 = vst.msk [vmem:[%s11252_s23 + $0x514] sm:$0xf] %vm7104_vm4, %v9028_v32  ;;  %v3060_v35 = vadd.f32 %v11932_v8, %v3059_v33  ;;  %v9605_v36 = vpop.f32.mrb[165].mxu0  ;;  %v4036_v38 = vadd.f32 %v11932_v8, %v4035_v34  ;;  %v10093_v39 = vpop.f32.mrb[165].mxu1 }
 0x261   : > { %v3062_v41 = vpop.f32.mrb[166].mxu0  ;;  %v4038_v42 = vpop.f32.mrb[166].mxu1 }
 0x262   : > { %v4756_v43 = vmax.f32 %v3060_v35, 0.0  ;;  %v3063_v44 = vadd.f32 %v11932_v8, %v3062_v41  ;;  %v9606_v45 = vpop.f32.mrb[167].mxu0  ;;  %v5000_v46 = vmax.f32 %v4036_v38, 0.0  ;;  %v4039_v47 = vadd.f32 %v11932_v8, %v4038_v42  ;;  %v10094_v48 = vpop.f32.mrb[167].mxu1  ;;  %v10630_v41 = vld [vmem:[%s10997_s21 + $0x238] sm:$0xff]  }
 0x264   : > { %v8785_v49 = vpack.c.bf16 %v4756_v43, %v4756_v43  ;;  %v4757_v50 = vmax.f32 %v3063_v44, 0.0  ;;  %9712 = vmatmul.mubr.msk.bf16.gmra.mrb[16].mxu0 %vm1960_vm3, %v10624_v37  ;;  %v9029_v51 = vpack.c.bf16 %v5000_v46, %v5000_v46  ;;  %v5001_v52 = vmax.f32 %v4039_v47, 0.0  ;;  %10200 = vmatmul.mubr.msk.bf16.gmra.mrb[16].mxu1 %vm1960_vm3, %v10625_v40  ;;  %v10631_v44 = vld [vmem:[%s10997_s21 + $0x608] sm:$0xff]  }
 0x265   : > { %9715 = vmatprep.mubr.msk.bf16.mxu0 %vm10855_vm1, %v10854_v0  ;;  %10203 = vmatprep.mubr.msk.bf16.mxu1 %vm10855_vm1, %v10854_v0 }
 0x266   : > { %7187 = vst.msk [vmem:[%s11252_s23 + $0x148] sm:$0xf] %vm7104_vm4, %v8785_v49  ;;  %v8786_v53 = vpack.c.bf16 %v4757_v50, %v4757_v50  ;;  %7431 = vst.msk [vmem:[%s11252_s23 + $0x518] sm:$0xf] %vm7104_vm4, %v9029_v51  ;;  %v9030_v54 = vpack.c.bf16 %v5001_v52, %v5001_v52 }
 0x267   : > { %v3067_v55 = vpop.f32.mrb[168].mxu0  ;;  %v4043_v56 = vpop.f32.mrb[168].mxu1 }
 0x268   : > { %7188 = vst.msk [vmem:[%s11252_s23 + $0x14c] sm:$0xf] %vm7104_vm4, %v8786_v53  ;;  %7432 = vst.msk [vmem:[%s11252_s23 + $0x51c] sm:$0xf] %vm7104_vm4, %v9030_v54  ;;  %v3068_v57 = vadd.f32 %v11932_v8, %v3067_v55  ;;  %v9609_v58 = vpop.f32.mrb[169].mxu0  ;;  %v4044_v60 = vadd.f32 %v11932_v8, %v4043_v56  ;;  %v10097_v61 = vpop.f32.mrb[169].mxu1 }
 0x269   : > { %v3070_v63 = vpop.f32.mrb[170].mxu0  ;;  %v4046_v1 = vpop.f32.mrb[170].mxu1 }
 0x26a   : > { %v4758_v3 = vmax.f32 %v3068_v57, 0.0  ;;  %v3071_v4 = vadd.f32 %v11932_v8, %v3070_v63  ;;  %v9610_v5 = vpop.f32.mrb[171].mxu0  ;;  %v5002_v6 = vmax.f32 %v4044_v60, 0.0  ;;  %v4047_v7 = vadd.f32 %v11932_v8, %v4046_v1  ;;  %v10098_v9 = vpop.f32.mrb[171].mxu1  ;;  %v10632_v63 = vld [vmem:[%s10997_s21 + $0x240] sm:$0xff]  }
 0x26c   : > { %v8787_v10 = vpack.c.bf16 %v4758_v3, %v4758_v3  ;;  %v4759_v11 = vmax.f32 %v3071_v4, 0.0  ;;  %9716 = vmatmul.mubr.msk.bf16.gmra.mrb[20].mxu0 %vm1960_vm3, %v10626_v59  ;;  %v9031_v12 = vpack.c.bf16 %v5002_v6, %v5002_v6  ;;  %v5003_v13 = vmax.f32 %v4047_v7, 0.0  ;;  %10204 = vmatmul.mubr.msk.bf16.gmra.mrb[20].mxu1 %vm1960_vm3, %v10627_v62  ;;  %v10633_v4 = vld [vmem:[%s10997_s21 + $0x610] sm:$0xff]  }
 0x26d   : > { %9719 = vmatprep.mubr.msk.bf16.mxu0 %vm10855_vm1, %v10854_v0  ;;  %10207 = vmatprep.mubr.msk.bf16.mxu1 %vm10855_vm1, %v10854_v0 }
 0x26e   : > { %7189 = vst.msk [vmem:[%s11252_s23 + $0x150] sm:$0xf] %vm7104_vm4, %v8787_v10  ;;  %v8788_v14 = vpack.c.bf16 %v4759_v11, %v4759_v11  ;;  %7433 = vst.msk [vmem:[%s11252_s23 + $0x520] sm:$0xf] %vm7104_vm4, %v9031_v12  ;;  %v9032_v15 = vpack.c.bf16 %v5003_v13, %v5003_v13 }
 0x26f   : > { %v3075_v16 = vpop.f32.mrb[172].mxu0  ;;  %v4051_v2 = vpop.f32.mrb[172].mxu1 }
 0x270   : > { %7190 = vst.msk [vmem:[%s11252_s23 + $0x154] sm:$0xf] %vm7104_vm4, %v8788_v14  ;;  %7434 = vst.msk [vmem:[%s11252_s23 + $0x524] sm:$0xf] %vm7104_vm4, %v9032_v15  ;;  %v3076_v17 = vadd.f32 %v11932_v8, %v3075_v16  ;;  %v9613_v18 = vpop.f32.mrb[173].mxu0  ;;  %v4052_v20 = vadd.f32 %v11932_v8, %v4051_v2  ;;  %v10101_v21 = vpop.f32.mrb[173].mxu1 }
 0x271   : > { %v3078_v23 = vpop.f32.mrb[174].mxu0  ;;  %v4054_v24 = vpop.f32.mrb[174].mxu1 }
 0x272   : > { %v4760_v25 = vmax.f32 %v3076_v17, 0.0  ;;  %v3079_v26 = vadd.f32 %v11932_v8, %v3078_v23  ;;  %v9614_v27 = vpop.f32.mrb[175].mxu0  ;;  %v5004_v28 = vmax.f32 %v4052_v20, 0.0  ;;  %v4055_v29 = vadd.f32 %v11932_v8, %v4054_v24  ;;  %v10102_v30 = vpop.f32.mrb[175].mxu1  ;;  %v10634_v23 = vld [vmem:[%s10997_s21 + $0x248] sm:$0xff]  }
 0x274   : > { %v8789_v31 = vpack.c.bf16 %v4760_v25, %v4760_v25  ;;  %v4761_v32 = vmax.f32 %v3079_v26, 0.0  ;;  %9720 = vmatmul.mubr.msk.bf16.gmra.mrb[24].mxu0 %vm1960_vm3, %v10628_v19  ;;  %v9033_v33 = vpack.c.bf16 %v5004_v28, %v5004_v28  ;;  %v5005_v34 = vmax.f32 %v4055_v29, 0.0  ;;  %10208 = vmatmul.mubr.msk.bf16.gmra.mrb[24].mxu1 %vm1960_vm3, %v10629_v22  ;;  %v10635_v26 = vld [vmem:[%s10997_s21 + $0x618] sm:$0xff]  }
 0x275   : > { %9723 = vmatprep.mubr.msk.bf16.mxu0 %vm10855_vm1, %v10854_v0  ;;  %10211 = vmatprep.mubr.msk.bf16.mxu1 %vm10855_vm1, %v10854_v0 }
 0x276   : > { %7191 = vst.msk [vmem:[%s11252_s23 + $0x158] sm:$0xf] %vm7104_vm4, %v8789_v31  ;;  %v8790_v35 = vpack.c.bf16 %v4761_v32, %v4761_v32  ;;  %7435 = vst.msk [vmem:[%s11252_s23 + $0x528] sm:$0xf] %vm7104_vm4, %v9033_v33  ;;  %v9034_v36 = vpack.c.bf16 %v5005_v34, %v5005_v34 }
 0x277   : > { %v3083_v37 = vpop.f32.mrb[176].mxu0  ;;  %v4059_v38 = vpop.f32.mrb[176].mxu1 }
 0x278   : > { %7192 = vst.msk [vmem:[%s11252_s23 + $0x15c] sm:$0xf] %vm7104_vm4, %v8790_v35  ;;  %7436 = vst.msk [vmem:[%s11252_s23 + $0x52c] sm:$0xf] %vm7104_vm4, %v9034_v36  ;;  %v3084_v39 = vadd.f32 %v11932_v8, %v3083_v37  ;;  %v9617_v40 = vpop.f32.mrb[177].mxu0  ;;  %v4060_v42 = vadd.f32 %v11932_v8, %v4059_v38  ;;  %v10105_v43 = vpop.f32.mrb[177].mxu1 }
 0x279   : > { %v3086_v45 = vpop.f32.mrb[178].mxu0  ;;  %v4062_v46 = vpop.f32.mrb[178].mxu1 }
 0x27a   : > { %v4762_v47 = vmax.f32 %v3084_v39, 0.0  ;;  %v3087_v48 = vadd.f32 %v11932_v8, %v3086_v45  ;;  %v9618_v49 = vpop.f32.mrb[179].mxu0  ;;  %v5006_v50 = vmax.f32 %v4060_v42, 0.0  ;;  %v4063_v51 = vadd.f32 %v11932_v8, %v4062_v46  ;;  %v10106_v52 = vpop.f32.mrb[179].mxu1  ;;  %v10636_v45 = vld [vmem:[%s10997_s21 + $0x250] sm:$0xff]  }
 0x27c   : > { %v8791_v53 = vpack.c.bf16 %v4762_v47, %v4762_v47  ;;  %v4763_v54 = vmax.f32 %v3087_v48, 0.0  ;;  %9724 = vmatmul.mubr.msk.bf16.gmra.mrb[28].mxu0 %vm1960_vm3, %v10630_v41  ;;  %v9035_v55 = vpack.c.bf16 %v5006_v50, %v5006_v50  ;;  %v5007_v56 = vmax.f32 %v4063_v51, 0.0  ;;  %10212 = vmatmul.mubr.msk.bf16.gmra.mrb[28].mxu1 %vm1960_vm3, %v10631_v44  ;;  %v10637_v48 = vld [vmem:[%s10997_s21 + $0x620] sm:$0xff]  }
 0x27d   : > { %9727 = vmatprep.mubr.msk.bf16.mxu0 %vm10855_vm1, %v10854_v0  ;;  %10215 = vmatprep.mubr.msk.bf16.mxu1 %vm10855_vm1, %v10854_v0 }
 0x27e   : > { %7193 = vst.msk [vmem:[%s11252_s23 + $0x160] sm:$0xf] %vm7104_vm4, %v8791_v53  ;;  %v8792_v57 = vpack.c.bf16 %v4763_v54, %v4763_v54  ;;  %7437 = vst.msk [vmem:[%s11252_s23 + $0x530] sm:$0xf] %vm7104_vm4, %v9035_v55  ;;  %v9036_v58 = vpack.c.bf16 %v5007_v56, %v5007_v56 }
 0x27f   : > { %v3091_v59 = vpop.f32.mrb[180].mxu0  ;;  %v4067_v60 = vpop.f32.mrb[180].mxu1 }
 0x280   : > { %7194 = vst.msk [vmem:[%s11252_s23 + $0x164] sm:$0xf] %vm7104_vm4, %v8792_v57  ;;  %7438 = vst.msk [vmem:[%s11252_s23 + $0x534] sm:$0xf] %vm7104_vm4, %v9036_v58  ;;  %v3092_v61 = vadd.f32 %v11932_v8, %v3091_v59  ;;  %v9621_v62 = vpop.f32.mrb[181].mxu0  ;;  %v4068_v1 = vadd.f32 %v11932_v8, %v4067_v60  ;;  %v10109_v3 = vpop.f32.mrb[181].mxu1 }
 0x281   : > { %v3094_v5 = vpop.f32.mrb[182].mxu0  ;;  %v4070_v6 = vpop.f32.mrb[182].mxu1 }
 0x282   : > { %v4764_v7 = vmax.f32 %v3092_v61, 0.0  ;;  %v3095_v9 = vadd.f32 %v11932_v8, %v3094_v5  ;;  %v9622_v10 = vpop.f32.mrb[183].mxu0  ;;  %v5008_v11 = vmax.f32 %v4068_v1, 0.0  ;;  %v4071_v12 = vadd.f32 %v11932_v8, %v4070_v6  ;;  %v10110_v13 = vpop.f32.mrb[183].mxu1  ;;  %v10638_v5 = vld [vmem:[%s10997_s21 + $0x258] sm:$0xff]  }
 0x284   : > { %v8793_v14 = vpack.c.bf16 %v4764_v7, %v4764_v7  ;;  %v4765_v15 = vmax.f32 %v3095_v9, 0.0  ;;  %9728 = vmatmul.mubr.msk.bf16.gmra.mrb[32].mxu0 %vm1960_vm3, %v10632_v63  ;;  %v9037_v16 = vpack.c.bf16 %v5008_v11, %v5008_v11  ;;  %v5009_v2 = vmax.f32 %v4071_v12, 0.0  ;;  %10216 = vmatmul.mubr.msk.bf16.gmra.mrb[32].mxu1 %vm1960_vm3, %v10633_v4  ;;  %v10639_v9 = vld [vmem:[%s10997_s21 + $0x628] sm:$0xff]  }
 0x285   : > { %9731 = vmatprep.mubr.msk.bf16.mxu0 %vm10855_vm1, %v10854_v0  ;;  %10219 = vmatprep.mubr.msk.bf16.mxu1 %vm10855_vm1, %v10854_v0 }
 0x286   : > { %7195 = vst.msk [vmem:[%s11252_s23 + $0x168] sm:$0xf] %vm7104_vm4, %v8793_v14  ;;  %v8794_v17 = vpack.c.bf16 %v4765_v15, %v4765_v15  ;;  %7439 = vst.msk [vmem:[%s11252_s23 + $0x538] sm:$0xf] %vm7104_vm4, %v9037_v16  ;;  %v9038_v18 = vpack.c.bf16 %v5009_v2, %v5009_v2 }
 0x287   : > { %v3099_v19 = vpop.f32.mrb[184].mxu0  ;;  %v4075_v20 = vpop.f32.mrb[184].mxu1 }
 0x288   : > { %7196 = vst.msk [vmem:[%s11252_s23 + $0x16c] sm:$0xf] %vm7104_vm4, %v8794_v17  ;;  %7440 = vst.msk [vmem:[%s11252_s23 + $0x53c] sm:$0xf] %vm7104_vm4, %v9038_v18  ;;  %v3100_v21 = vadd.f32 %v11932_v8, %v3099_v19  ;;  %v9625_v22 = vpop.f32.mrb[185].mxu0  ;;  %v4076_v24 = vadd.f32 %v11932_v8, %v4075_v20  ;;  %v10113_v25 = vpop.f32.mrb[185].mxu1 }
 0x289   : > { %v3102_v27 = vpop.f32.mrb[186].mxu0  ;;  %v4078_v28 = vpop.f32.mrb[186].mxu1 }
 0x28a   : > { %v4766_v29 = vmax.f32 %v3100_v21, 0.0  ;;  %v3103_v30 = vadd.f32 %v11932_v8, %v3102_v27  ;;  %v9626_v31 = vpop.f32.mrb[187].mxu0  ;;  %v5010_v32 = vmax.f32 %v4076_v24, 0.0  ;;  %v4079_v33 = vadd.f32 %v11932_v8, %v4078_v28  ;;  %v10114_v34 = vpop.f32.mrb[187].mxu1  ;;  %v10640_v27 = vld [vmem:[%s10997_s21 + $0x260] sm:$0xff]  }
 0x28c   : > { %v8795_v35 = vpack.c.bf16 %v4766_v29, %v4766_v29  ;;  %v4767_v36 = vmax.f32 %v3103_v30, 0.0  ;;  %9732 = vmatmul.mubr.msk.bf16.gmra.mrb[36].mxu0 %vm1960_vm3, %v10634_v23  ;;  %v9039_v37 = vpack.c.bf16 %v5010_v32, %v5010_v32  ;;  %v5011_v38 = vmax.f32 %v4079_v33, 0.0  ;;  %10220 = vmatmul.mubr.msk.bf16.gmra.mrb[36].mxu1 %vm1960_vm3, %v10635_v26  ;;  %v10641_v30 = vld [vmem:[%s10997_s21 + $0x630] sm:$0xff]  }
 0x28d   : > { %9735 = vmatprep.mubr.msk.bf16.mxu0 %vm10855_vm1, %v10854_v0  ;;  %10223 = vmatprep.mubr.msk.bf16.mxu1 %vm10855_vm1, %v10854_v0 }
 0x28e   : > { %7197 = vst.msk [vmem:[%s11252_s23 + $0x170] sm:$0xf] %vm7104_vm4, %v8795_v35  ;;  %v8796_v39 = vpack.c.bf16 %v4767_v36, %v4767_v36  ;;  %7441 = vst.msk [vmem:[%s11252_s23 + $0x540] sm:$0xf] %vm7104_vm4, %v9039_v37  ;;  %v9040_v40 = vpack.c.bf16 %v5011_v38, %v5011_v38 }
 0x28f   : > { %v3107_v41 = vpop.f32.mrb[188].mxu0  ;;  %v4083_v42 = vpop.f32.mrb[188].mxu1 }
 0x290   : > { %7198 = vst.msk [vmem:[%s11252_s23 + $0x174] sm:$0xf] %vm7104_vm4, %v8796_v39  ;;  %7442 = vst.msk [vmem:[%s11252_s23 + $0x544] sm:$0xf] %vm7104_vm4, %v9040_v40  ;;  %v3108_v43 = vadd.f32 %v11932_v8, %v3107_v41  ;;  %v9629_v44 = vpop.f32.mrb[189].mxu0  ;;  %v4084_v46 = vadd.f32 %v11932_v8, %v4083_v42  ;;  %v10117_v47 = vpop.f32.mrb[189].mxu1 }
 0x291   : > { %v3110_v49 = vpop.f32.mrb[190].mxu0  ;;  %v4086_v50 = vpop.f32.mrb[190].mxu1 }
 0x292   : > { %v4768_v51 = vmax.f32 %v3108_v43, 0.0  ;;  %v3111_v52 = vadd.f32 %v11932_v8, %v3110_v49  ;;  %v9630_v53 = vpop.f32.mrb[191].mxu0  ;;  %v5012_v54 = vmax.f32 %v4084_v46, 0.0  ;;  %v4087_v55 = vadd.f32 %v11932_v8, %v4086_v50  ;;  %v10118_v56 = vpop.f32.mrb[191].mxu1  ;;  %v10642_v49 = vld [vmem:[%s10997_s21 + $0x268] sm:$0xff]  }
 0x294   : > { %v8797_v57 = vpack.c.bf16 %v4768_v51, %v4768_v51  ;;  %v4769_v58 = vmax.f32 %v3111_v52, 0.0  ;;  %9736 = vmatmul.mubr.msk.bf16.gmra.mrb[40].mxu0 %vm1960_vm3, %v10636_v45  ;;  %v9041_v59 = vpack.c.bf16 %v5012_v54, %v5012_v54  ;;  %v5013_v60 = vmax.f32 %v4087_v55, 0.0  ;;  %10224 = vmatmul.mubr.msk.bf16.gmra.mrb[40].mxu1 %vm1960_vm3, %v10637_v48  ;;  %v10643_v52 = vld [vmem:[%s10997_s21 + $0x638] sm:$0xff]  }
 0x295   : > { %9739 = vmatprep.mubr.msk.bf16.mxu0 %vm10855_vm1, %v10854_v0  ;;  %10227 = vmatprep.mubr.msk.bf16.mxu1 %vm10855_vm1, %v10854_v0 }
 0x296   : > { %7199 = vst.msk [vmem:[%s11252_s23 + $0x178] sm:$0xf] %vm7104_vm4, %v8797_v57  ;;  %v8798_v61 = vpack.c.bf16 %v4769_v58, %v4769_v58  ;;  %7443 = vst.msk [vmem:[%s11252_s23 + $0x548] sm:$0xf] %vm7104_vm4, %v9041_v59  ;;  %v9042_v62 = vpack.c.bf16 %v5013_v60, %v5013_v60 }
 0x297   : > { %v3115_v63 = vpop.f32.mrb[192].mxu0  ;;  %v4091_v1 = vpop.f32.mrb[192].mxu1 }
 0x298   : > { %7200 = vst.msk [vmem:[%s11252_s23 + $0x17c] sm:$0xf] %vm7104_vm4, %v8798_v61  ;;  %7444 = vst.msk [vmem:[%s11252_s23 + $0x54c] sm:$0xf] %vm7104_vm4, %v9042_v62  ;;  %v3116_v3 = vadd.f32 %v11932_v8, %v3115_v63  ;;  %v9633_v4 = vpop.f32.mrb[193].mxu0  ;;  %v4092_v6 = vadd.f32 %v11932_v8, %v4091_v1  ;;  %v10121_v7 = vpop.f32.mrb[193].mxu1 }
 0x299   : > { %v3118_v10 = vpop.f32.mrb[194].mxu0  ;;  %v4094_v11 = vpop.f32.mrb[194].mxu1 }
 0x29a   : > { %v4770_v12 = vmax.f32 %v3116_v3, 0.0  ;;  %v3119_v13 = vadd.f32 %v11932_v8, %v3118_v10  ;;  %v9634_v14 = vpop.f32.mrb[195].mxu0  ;;  %v5014_v15 = vmax.f32 %v4092_v6, 0.0  ;;  %v4095_v16 = vadd.f32 %v11932_v8, %v4094_v11  ;;  %v10122_v2 = vpop.f32.mrb[195].mxu1  ;;  %v10644_v10 = vld [vmem:[%s10997_s21 + $0x270] sm:$0xff]  }
 0x29b   : > { %v12279_v2 = vld [vmem:[%s13539_s2] ss:$0 sm:$0xff] }
 0x29c   : > { %v8799_v17 = vpack.c.bf16 %v4770_v12, %v4770_v12  ;;  %v4771_v18 = vmax.f32 %v3119_v13, 0.0  ;;  %9740 = vmatmul.mubr.msk.bf16.gmra.mrb[44].mxu0 %vm1960_vm3, %v10638_v5  ;;  %v9043_v19 = vpack.c.bf16 %v5014_v15, %v5014_v15  ;;  %v5015_v20 = vmax.f32 %v4095_v16, 0.0  ;;  %10228 = vmatmul.mubr.msk.bf16.gmra.mrb[44].mxu1 %vm1960_vm3, %v10639_v9  ;;  %v10645_v13 = vld [vmem:[%s10997_s21 + $0x640] sm:$0xff]  }
 0x29d   : > { %9743 = vmatprep.mubr.msk.bf16.mxu0 %vm10855_vm1, %v10854_v0  ;;  %10231 = vmatprep.mubr.msk.bf16.mxu1 %vm10855_vm1, %v10854_v0 }
 0x29e   : > { %7201 = vst.msk [vmem:[%s11252_s23 + $0x180] sm:$0xf] %vm7104_vm4, %v8799_v17  ;;  %v8800_v21 = vpack.c.bf16 %v4771_v18, %v4771_v18  ;;  %7445 = vst.msk [vmem:[%s11252_s23 + $0x550] sm:$0xf] %vm7104_vm4, %v9043_v19  ;;  %v9044_v22 = vpack.c.bf16 %v5015_v20, %v5015_v20 }
 0x29f   : > { %v3123_v23 = vpop.f32.mrb[196].mxu0  ;;  %v4099_v24 = vpop.f32.mrb[196].mxu1 }
 0x2a0   : > { %7202 = vst.msk [vmem:[%s11252_s23 + $0x184] sm:$0xf] %vm7104_vm4, %v8800_v21  ;;  %7446 = vst.msk [vmem:[%s11252_s23 + $0x554] sm:$0xf] %vm7104_vm4, %v9044_v22  ;;  %v3124_v25 = vadd.f32 %v11932_v8, %v3123_v23  ;;  %v9637_v26 = vpop.f32.mrb[197].mxu0  ;;  %v4100_v28 = vadd.f32 %v11932_v8, %v4099_v24  ;;  %v10125_v29 = vpop.f32.mrb[197].mxu1 }
 0x2a1   : > { %v3126_v31 = vpop.f32.mrb[198].mxu0  ;;  %v4102_v32 = vpop.f32.mrb[198].mxu1 }
 0x2a2   : > { %v4772_v33 = vmax.f32 %v3124_v25, 0.0  ;;  %v3127_v34 = vadd.f32 %v11932_v8, %v3126_v31  ;;  %v9638_v35 = vpop.f32.mrb[199].mxu0  ;;  %v5016_v36 = vmax.f32 %v4100_v28, 0.0  ;;  %v4103_v37 = vadd.f32 %v11932_v8, %v4102_v32  ;;  %v10126_v38 = vpop.f32.mrb[199].mxu1  ;;  %v10646_v31 = vld [vmem:[%s10997_s21 + $0x278] sm:$0xff]  }
 0x2a4   : > { %v8801_v39 = vpack.c.bf16 %v4772_v33, %v4772_v33  ;;  %v4773_v40 = vmax.f32 %v3127_v34, 0.0  ;;  %9744 = vmatmul.mubr.msk.bf16.gmra.mrb[48].mxu0 %vm1960_vm3, %v10640_v27  ;;  %v9045_v41 = vpack.c.bf16 %v5016_v36, %v5016_v36  ;;  %v5017_v42 = vmax.f32 %v4103_v37, 0.0  ;;  %10232 = vmatmul.mubr.msk.bf16.gmra.mrb[48].mxu1 %vm1960_vm3, %v10641_v30  ;;  %v10647_v34 = vld [vmem:[%s10997_s21 + $0x648] sm:$0xff]  }
 0x2a5   : > { %9747 = vmatprep.mubr.msk.bf16.mxu0 %vm10855_vm1, %v10854_v0  ;;  %10235 = vmatprep.mubr.msk.bf16.mxu1 %vm10855_vm1, %v10854_v0 }
 0x2a6   : > { %7203 = vst.msk [vmem:[%s11252_s23 + $0x188] sm:$0xf] %vm7104_vm4, %v8801_v39  ;;  %v8802_v43 = vpack.c.bf16 %v4773_v40, %v4773_v40  ;;  %7447 = vst.msk [vmem:[%s11252_s23 + $0x558] sm:$0xf] %vm7104_vm4, %v9045_v41  ;;  %v9046_v44 = vpack.c.bf16 %v5017_v42, %v5017_v42 }
 0x2a7   : > { %v3131_v45 = vpop.f32.mrb[200].mxu0  ;;  %v4107_v46 = vpop.f32.mrb[200].mxu1 }
 0x2a8   : > { %7204 = vst.msk [vmem:[%s11252_s23 + $0x18c] sm:$0xf] %vm7104_vm4, %v8802_v43  ;;  %7448 = vst.msk [vmem:[%s11252_s23 + $0x55c] sm:$0xf] %vm7104_vm4, %v9046_v44  ;;  %v3132_v47 = vadd.f32 %v11932_v8, %v3131_v45  ;;  %v9641_v48 = vpop.f32.mrb[201].mxu0  ;;  %v4108_v50 = vadd.f32 %v11932_v8, %v4107_v46  ;;  %v10129_v51 = vpop.f32.mrb[201].mxu1 }
 0x2a9   : > { %v3134_v53 = vpop.f32.mrb[202].mxu0  ;;  %v4110_v54 = vpop.f32.mrb[202].mxu1 }
 0x2aa   : > { %v4774_v55 = vmax.f32 %v3132_v47, 0.0  ;;  %v3135_v56 = vadd.f32 %v11932_v8, %v3134_v53  ;;  %v9642_v57 = vpop.f32.mrb[203].mxu0  ;;  %v5018_v58 = vmax.f32 %v4108_v50, 0.0  ;;  %v4111_v59 = vadd.f32 %v11932_v8, %v4110_v54  ;;  %v10130_v60 = vpop.f32.mrb[203].mxu1  ;;  %v10648_v53 = vld [vmem:[%s10997_s21 + $0x280] sm:$0xff]  }
 0x2ac   : > { %v8803_v61 = vpack.c.bf16 %v4774_v55, %v4774_v55  ;;  %v4775_v62 = vmax.f32 %v3135_v56, 0.0  ;;  %9748 = vmatmul.mubr.msk.bf16.gmra.mrb[52].mxu0 %vm1960_vm3, %v10642_v49  ;;  %v9047_v63 = vpack.c.bf16 %v5018_v58, %v5018_v58  ;;  %v5019_v1 = vmax.f32 %v4111_v59, 0.0  ;;  %10236 = vmatmul.mubr.msk.bf16.gmra.mrb[52].mxu1 %vm1960_vm3, %v10643_v52  ;;  %v10649_v56 = vld [vmem:[%s10997_s21 + $0x650] sm:$0xff]  }
 0x2ad   : > { %9751 = vmatprep.mubr.msk.bf16.mxu0 %vm10855_vm1, %v10854_v0  ;;  %10239 = vmatprep.mubr.msk.bf16.mxu1 %vm10855_vm1, %v10854_v0 }
 0x2ae   : > { %7205 = vst.msk [vmem:[%s11252_s23 + $0x190] sm:$0xf] %vm7104_vm4, %v8803_v61  ;;  %v8804_v3 = vpack.c.bf16 %v4775_v62, %v4775_v62  ;;  %7449 = vst.msk [vmem:[%s11252_s23 + $0x560] sm:$0xf] %vm7104_vm4, %v9047_v63  ;;  %v9048_v4 = vpack.c.bf16 %v5019_v1, %v5019_v1 }
 0x2af   : > { %v3139_v5 = vpop.f32.mrb[204].mxu0  ;;  %v4115_v6 = vpop.f32.mrb[204].mxu1 }
 0x2b0   : > { %7206 = vst.msk [vmem:[%s11252_s23 + $0x194] sm:$0xf] %vm7104_vm4, %v8804_v3  ;;  %7450 = vst.msk [vmem:[%s11252_s23 + $0x564] sm:$0xf] %vm7104_vm4, %v9048_v4  ;;  %v3140_v7 = vadd.f32 %v11932_v8, %v3139_v5  ;;  %v9645_v9 = vpop.f32.mrb[205].mxu0  ;;  %v4116_v11 = vadd.f32 %v11932_v8, %v4115_v6  ;;  %v10133_v12 = vpop.f32.mrb[205].mxu1 }
 0x2b1   : > { %v3142_v14 = vpop.f32.mrb[206].mxu0  ;;  %v4118_v15 = vpop.f32.mrb[206].mxu1 }
 0x2b2   : > { %v4776_v16 = vmax.f32 %v3140_v7, 0.0  ;;  %v3143_v17 = vadd.f32 %v12279_v2, %v3142_v14  ;;  %v9646_v18 = vpop.f32.mrb[207].mxu0  ;;  %v5020_v19 = vmax.f32 %v4116_v11, 0.0  ;;  %v4119_v20 = vadd.f32 %v12279_v2, %v4118_v15  ;;  %v10134_v8 = vpop.f32.mrb[207].mxu1  ;;  %v10650_v14 = vld [vmem:[%s10997_s21 + $0x288] sm:$0xff]  }
 0x2b4   : > { %v8805_v21 = vpack.c.bf16 %v4776_v16, %v4776_v16  ;;  %v4777_v22 = vmax.f32 %v3143_v17, 0.0  ;;  %9752 = vmatmul.mubr.msk.bf16.gmra.mrb[56].mxu0 %vm1960_vm3, %v10644_v10  ;;  %v9049_v23 = vpack.c.bf16 %v5020_v19, %v5020_v19  ;;  %v5021_v24 = vmax.f32 %v4119_v20, 0.0  ;;  %10240 = vmatmul.mubr.msk.bf16.gmra.mrb[56].mxu1 %vm1960_vm3, %v10645_v13  ;;  %v10651_v17 = vld [vmem:[%s10997_s21 + $0x658] sm:$0xff]  }
 0x2b5   : > { %9755 = vmatprep.mubr.msk.bf16.mxu0 %vm10855_vm1, %v10854_v0  ;;  %10243 = vmatprep.mubr.msk.bf16.mxu1 %vm10855_vm1, %v10854_v0 }
 0x2b6   : > { %7207 = vst.msk [vmem:[%s11252_s23 + $0x198] sm:$0xf] %vm7104_vm4, %v8805_v21  ;;  %v8806_v25 = vpack.c.bf16 %v4777_v22, %v4777_v22  ;;  %7451 = vst.msk [vmem:[%s11252_s23 + $0x568] sm:$0xf] %vm7104_vm4, %v9049_v23  ;;  %v9050_v26 = vpack.c.bf16 %v5021_v24, %v5021_v24 }
 0x2b7   : > { %v3147_v27 = vpop.f32.mrb[208].mxu0  ;;  %v4123_v28 = vpop.f32.mrb[208].mxu1 }
 0x2b8   : > { %7208 = vst.msk [vmem:[%s11252_s23 + $0x19c] sm:$0xf] %vm7104_vm4, %v8806_v25  ;;  %7452 = vst.msk [vmem:[%s11252_s23 + $0x56c] sm:$0xf] %vm7104_vm4, %v9050_v26  ;;  %v3148_v29 = vadd.f32 %v12279_v2, %v3147_v27  ;;  %v9649_v30 = vpop.f32.mrb[209].mxu0  ;;  %v4124_v32 = vadd.f32 %v12279_v2, %v4123_v28  ;;  %v10137_v33 = vpop.f32.mrb[209].mxu1 }
 0x2b9   : > { %v3150_v35 = vpop.f32.mrb[210].mxu0  ;;  %v4126_v36 = vpop.f32.mrb[210].mxu1 }
 0x2ba   : > { %v4778_v37 = vmax.f32 %v3148_v29, 0.0  ;;  %v3151_v38 = vadd.f32 %v12279_v2, %v3150_v35  ;;  %v9650_v39 = vpop.f32.mrb[211].mxu0  ;;  %v5022_v40 = vmax.f32 %v4124_v32, 0.0  ;;  %v4127_v41 = vadd.f32 %v12279_v2, %v4126_v36  ;;  %v10138_v42 = vpop.f32.mrb[211].mxu1  ;;  %v10652_v35 = vld [vmem:[%s10997_s21 + $0x290] sm:$0xff]  }
 0x2bc   : > { %v8807_v43 = vpack.c.bf16 %v4778_v37, %v4778_v37  ;;  %v4779_v44 = vmax.f32 %v3151_v38, 0.0  ;;  %9756 = vmatmul.mubr.msk.bf16.gmra.mrb[60].mxu0 %vm1960_vm3, %v10646_v31  ;;  %v9051_v45 = vpack.c.bf16 %v5022_v40, %v5022_v40  ;;  %v5023_v46 = vmax.f32 %v4127_v41, 0.0  ;;  %10244 = vmatmul.mubr.msk.bf16.gmra.mrb[60].mxu1 %vm1960_vm3, %v10647_v34  ;;  %v10653_v38 = vld [vmem:[%s10997_s21 + $0x660] sm:$0xff]  }
 0x2bd   : > { %9759 = vmatprep.mubr.msk.bf16.mxu0 %vm10855_vm1, %v10854_v0  ;;  %10247 = vmatprep.mubr.msk.bf16.mxu1 %vm10855_vm1, %v10854_v0 }
 0x2be   : > { %7209 = vst.msk [vmem:[%s11252_s23 + $0x1a0] sm:$0xf] %vm7104_vm4, %v8807_v43  ;;  %v8808_v47 = vpack.c.bf16 %v4779_v44, %v4779_v44  ;;  %7453 = vst.msk [vmem:[%s11252_s23 + $0x570] sm:$0xf] %vm7104_vm4, %v9051_v45  ;;  %v9052_v48 = vpack.c.bf16 %v5023_v46, %v5023_v46 }
 0x2bf   : > { %v3155_v49 = vpop.f32.mrb[212].mxu0  ;;  %v4131_v50 = vpop.f32.mrb[212].mxu1 }
 0x2c0   : > { %7210 = vst.msk [vmem:[%s11252_s23 + $0x1a4] sm:$0xf] %vm7104_vm4, %v8808_v47  ;;  %7454 = vst.msk [vmem:[%s11252_s23 + $0x574] sm:$0xf] %vm7104_vm4, %v9052_v48  ;;  %v3156_v51 = vadd.f32 %v12279_v2, %v3155_v49  ;;  %v9653_v52 = vpop.f32.mrb[213].mxu0  ;;  %v4132_v54 = vadd.f32 %v12279_v2, %v4131_v50  ;;  %v10141_v55 = vpop.f32.mrb[213].mxu1 }
 0x2c1   : > { %v3158_v57 = vpop.f32.mrb[214].mxu0  ;;  %v4134_v58 = vpop.f32.mrb[214].mxu1 }
 0x2c2   : > { %v4780_v59 = vmax.f32 %v3156_v51, 0.0  ;;  %v3159_v60 = vadd.f32 %v12279_v2, %v3158_v57  ;;  %v9654_v61 = vpop.f32.mrb[215].mxu0  ;;  %v5024_v62 = vmax.f32 %v4132_v54, 0.0  ;;  %v4135_v63 = vadd.f32 %v12279_v2, %v4134_v58  ;;  %v10142_v1 = vpop.f32.mrb[215].mxu1  ;;  %v10654_v57 = vld [vmem:[%s10997_s21 + $0x298] sm:$0xff]  }
 0x2c4   : > { %v8809_v3 = vpack.c.bf16 %v4780_v59, %v4780_v59  ;;  %v4781_v4 = vmax.f32 %v3159_v60, 0.0  ;;  %9760 = vmatmul.mubr.msk.bf16.gmra.mrb[64].mxu0 %vm1960_vm3, %v10648_v53  ;;  %v9053_v5 = vpack.c.bf16 %v5024_v62, %v5024_v62  ;;  %v5025_v6 = vmax.f32 %v4135_v63, 0.0  ;;  %10248 = vmatmul.mubr.msk.bf16.gmra.mrb[64].mxu1 %vm1960_vm3, %v10649_v56  ;;  %v10655_v60 = vld [vmem:[%s10997_s21 + $0x668] sm:$0xff]  }
 0x2c5   : > { %9763 = vmatprep.mubr.msk.bf16.mxu0 %vm10855_vm1, %v10854_v0  ;;  %10251 = vmatprep.mubr.msk.bf16.mxu1 %vm10855_vm1, %v10854_v0 }
 0x2c6   : > { %7211 = vst.msk [vmem:[%s11252_s23 + $0x1a8] sm:$0xf] %vm7104_vm4, %v8809_v3  ;;  %v8810_v7 = vpack.c.bf16 %v4781_v4, %v4781_v4  ;;  %7455 = vst.msk [vmem:[%s11252_s23 + $0x578] sm:$0xf] %vm7104_vm4, %v9053_v5  ;;  %v9054_v9 = vpack.c.bf16 %v5025_v6, %v5025_v6 }
 0x2c7   : > { %v3163_v10 = vpop.f32.mrb[216].mxu0  ;;  %v4139_v11 = vpop.f32.mrb[216].mxu1 }
 0x2c8   : > { %7212 = vst.msk [vmem:[%s11252_s23 + $0x1ac] sm:$0xf] %vm7104_vm4, %v8810_v7  ;;  %7456 = vst.msk [vmem:[%s11252_s23 + $0x57c] sm:$0xf] %vm7104_vm4, %v9054_v9  ;;  %v3164_v12 = vadd.f32 %v12279_v2, %v3163_v10  ;;  %v9657_v13 = vpop.f32.mrb[217].mxu0  ;;  %v4140_v15 = vadd.f32 %v12279_v2, %v4139_v11  ;;  %v10145_v16 = vpop.f32.mrb[217].mxu1 }
 0x2c9   : > { %v3166_v18 = vpop.f32.mrb[218].mxu0  ;;  %v4142_v19 = vpop.f32.mrb[218].mxu1 }
 0x2ca   : > { %v4782_v20 = vmax.f32 %v3164_v12, 0.0  ;;  %v3167_v8 = vadd.f32 %v12279_v2, %v3166_v18  ;;  %v9658_v21 = vpop.f32.mrb[219].mxu0  ;;  %v5026_v22 = vmax.f32 %v4140_v15, 0.0  ;;  %v4143_v23 = vadd.f32 %v12279_v2, %v4142_v19  ;;  %v10146_v24 = vpop.f32.mrb[219].mxu1  ;;  %v10656_v18 = vld [vmem:[%s10997_s21 + $0x2a0] sm:$0xff]  }
 0x2cc   : > { %v8811_v25 = vpack.c.bf16 %v4782_v20, %v4782_v20  ;;  %v4783_v26 = vmax.f32 %v3167_v8, 0.0  ;;  %9764 = vmatmul.mubr.msk.bf16.gmra.mrb[68].mxu0 %vm1960_vm3, %v10650_v14  ;;  %v9055_v27 = vpack.c.bf16 %v5026_v22, %v5026_v22  ;;  %v5027_v28 = vmax.f32 %v4143_v23, 0.0  ;;  %10252 = vmatmul.mubr.msk.bf16.gmra.mrb[68].mxu1 %vm1960_vm3, %v10651_v17  ;;  %v10657_v8 = vld [vmem:[%s10997_s21 + $0x670] sm:$0xff]  }
 0x2cd   : > { %9767 = vmatprep.mubr.msk.bf16.mxu0 %vm10855_vm1, %v10854_v0  ;;  %10255 = vmatprep.mubr.msk.bf16.mxu1 %vm10855_vm1, %v10854_v0 }
 0x2ce   : > { %7213 = vst.msk [vmem:[%s11252_s23 + $0x1b0] sm:$0xf] %vm7104_vm4, %v8811_v25  ;;  %v8812_v29 = vpack.c.bf16 %v4783_v26, %v4783_v26  ;;  %7457 = vst.msk [vmem:[%s11252_s23 + $0x580] sm:$0xf] %vm7104_vm4, %v9055_v27  ;;  %v9056_v30 = vpack.c.bf16 %v5027_v28, %v5027_v28 }
 0x2cf   : > { %v3171_v31 = vpop.f32.mrb[220].mxu0  ;;  %v4147_v32 = vpop.f32.mrb[220].mxu1 }
 0x2d0   : > { %7214 = vst.msk [vmem:[%s11252_s23 + $0x1b4] sm:$0xf] %vm7104_vm4, %v8812_v29  ;;  %7458 = vst.msk [vmem:[%s11252_s23 + $0x584] sm:$0xf] %vm7104_vm4, %v9056_v30  ;;  %v3172_v33 = vadd.f32 %v12279_v2, %v3171_v31  ;;  %v9661_v34 = vpop.f32.mrb[221].mxu0  ;;  %v4148_v36 = vadd.f32 %v12279_v2, %v4147_v32  ;;  %v10149_v37 = vpop.f32.mrb[221].mxu1 }
 0x2d1   : > { %v3174_v39 = vpop.f32.mrb[222].mxu0  ;;  %v4150_v40 = vpop.f32.mrb[222].mxu1 }
 0x2d2   : > { %v4784_v41 = vmax.f32 %v3172_v33, 0.0  ;;  %v3175_v42 = vadd.f32 %v12279_v2, %v3174_v39  ;;  %v9662_v43 = vpop.f32.mrb[223].mxu0  ;;  %v5028_v44 = vmax.f32 %v4148_v36, 0.0  ;;  %v4151_v45 = vadd.f32 %v12279_v2, %v4150_v40  ;;  %v10150_v46 = vpop.f32.mrb[223].mxu1  ;;  %v10658_v39 = vld [vmem:[%s10997_s21 + $0x2a8] sm:$0xff]  }
 0x2d4   : > { %v8813_v47 = vpack.c.bf16 %v4784_v41, %v4784_v41  ;;  %v4785_v48 = vmax.f32 %v3175_v42, 0.0  ;;  %9768 = vmatmul.mubr.msk.bf16.gmra.mrb[72].mxu0 %vm1960_vm3, %v10652_v35  ;;  %v9057_v49 = vpack.c.bf16 %v5028_v44, %v5028_v44  ;;  %v5029_v50 = vmax.f32 %v4151_v45, 0.0  ;;  %10256 = vmatmul.mubr.msk.bf16.gmra.mrb[72].mxu1 %vm1960_vm3, %v10653_v38  ;;  %v10659_v42 = vld [vmem:[%s10997_s21 + $0x678] sm:$0xff]  }
 0x2d5   : > { %9771 = vmatprep.mubr.msk.bf16.mxu0 %vm10855_vm1, %v10854_v0  ;;  %10259 = vmatprep.mubr.msk.bf16.mxu1 %vm10855_vm1, %v10854_v0 }
 0x2d6   : > { %7215 = vst.msk [vmem:[%s11252_s23 + $0x1b8] sm:$0xf] %vm7104_vm4, %v8813_v47  ;;  %v8814_v51 = vpack.c.bf16 %v4785_v48, %v4785_v48  ;;  %7459 = vst.msk [vmem:[%s11252_s23 + $0x588] sm:$0xf] %vm7104_vm4, %v9057_v49  ;;  %v9058_v52 = vpack.c.bf16 %v5029_v50, %v5029_v50 }
 0x2d7   : > { %v3179_v53 = vpop.f32.mrb[224].mxu0  ;;  %v4155_v54 = vpop.f32.mrb[224].mxu1 }
 0x2d8   : > { %7216 = vst.msk [vmem:[%s11252_s23 + $0x1bc] sm:$0xf] %vm7104_vm4, %v8814_v51  ;;  %7460 = vst.msk [vmem:[%s11252_s23 + $0x58c] sm:$0xf] %vm7104_vm4, %v9058_v52  ;;  %v3180_v55 = vadd.f32 %v12279_v2, %v3179_v53  ;;  %v9665_v56 = vpop.f32.mrb[225].mxu0  ;;  %v4156_v58 = vadd.f32 %v12279_v2, %v4155_v54  ;;  %v10153_v59 = vpop.f32.mrb[225].mxu1 }
 0x2d9   : > { %v3182_v61 = vpop.f32.mrb[226].mxu0  ;;  %v4158_v62 = vpop.f32.mrb[226].mxu1 }
 0x2da   : > { %v4786_v63 = vmax.f32 %v3180_v55, 0.0  ;;  %v3183_v1 = vadd.f32 %v12279_v2, %v3182_v61  ;;  %v9666_v3 = vpop.f32.mrb[227].mxu0  ;;  %v5030_v4 = vmax.f32 %v4156_v58, 0.0  ;;  %v4159_v5 = vadd.f32 %v12279_v2, %v4158_v62  ;;  %v10154_v6 = vpop.f32.mrb[227].mxu1  ;;  %v10660_v61 = vld [vmem:[%s10997_s21 + $0x2b0] sm:$0xff]  }
 0x2dc   : > { %v8815_v7 = vpack.c.bf16 %v4786_v63, %v4786_v63  ;;  %v4787_v9 = vmax.f32 %v3183_v1, 0.0  ;;  %9772 = vmatmul.mubr.msk.bf16.gmra.mrb[76].mxu0 %vm1960_vm3, %v10654_v57  ;;  %v9059_v10 = vpack.c.bf16 %v5030_v4, %v5030_v4  ;;  %v5031_v11 = vmax.f32 %v4159_v5, 0.0  ;;  %10260 = vmatmul.mubr.msk.bf16.gmra.mrb[76].mxu1 %vm1960_vm3, %v10655_v60  ;;  %v10661_v1 = vld [vmem:[%s10997_s21 + $0x680] sm:$0xff]  }
 0x2dd   : > { %9775 = vmatprep.mubr.msk.bf16.mxu0 %vm10855_vm1, %v10854_v0  ;;  %10263 = vmatprep.mubr.msk.bf16.mxu1 %vm10855_vm1, %v10854_v0 }
 0x2de   : > { %7217 = vst.msk [vmem:[%s11252_s23 + $0x1c0] sm:$0xf] %vm7104_vm4, %v8815_v7  ;;  %v8816_v12 = vpack.c.bf16 %v4787_v9, %v4787_v9  ;;  %7461 = vst.msk [vmem:[%s11252_s23 + $0x590] sm:$0xf] %vm7104_vm4, %v9059_v10  ;;  %v9060_v13 = vpack.c.bf16 %v5031_v11, %v5031_v11 }
 0x2df   : > { %v3187_v14 = vpop.f32.mrb[228].mxu0  ;;  %v4163_v15 = vpop.f32.mrb[228].mxu1 }
 0x2e0   : > { %7218 = vst.msk [vmem:[%s11252_s23 + $0x1c4] sm:$0xf] %vm7104_vm4, %v8816_v12  ;;  %7462 = vst.msk [vmem:[%s11252_s23 + $0x594] sm:$0xf] %vm7104_vm4, %v9060_v13  ;;  %v3188_v16 = vadd.f32 %v12279_v2, %v3187_v14  ;;  %v9669_v17 = vpop.f32.mrb[229].mxu0  ;;  %v4164_v19 = vadd.f32 %v12279_v2, %v4163_v15  ;;  %v10157_v20 = vpop.f32.mrb[229].mxu1 }
 0x2e1   : > { %v3190_v21 = vpop.f32.mrb[230].mxu0  ;;  %v4166_v22 = vpop.f32.mrb[230].mxu1 }
 0x2e2   : > { %v4788_v23 = vmax.f32 %v3188_v16, 0.0  ;;  %v3191_v24 = vadd.f32 %v12279_v2, %v3190_v21  ;;  %v9670_v25 = vpop.f32.mrb[231].mxu0  ;;  %v5032_v26 = vmax.f32 %v4164_v19, 0.0  ;;  %v4167_v27 = vadd.f32 %v12279_v2, %v4166_v22  ;;  %v10158_v28 = vpop.f32.mrb[231].mxu1  ;;  %v10662_v21 = vld [vmem:[%s10997_s21 + $0x2b8] sm:$0xff]  }
 0x2e4   : > { %v8817_v29 = vpack.c.bf16 %v4788_v23, %v4788_v23  ;;  %v4789_v30 = vmax.f32 %v3191_v24, 0.0  ;;  %9776 = vmatmul.mubr.msk.bf16.gmra.mrb[80].mxu0 %vm1960_vm3, %v10656_v18  ;;  %v9061_v31 = vpack.c.bf16 %v5032_v26, %v5032_v26  ;;  %v5033_v32 = vmax.f32 %v4167_v27, 0.0  ;;  %10264 = vmatmul.mubr.msk.bf16.gmra.mrb[80].mxu1 %vm1960_vm3, %v10657_v8  ;;  %v10663_v24 = vld [vmem:[%s10997_s21 + $0x688] sm:$0xff]  }
 0x2e5   : > { %9779 = vmatprep.mubr.msk.bf16.mxu0 %vm10855_vm1, %v10854_v0  ;;  %10267 = vmatprep.mubr.msk.bf16.mxu1 %vm10855_vm1, %v10854_v0 }
 0x2e6   : > { %7219 = vst.msk [vmem:[%s11252_s23 + $0x1c8] sm:$0xf] %vm7104_vm4, %v8817_v29  ;;  %v8818_v33 = vpack.c.bf16 %v4789_v30, %v4789_v30  ;;  %7463 = vst.msk [vmem:[%s11252_s23 + $0x598] sm:$0xf] %vm7104_vm4, %v9061_v31  ;;  %v9062_v34 = vpack.c.bf16 %v5033_v32, %v5033_v32 }
 0x2e7   : > { %v3195_v35 = vpop.f32.mrb[232].mxu0  ;;  %v4171_v36 = vpop.f32.mrb[232].mxu1 }
 0x2e8   : > { %7220 = vst.msk [vmem:[%s11252_s23 + $0x1cc] sm:$0xf] %vm7104_vm4, %v8818_v33  ;;  %7464 = vst.msk [vmem:[%s11252_s23 + $0x59c] sm:$0xf] %vm7104_vm4, %v9062_v34  ;;  %v3196_v37 = vadd.f32 %v12279_v2, %v3195_v35  ;;  %v9673_v38 = vpop.f32.mrb[233].mxu0  ;;  %v4172_v40 = vadd.f32 %v12279_v2, %v4171_v36  ;;  %v10161_v41 = vpop.f32.mrb[233].mxu1 }
 0x2e9   : > { %v3198_v43 = vpop.f32.mrb[234].mxu0  ;;  %v4174_v44 = vpop.f32.mrb[234].mxu1 }
 0x2ea   : > { %v4790_v45 = vmax.f32 %v3196_v37, 0.0  ;;  %v3199_v46 = vadd.f32 %v12279_v2, %v3198_v43  ;;  %v9674_v47 = vpop.f32.mrb[235].mxu0  ;;  %v5034_v48 = vmax.f32 %v4172_v40, 0.0  ;;  %v4175_v49 = vadd.f32 %v12279_v2, %v4174_v44  ;;  %v10162_v50 = vpop.f32.mrb[235].mxu1  ;;  %v10664_v43 = vld [vmem:[%s10997_s21 + $0x2c0] sm:$0xff]  }
 0x2ec   : > { %v8819_v51 = vpack.c.bf16 %v4790_v45, %v4790_v45  ;;  %v4791_v52 = vmax.f32 %v3199_v46, 0.0  ;;  %9780 = vmatmul.mubr.msk.bf16.gmra.mrb[84].mxu0 %vm1960_vm3, %v10658_v39  ;;  %v9063_v53 = vpack.c.bf16 %v5034_v48, %v5034_v48  ;;  %v5035_v54 = vmax.f32 %v4175_v49, 0.0  ;;  %10268 = vmatmul.mubr.msk.bf16.gmra.mrb[84].mxu1 %vm1960_vm3, %v10659_v42  ;;  %v10665_v46 = vld [vmem:[%s10997_s21 + $0x690] sm:$0xff]  }
 0x2ed   : > { %9783 = vmatprep.mubr.msk.bf16.mxu0 %vm10855_vm1, %v10854_v0  ;;  %10271 = vmatprep.mubr.msk.bf16.mxu1 %vm10855_vm1, %v10854_v0 }
 0x2ee   : > { %7221 = vst.msk [vmem:[%s11252_s23 + $0x1d0] sm:$0xf] %vm7104_vm4, %v8819_v51  ;;  %v8820_v55 = vpack.c.bf16 %v4791_v52, %v4791_v52  ;;  %7465 = vst.msk [vmem:[%s11252_s23 + $0x5a0] sm:$0xf] %vm7104_vm4, %v9063_v53  ;;  %v9064_v56 = vpack.c.bf16 %v5035_v54, %v5035_v54 }
 0x2ef   : > { %v3203_v57 = vpop.f32.mrb[236].mxu0  ;;  %v4179_v58 = vpop.f32.mrb[236].mxu1 }
 0x2f0   : > { %7222 = vst.msk [vmem:[%s11252_s23 + $0x1d4] sm:$0xf] %vm7104_vm4, %v8820_v55  ;;  %7466 = vst.msk [vmem:[%s11252_s23 + $0x5a4] sm:$0xf] %vm7104_vm4, %v9064_v56  ;;  %v3204_v59 = vadd.f32 %v12279_v2, %v3203_v57  ;;  %v9677_v60 = vpop.f32.mrb[237].mxu0  ;;  %v4180_v62 = vadd.f32 %v12279_v2, %v4179_v58  ;;  %v10165_v63 = vpop.f32.mrb[237].mxu1 }
 0x2f1   : > { %v3206_v3 = vpop.f32.mrb[238].mxu0  ;;  %v4182_v4 = vpop.f32.mrb[238].mxu1 }
 0x2f2   : > { %v4792_v5 = vmax.f32 %v3204_v59, 0.0  ;;  %v3207_v6 = vadd.f32 %v12279_v2, %v3206_v3  ;;  %v9678_v7 = vpop.f32.mrb[239].mxu0  ;;  %v5036_v9 = vmax.f32 %v4180_v62, 0.0  ;;  %v4183_v10 = vadd.f32 %v12279_v2, %v4182_v4  ;;  %v10166_v11 = vpop.f32.mrb[239].mxu1  ;;  %v10666_v3 = vld [vmem:[%s10997_s21 + $0x2c8] sm:$0xff]  }
 0x2f4   : > { %v8821_v12 = vpack.c.bf16 %v4792_v5, %v4792_v5  ;;  %v4793_v13 = vmax.f32 %v3207_v6, 0.0  ;;  %9784 = vmatmul.mubr.msk.bf16.gmra.mrb[88].mxu0 %vm1960_vm3, %v10660_v61  ;;  %v9065_v14 = vpack.c.bf16 %v5036_v9, %v5036_v9  ;;  %v5037_v15 = vmax.f32 %v4183_v10, 0.0  ;;  %10272 = vmatmul.mubr.msk.bf16.gmra.mrb[88].mxu1 %vm1960_vm3, %v10661_v1  ;;  %v10667_v6 = vld [vmem:[%s10997_s21 + $0x698] sm:$0xff]  }
 0x2f5   : > { %9787 = vmatprep.mubr.msk.bf16.mxu0 %vm10855_vm1, %v10854_v0  ;;  %10275 = vmatprep.mubr.msk.bf16.mxu1 %vm10855_vm1, %v10854_v0 }
 0x2f6   : > { %7223 = vst.msk [vmem:[%s11252_s23 + $0x1d8] sm:$0xf] %vm7104_vm4, %v8821_v12  ;;  %v8822_v16 = vpack.c.bf16 %v4793_v13, %v4793_v13  ;;  %7467 = vst.msk [vmem:[%s11252_s23 + $0x5a8] sm:$0xf] %vm7104_vm4, %v9065_v14  ;;  %v9066_v17 = vpack.c.bf16 %v5037_v15, %v5037_v15 }
 0x2f7   : > { %v3211_v18 = vpop.f32.mrb[240].mxu0  ;;  %v4187_v19 = vpop.f32.mrb[240].mxu1 }
 0x2f8   : > { %7224 = vst.msk [vmem:[%s11252_s23 + $0x1dc] sm:$0xf] %vm7104_vm4, %v8822_v16  ;;  %7468 = vst.msk [vmem:[%s11252_s23 + $0x5ac] sm:$0xf] %vm7104_vm4, %v9066_v17  ;;  %v3212_v20 = vadd.f32 %v12279_v2, %v3211_v18  ;;  %v9681_v8 = vpop.f32.mrb[241].mxu0  ;;  %v4188_v22 = vadd.f32 %v12279_v2, %v4187_v19  ;;  %v10169_v23 = vpop.f32.mrb[241].mxu1 }
 0x2f9   : > { %v3214_v25 = vpop.f32.mrb[242].mxu0  ;;  %v4190_v26 = vpop.f32.mrb[242].mxu1 }
 0x2fa   : > { %v4794_v27 = vmax.f32 %v3212_v20, 0.0  ;;  %v3215_v28 = vadd.f32 %v12279_v2, %v3214_v25  ;;  %v9682_v29 = vpop.f32.mrb[243].mxu0  ;;  %v5038_v30 = vmax.f32 %v4188_v22, 0.0  ;;  %v4191_v31 = vadd.f32 %v12279_v2, %v4190_v26  ;;  %v10170_v32 = vpop.f32.mrb[243].mxu1  ;;  %v10668_v25 = vld [vmem:[%s10997_s21 + $0x2d0] sm:$0xff]  }
 0x2fc   : > { %v8823_v33 = vpack.c.bf16 %v4794_v27, %v4794_v27  ;;  %v4795_v34 = vmax.f32 %v3215_v28, 0.0  ;;  %9788 = vmatmul.mubr.msk.bf16.gmra.mrb[92].mxu0 %vm1960_vm3, %v10662_v21  ;;  %v9067_v35 = vpack.c.bf16 %v5038_v30, %v5038_v30  ;;  %v5039_v36 = vmax.f32 %v4191_v31, 0.0  ;;  %10276 = vmatmul.mubr.msk.bf16.gmra.mrb[92].mxu1 %vm1960_vm3, %v10663_v24  ;;  %v10669_v28 = vld [vmem:[%s10997_s21 + $0x6a0] sm:$0xff]  }
 0x2fd   : > { %9791 = vmatprep.mubr.msk.bf16.mxu0 %vm10855_vm1, %v10854_v0  ;;  %10279 = vmatprep.mubr.msk.bf16.mxu1 %vm10855_vm1, %v10854_v0 }
 0x2fe   : > { %7225 = vst.msk [vmem:[%s11252_s23 + $0x1e0] sm:$0xf] %vm7104_vm4, %v8823_v33  ;;  %v8824_v37 = vpack.c.bf16 %v4795_v34, %v4795_v34  ;;  %7469 = vst.msk [vmem:[%s11252_s23 + $0x5b0] sm:$0xf] %vm7104_vm4, %v9067_v35  ;;  %v9068_v38 = vpack.c.bf16 %v5039_v36, %v5039_v36 }
 0x2ff   : > { %v3219_v39 = vpop.f32.mrb[244].mxu0  ;;  %v4195_v40 = vpop.f32.mrb[244].mxu1 }
 0x300   : > { %7226 = vst.msk [vmem:[%s11252_s23 + $0x1e4] sm:$0xf] %vm7104_vm4, %v8824_v37  ;;  %7470 = vst.msk [vmem:[%s11252_s23 + $0x5b4] sm:$0xf] %vm7104_vm4, %v9068_v38  ;;  %v3220_v41 = vadd.f32 %v12279_v2, %v3219_v39  ;;  %v9685_v42 = vpop.f32.mrb[245].mxu0  ;;  %v4196_v44 = vadd.f32 %v12279_v2, %v4195_v40  ;;  %v10173_v45 = vpop.f32.mrb[245].mxu1 }
 0x301   : > { %v3222_v47 = vpop.f32.mrb[246].mxu0  ;;  %v4198_v48 = vpop.f32.mrb[246].mxu1 }
 0x302   : > { %v4796_v49 = vmax.f32 %v3220_v41, 0.0  ;;  %v3223_v50 = vadd.f32 %v12279_v2, %v3222_v47  ;;  %v9686_v51 = vpop.f32.mrb[247].mxu0  ;;  %v5040_v52 = vmax.f32 %v4196_v44, 0.0  ;;  %v4199_v53 = vadd.f32 %v12279_v2, %v4198_v48  ;;  %v10174_v54 = vpop.f32.mrb[247].mxu1  ;;  %v10670_v47 = vld [vmem:[%s10997_s21 + $0x2d8] sm:$0xff]  }
 0x304   : > { %v8825_v55 = vpack.c.bf16 %v4796_v49, %v4796_v49  ;;  %v4797_v56 = vmax.f32 %v3223_v50, 0.0  ;;  %9792 = vmatmul.mubr.msk.bf16.gmra.mrb[96].mxu0 %vm1960_vm3, %v10664_v43  ;;  %v9069_v57 = vpack.c.bf16 %v5040_v52, %v5040_v52  ;;  %v5041_v58 = vmax.f32 %v4199_v53, 0.0  ;;  %10280 = vmatmul.mubr.msk.bf16.gmra.mrb[96].mxu1 %vm1960_vm3, %v10665_v46  ;;  %v10671_v50 = vld [vmem:[%s10997_s21 + $0x6a8] sm:$0xff]  }
 0x305   : > { %9795 = vmatprep.mubr.msk.bf16.mxu0 %vm10855_vm1, %v10854_v0  ;;  %10283 = vmatprep.mubr.msk.bf16.mxu1 %vm10855_vm1, %v10854_v0 }
 0x306   : > { %7227 = vst.msk [vmem:[%s11252_s23 + $0x1e8] sm:$0xf] %vm7104_vm4, %v8825_v55  ;;  %v8826_v59 = vpack.c.bf16 %v4797_v56, %v4797_v56  ;;  %7471 = vst.msk [vmem:[%s11252_s23 + $0x5b8] sm:$0xf] %vm7104_vm4, %v9069_v57  ;;  %v9070_v60 = vpack.c.bf16 %v5041_v58, %v5041_v58 }
 0x307   : > { %v3227_v61 = vpop.f32.mrb[248].mxu0  ;;  %v4203_v62 = vpop.f32.mrb[248].mxu1 }
 0x308   : > { %7228 = vst.msk [vmem:[%s11252_s23 + $0x1ec] sm:$0xf] %vm7104_vm4, %v8826_v59  ;;  %7472 = vst.msk [vmem:[%s11252_s23 + $0x5bc] sm:$0xf] %vm7104_vm4, %v9070_v60  ;;  %v3228_v63 = vadd.f32 %v12279_v2, %v3227_v61  ;;  %v9689_v1 = vpop.f32.mrb[249].mxu0  ;;  %v4204_v4 = vadd.f32 %v12279_v2, %v4203_v62  ;;  %v10177_v5 = vpop.f32.mrb[249].mxu1 }
 0x309   : > { %v3230_v7 = vpop.f32.mrb[250].mxu0  ;;  %v4206_v9 = vpop.f32.mrb[250].mxu1 }
 0x30a   : > { %v4798_v10 = vmax.f32 %v3228_v63, 0.0  ;;  %v3231_v11 = vadd.f32 %v12279_v2, %v3230_v7  ;;  %v9690_v12 = vpop.f32.mrb[251].mxu0  ;;  %v5042_v13 = vmax.f32 %v4204_v4, 0.0  ;;  %v4207_v14 = vadd.f32 %v12279_v2, %v4206_v9  ;;  %v10178_v15 = vpop.f32.mrb[251].mxu1  ;;  %v10672_v7 = vld [vmem:[%s10997_s21 + $0x2e0] sm:$0xff]  }
 0x30c   : > { %v8827_v16 = vpack.c.bf16 %v4798_v10, %v4798_v10  ;;  %v4799_v17 = vmax.f32 %v3231_v11, 0.0  ;;  %9796 = vmatmul.mubr.msk.bf16.gmra.mrb[100].mxu0 %vm1960_vm3, %v10666_v3  ;;  %v9071_v18 = vpack.c.bf16 %v5042_v13, %v5042_v13  ;;  %v5043_v19 = vmax.f32 %v4207_v14, 0.0  ;;  %10284 = vmatmul.mubr.msk.bf16.gmra.mrb[100].mxu1 %vm1960_vm3, %v10667_v6  ;;  %v10673_v11 = vld [vmem:[%s10997_s21 + $0x6b0] sm:$0xff]  }
 0x30d   : > { %9799 = vmatprep.mubr.msk.bf16.mxu0 %vm10855_vm1, %v10854_v0  ;;  %10287 = vmatprep.mubr.msk.bf16.mxu1 %vm10855_vm1, %v10854_v0 }
 0x30e   : > { %7229 = vst.msk [vmem:[%s11252_s23 + $0x1f0] sm:$0xf] %vm7104_vm4, %v8827_v16  ;;  %v8828_v20 = vpack.c.bf16 %v4799_v17, %v4799_v17  ;;  %7473 = vst.msk [vmem:[%s11252_s23 + $0x5c0] sm:$0xf] %vm7104_vm4, %v9071_v18  ;;  %v9072_v8 = vpack.c.bf16 %v5043_v19, %v5043_v19 }
 0x30f   : > { %v3235_v21 = vpop.f32.mrb[252].mxu0  ;;  %v4211_v22 = vpop.f32.mrb[252].mxu1 }
 0x310   : > { %7230 = vst.msk [vmem:[%s11252_s23 + $0x1f4] sm:$0xf] %vm7104_vm4, %v8828_v20  ;;  %7474 = vst.msk [vmem:[%s11252_s23 + $0x5c4] sm:$0xf] %vm7104_vm4, %v9072_v8  ;;  %v3236_v23 = vadd.f32 %v12279_v2, %v3235_v21  ;;  %v9693_v24 = vpop.f32.mrb[253].mxu0  ;;  %v4212_v26 = vadd.f32 %v12279_v2, %v4211_v22  ;;  %v10181_v27 = vpop.f32.mrb[253].mxu1 }
 0x311   : > { %v3238_v29 = vpop.f32.mrb[254].mxu0  ;;  %v4214_v30 = vpop.f32.mrb[254].mxu1 }
 0x312   : > { %v4800_v31 = vmax.f32 %v3236_v23, 0.0  ;;  %v3239_v32 = vadd.f32 %v12279_v2, %v3238_v29  ;;  %v9694_v33 = vpop.f32.mrb[255].mxu0  ;;  %v5044_v34 = vmax.f32 %v4212_v26, 0.0  ;;  %v4215_v35 = vadd.f32 %v12279_v2, %v4214_v30  ;;  %v10182_v36 = vpop.f32.mrb[255].mxu1  ;;  %v10674_v29 = vld [vmem:[%s10997_s21 + $0x2e8] sm:$0xff]  }
 0x314   : > { %v8829_v37 = vpack.c.bf16 %v4800_v31, %v4800_v31  ;;  %v4801_v38 = vmax.f32 %v3239_v32, 0.0  ;;  %9800 = vmatmul.mubr.msk.bf16.gmra.mrb[104].mxu0 %vm1960_vm3, %v10668_v25  ;;  %v9073_v39 = vpack.c.bf16 %v5044_v34, %v5044_v34  ;;  %v5045_v40 = vmax.f32 %v4215_v35, 0.0  ;;  %10288 = vmatmul.mubr.msk.bf16.gmra.mrb[104].mxu1 %vm1960_vm3, %v10669_v28  ;;  %v10675_v32 = vld [vmem:[%s10997_s21 + $0x6b8] sm:$0xff]  }
 0x315   : > { %9803 = vmatprep.mubr.msk.bf16.mxu0 %vm10855_vm1, %v10854_v0  ;;  %10291 = vmatprep.mubr.msk.bf16.mxu1 %vm10855_vm1, %v10854_v0 }
 0x316   : > { %7231 = vst.msk [vmem:[%s11252_s23 + $0x1f8] sm:$0xf] %vm7104_vm4, %v8829_v37  ;;  %v8830_v41 = vpack.c.bf16 %v4801_v38, %v4801_v38  ;;  %7475 = vst.msk [vmem:[%s11252_s23 + $0x5c8] sm:$0xf] %vm7104_vm4, %v9073_v39  ;;  %v9074_v42 = vpack.c.bf16 %v5045_v40, %v5045_v40 }
 0x317   : > { %v3243_v43 = vpop.f32.mrb[0].mxu0  ;;  %v4219_v44 = vpop.f32.mrb[0].mxu1 }
 0x318   : > { %7232 = vst.msk [vmem:[%s11252_s23 + $0x1fc] sm:$0xf] %vm7104_vm4, %v8830_v41  ;;  %7476 = vst.msk [vmem:[%s11252_s23 + $0x5cc] sm:$0xf] %vm7104_vm4, %v9074_v42  ;;  %v3244_v45 = vadd.f32 %v12279_v2, %v3243_v43  ;;  %v9697_v46 = vpop.f32.mrb[1].mxu0  ;;  %v4220_v48 = vadd.f32 %v12279_v2, %v4219_v44  ;;  %v10185_v49 = vpop.f32.mrb[1].mxu1 }
 0x319   : > { %v3246_v51 = vpop.f32.mrb[2].mxu0  ;;  %v4222_v52 = vpop.f32.mrb[2].mxu1 }
 0x31a   : > { %v4802_v53 = vmax.f32 %v3244_v45, 0.0  ;;  %v3247_v54 = vadd.f32 %v12279_v2, %v3246_v51  ;;  %v9698_v55 = vpop.f32.mrb[3].mxu0  ;;  %v5046_v56 = vmax.f32 %v4220_v48, 0.0  ;;  %v4223_v57 = vadd.f32 %v12279_v2, %v4222_v52  ;;  %v10186_v58 = vpop.f32.mrb[3].mxu1  ;;  %v10676_v51 = vld [vmem:[%s10997_s21 + $0x2f0] sm:$0xff]  }
 0x31c   : > { %v8831_v59 = vpack.c.bf16 %v4802_v53, %v4802_v53  ;;  %v4803_v60 = vmax.f32 %v3247_v54, 0.0  ;;  %9804 = vmatmul.mubr.msk.bf16.gmra.mrb[108].mxu0 %vm1960_vm3, %v10670_v47  ;;  %v9075_v61 = vpack.c.bf16 %v5046_v56, %v5046_v56  ;;  %v5047_v62 = vmax.f32 %v4223_v57, 0.0  ;;  %10292 = vmatmul.mubr.msk.bf16.gmra.mrb[108].mxu1 %vm1960_vm3, %v10671_v50  ;;  %v10677_v54 = vld [vmem:[%s10997_s21 + $0x6c0] sm:$0xff]  }
 0x31d   : > { %9807 = vmatprep.mubr.msk.bf16.mxu0 %vm10855_vm1, %v10854_v0  ;;  %10295 = vmatprep.mubr.msk.bf16.mxu1 %vm10855_vm1, %v10854_v0 }
 0x31e   : > { %7233 = vst.msk [vmem:[%s11252_s23 + $0x200] sm:$0xf] %vm7104_vm4, %v8831_v59  ;;  %v8832_v63 = vpack.c.bf16 %v4803_v60, %v4803_v60  ;;  %7477 = vst.msk [vmem:[%s11252_s23 + $0x5d0] sm:$0xf] %vm7104_vm4, %v9075_v61  ;;  %v9076_v1 = vpack.c.bf16 %v5047_v62, %v5047_v62 }
 0x31f   : > { %v3251_v3 = vpop.f32.mrb[4].mxu0  ;;  %v4227_v4 = vpop.f32.mrb[4].mxu1 }
 0x320   : > { %7234 = vst.msk [vmem:[%s11252_s23 + $0x204] sm:$0xf] %vm7104_vm4, %v8832_v63  ;;  %7478 = vst.msk [vmem:[%s11252_s23 + $0x5d4] sm:$0xf] %vm7104_vm4, %v9076_v1  ;;  %v3252_v5 = vadd.f32 %v12279_v2, %v3251_v3  ;;  %v9701_v6 = vpop.f32.mrb[5].mxu0  ;;  %v4228_v9 = vadd.f32 %v12279_v2, %v4227_v4  ;;  %v10189_v10 = vpop.f32.mrb[5].mxu1 }
 0x321   : > { %v3254_v12 = vpop.f32.mrb[6].mxu0  ;;  %v4230_v13 = vpop.f32.mrb[6].mxu1 }
 0x322   : > { %v4804_v14 = vmax.f32 %v3252_v5, 0.0  ;;  %v3255_v15 = vadd.f32 %v12279_v2, %v3254_v12  ;;  %v9702_v16 = vpop.f32.mrb[7].mxu0  ;;  %v5048_v17 = vmax.f32 %v4228_v9, 0.0  ;;  %v4231_v18 = vadd.f32 %v12279_v2, %v4230_v13  ;;  %v10190_v19 = vpop.f32.mrb[7].mxu1  ;;  %v10678_v12 = vld [vmem:[%s10997_s21 + $0x2f8] sm:$0xff]  }
 0x324   : > { %v8833_v20 = vpack.c.bf16 %v4804_v14, %v4804_v14  ;;  %v4805_v8 = vmax.f32 %v3255_v15, 0.0  ;;  %9808 = vmatmul.mubr.msk.bf16.gmra.mrb[112].mxu0 %vm1960_vm3, %v10672_v7  ;;  %v9077_v21 = vpack.c.bf16 %v5048_v17, %v5048_v17  ;;  %v5049_v22 = vmax.f32 %v4231_v18, 0.0  ;;  %10296 = vmatmul.mubr.msk.bf16.gmra.mrb[112].mxu1 %vm1960_vm3, %v10673_v11  ;;  %v10679_v15 = vld [vmem:[%s10997_s21 + $0x6c8] sm:$0xff]  }
 0x325   : > { %9811 = vmatprep.mubr.msk.bf16.mxu0 %vm10855_vm1, %v10854_v0  ;;  %10299 = vmatprep.mubr.msk.bf16.mxu1 %vm10855_vm1, %v10854_v0 }
 0x326   : > { %7235 = vst.msk [vmem:[%s11252_s23 + $0x208] sm:$0xf] %vm7104_vm4, %v8833_v20  ;;  %v8834_v23 = vpack.c.bf16 %v4805_v8, %v4805_v8  ;;  %7479 = vst.msk [vmem:[%s11252_s23 + $0x5d8] sm:$0xf] %vm7104_vm4, %v9077_v21  ;;  %v9078_v24 = vpack.c.bf16 %v5049_v22, %v5049_v22  ;;  %v12625_v21 = vld [vmem:[%s13539_s2] ss:$0 sm:$0xff] }
 0x327   : > { %v3259_v25 = vpop.f32.mrb[8].mxu0  ;;  %v4235_v26 = vpop.f32.mrb[8].mxu1 }
 0x328   : > { %7236 = vst.msk [vmem:[%s11252_s23 + $0x20c] sm:$0xf] %vm7104_vm4, %v8834_v23  ;;  %7480 = vst.msk [vmem:[%s11252_s23 + $0x5dc] sm:$0xf] %vm7104_vm4, %v9078_v24  ;;  %v3260_v27 = vadd.f32 %v12279_v2, %v3259_v25  ;;  %v9705_v28 = vpop.f32.mrb[9].mxu0  ;;  %v4236_v30 = vadd.f32 %v12279_v2, %v4235_v26  ;;  %v10193_v31 = vpop.f32.mrb[9].mxu1 }
 0x329   : > { %v3262_v33 = vpop.f32.mrb[10].mxu0  ;;  %v4238_v34 = vpop.f32.mrb[10].mxu1 }
 0x32a   : > { %v4806_v35 = vmax.f32 %v3260_v27, 0.0  ;;  %v3263_v36 = vadd.f32 %v12279_v2, %v3262_v33  ;;  %v9706_v37 = vpop.f32.mrb[11].mxu0  ;;  %v5050_v38 = vmax.f32 %v4236_v30, 0.0  ;;  %v4239_v39 = vadd.f32 %v12279_v2, %v4238_v34  ;;  %v10194_v40 = vpop.f32.mrb[11].mxu1  ;;  %v10680_v33 = vld [vmem:[%s10997_s21 + $0x300] sm:$0xff]  }
 0x32c   : > { %v8835_v41 = vpack.c.bf16 %v4806_v35, %v4806_v35  ;;  %v4807_v42 = vmax.f32 %v3263_v36, 0.0  ;;  %9812 = vmatmul.mubr.msk.bf16.gmra.mrb[116].mxu0 %vm1960_vm3, %v10674_v29  ;;  %v9079_v43 = vpack.c.bf16 %v5050_v38, %v5050_v38  ;;  %v5051_v44 = vmax.f32 %v4239_v39, 0.0  ;;  %10300 = vmatmul.mubr.msk.bf16.gmra.mrb[116].mxu1 %vm1960_vm3, %v10675_v32  ;;  %v10681_v36 = vld [vmem:[%s10997_s21 + $0x6d0] sm:$0xff]  }
 0x32d   : > { %9815 = vmatprep.mubr.msk.bf16.mxu0 %vm10855_vm1, %v10854_v0  ;;  %10303 = vmatprep.mubr.msk.bf16.mxu1 %vm10855_vm1, %v10854_v0 }
 0x32e   : > { %7237 = vst.msk [vmem:[%s11252_s23 + $0x210] sm:$0xf] %vm7104_vm4, %v8835_v41  ;;  %v8836_v45 = vpack.c.bf16 %v4807_v42, %v4807_v42  ;;  %7481 = vst.msk [vmem:[%s11252_s23 + $0x5e0] sm:$0xf] %vm7104_vm4, %v9079_v43  ;;  %v9080_v46 = vpack.c.bf16 %v5051_v44, %v5051_v44 }
 0x32f   : > { %v3267_v47 = vpop.f32.mrb[12].mxu0  ;;  %v4243_v48 = vpop.f32.mrb[12].mxu1 }
 0x330   : > { %7238 = vst.msk [vmem:[%s11252_s23 + $0x214] sm:$0xf] %vm7104_vm4, %v8836_v45  ;;  %7482 = vst.msk [vmem:[%s11252_s23 + $0x5e4] sm:$0xf] %vm7104_vm4, %v9080_v46  ;;  %v3268_v49 = vadd.f32 %v12279_v2, %v3267_v47  ;;  %v9709_v50 = vpop.f32.mrb[13].mxu0  ;;  %v4244_v52 = vadd.f32 %v12279_v2, %v4243_v48  ;;  %v10197_v53 = vpop.f32.mrb[13].mxu1 }
 0x331   : > { %v3270_v55 = vpop.f32.mrb[14].mxu0  ;;  %v4246_v56 = vpop.f32.mrb[14].mxu1 }
 0x332   : > { %v4808_v57 = vmax.f32 %v3268_v49, 0.0  ;;  %v3271_v58 = vadd.f32 %v12279_v2, %v3270_v55  ;;  %v9710_v59 = vpop.f32.mrb[15].mxu0  ;;  %v5052_v60 = vmax.f32 %v4244_v52, 0.0  ;;  %v4247_v61 = vadd.f32 %v12279_v2, %v4246_v56  ;;  %v10198_v62 = vpop.f32.mrb[15].mxu1  ;;  %v10682_v55 = vld [vmem:[%s10997_s21 + $0x308] sm:$0xff]  }
 0x334   : > { %v8837_v63 = vpack.c.bf16 %v4808_v57, %v4808_v57  ;;  %v4809_v1 = vmax.f32 %v3271_v58, 0.0  ;;  %9816 = vmatmul.mubr.msk.bf16.gmra.mrb[120].mxu0 %vm1960_vm3, %v10676_v51  ;;  %v9081_v3 = vpack.c.bf16 %v5052_v60, %v5052_v60  ;;  %v5053_v4 = vmax.f32 %v4247_v61, 0.0  ;;  %10304 = vmatmul.mubr.msk.bf16.gmra.mrb[120].mxu1 %vm1960_vm3, %v10677_v54  ;;  %v10683_v58 = vld [vmem:[%s10997_s21 + $0x6d8] sm:$0xff]  }
 0x335   : > { %9819 = vmatprep.mubr.msk.bf16.mxu0 %vm10855_vm1, %v10854_v0  ;;  %10307 = vmatprep.mubr.msk.bf16.mxu1 %vm10855_vm1, %v10854_v0 }
 0x336   : > { %7239 = vst.msk [vmem:[%s11252_s23 + $0x218] sm:$0xf] %vm7104_vm4, %v8837_v63  ;;  %v8838_v5 = vpack.c.bf16 %v4809_v1, %v4809_v1  ;;  %7483 = vst.msk [vmem:[%s11252_s23 + $0x5e8] sm:$0xf] %vm7104_vm4, %v9081_v3  ;;  %v9082_v6 = vpack.c.bf16 %v5053_v4, %v5053_v4 }
 0x337   : > { %v3275_v7 = vpop.f32.mrb[16].mxu0  ;;  %v4251_v9 = vpop.f32.mrb[16].mxu1 }
 0x338   : > { %7240 = vst.msk [vmem:[%s11252_s23 + $0x21c] sm:$0xf] %vm7104_vm4, %v8838_v5  ;;  %7484 = vst.msk [vmem:[%s11252_s23 + $0x5ec] sm:$0xf] %vm7104_vm4, %v9082_v6  ;;  %v3276_v10 = vadd.f32 %v12279_v2, %v3275_v7  ;;  %v9713_v11 = vpop.f32.mrb[17].mxu0  ;;  %v4252_v13 = vadd.f32 %v12279_v2, %v4251_v9  ;;  %v10201_v14 = vpop.f32.mrb[17].mxu1 }
 0x339   : > { %v3278_v16 = vpop.f32.mrb[18].mxu0  ;;  %v4254_v17 = vpop.f32.mrb[18].mxu1 }
 0x33a   : > { %v4810_v18 = vmax.f32 %v3276_v10, 0.0  ;;  %v3279_v19 = vadd.f32 %v12279_v2, %v3278_v16  ;;  %v9714_v20 = vpop.f32.mrb[19].mxu0  ;;  %v5054_v8 = vmax.f32 %v4252_v13, 0.0  ;;  %v4255_v22 = vadd.f32 %v12625_v21, %v4254_v17  ;;  %v10202_v23 = vpop.f32.mrb[19].mxu1  ;;  %v10684_v16 = vld [vmem:[%s10997_s21 + $0x310] sm:$0xff]  }
 0x33c   : > { %v8839_v24 = vpack.c.bf16 %v4810_v18, %v4810_v18  ;;  %v4811_v25 = vmax.f32 %v3279_v19, 0.0  ;;  %9820 = vmatmul.mubr.msk.bf16.gmra.mrb[124].mxu0 %vm1960_vm3, %v10678_v12  ;;  %v9083_v26 = vpack.c.bf16 %v5054_v8, %v5054_v8  ;;  %v5055_v2 = vmax.f32 %v4255_v22, 0.0  ;;  %10308 = vmatmul.mubr.msk.bf16.gmra.mrb[124].mxu1 %vm1960_vm3, %v10679_v15  ;;  %v10685_v19 = vld [vmem:[%s10997_s21 + $0x6e0] sm:$0xff]  }
 0x33d   : > { %9823 = vmatprep.mubr.msk.bf16.mxu0 %vm10855_vm1, %v10854_v0  ;;  %10311 = vmatprep.mubr.msk.bf16.mxu1 %vm10855_vm1, %v10854_v0 }
 0x33e   : > { %7241 = vst.msk [vmem:[%s11252_s23 + $0x220] sm:$0xf] %vm7104_vm4, %v8839_v24  ;;  %v8840_v27 = vpack.c.bf16 %v4811_v25, %v4811_v25  ;;  %7485 = vst.msk [vmem:[%s11252_s23 + $0x5f0] sm:$0xf] %vm7104_vm4, %v9083_v26  ;;  %v9084_v28 = vpack.c.bf16 %v5055_v2, %v5055_v2 }
 0x33f   : > { %v3283_v29 = vpop.f32.mrb[20].mxu0  ;;  %v4259_v30 = vpop.f32.mrb[20].mxu1 }
 0x340   : > { %7242 = vst.msk [vmem:[%s11252_s23 + $0x224] sm:$0xf] %vm7104_vm4, %v8840_v27  ;;  %7486 = vst.msk [vmem:[%s11252_s23 + $0x5f4] sm:$0xf] %vm7104_vm4, %v9084_v28  ;;  %v3284_v31 = vadd.f32 %v12625_v21, %v3283_v29  ;;  %v9717_v32 = vpop.f32.mrb[21].mxu0  ;;  %v4260_v34 = vadd.f32 %v12625_v21, %v4259_v30  ;;  %v10205_v35 = vpop.f32.mrb[21].mxu1 }
 0x341   : > { %v3286_v37 = vpop.f32.mrb[22].mxu0  ;;  %v4262_v38 = vpop.f32.mrb[22].mxu1 }
 0x342   : > { %v4812_v39 = vmax.f32 %v3284_v31, 0.0  ;;  %v3287_v40 = vadd.f32 %v12625_v21, %v3286_v37  ;;  %v9718_v41 = vpop.f32.mrb[23].mxu0  ;;  %v5056_v42 = vmax.f32 %v4260_v34, 0.0  ;;  %v4263_v43 = vadd.f32 %v12625_v21, %v4262_v38  ;;  %v10206_v44 = vpop.f32.mrb[23].mxu1  ;;  %v10686_v37 = vld [vmem:[%s10997_s21 + $0x318] sm:$0xff]  }
 0x344   : > { %v8841_v45 = vpack.c.bf16 %v4812_v39, %v4812_v39  ;;  %v4813_v46 = vmax.f32 %v3287_v40, 0.0  ;;  %9824 = vmatmul.mubr.msk.bf16.gmra.mrb[128].mxu0 %vm1960_vm3, %v10680_v33  ;;  %v9085_v47 = vpack.c.bf16 %v5056_v42, %v5056_v42  ;;  %v5057_v48 = vmax.f32 %v4263_v43, 0.0  ;;  %10312 = vmatmul.mubr.msk.bf16.gmra.mrb[128].mxu1 %vm1960_vm3, %v10681_v36  ;;  %v10687_v40 = vld [vmem:[%s10997_s21 + $0x6e8] sm:$0xff]  }
 0x345   : > { %9827 = vmatprep.mubr.msk.bf16.mxu0 %vm10855_vm1, %v10854_v0  ;;  %10315 = vmatprep.mubr.msk.bf16.mxu1 %vm10855_vm1, %v10854_v0 }
 0x346   : > { %7243 = vst.msk [vmem:[%s11252_s23 + $0x228] sm:$0xf] %vm7104_vm4, %v8841_v45  ;;  %v8842_v49 = vpack.c.bf16 %v4813_v46, %v4813_v46  ;;  %7487 = vst.msk [vmem:[%s11252_s23 + $0x5f8] sm:$0xf] %vm7104_vm4, %v9085_v47  ;;  %v9086_v50 = vpack.c.bf16 %v5057_v48, %v5057_v48 }
 0x347   : > { %v3291_v51 = vpop.f32.mrb[24].mxu0  ;;  %v4267_v52 = vpop.f32.mrb[24].mxu1 }
 0x348   : > { %7244 = vst.msk [vmem:[%s11252_s23 + $0x22c] sm:$0xf] %vm7104_vm4, %v8842_v49  ;;  %7488 = vst.msk [vmem:[%s11252_s23 + $0x5fc] sm:$0xf] %vm7104_vm4, %v9086_v50  ;;  %v3292_v53 = vadd.f32 %v12625_v21, %v3291_v51  ;;  %v9721_v54 = vpop.f32.mrb[25].mxu0  ;;  %v4268_v56 = vadd.f32 %v12625_v21, %v4267_v52  ;;  %v10209_v57 = vpop.f32.mrb[25].mxu1 }
 0x349   : > { %v3294_v59 = vpop.f32.mrb[26].mxu0  ;;  %v4270_v60 = vpop.f32.mrb[26].mxu1 }
 0x34a   : > { %v4814_v61 = vmax.f32 %v3292_v53, 0.0  ;;  %v3295_v62 = vadd.f32 %v12625_v21, %v3294_v59  ;;  %v9722_v63 = vpop.f32.mrb[27].mxu0  ;;  %v5058_v1 = vmax.f32 %v4268_v56, 0.0  ;;  %v4271_v3 = vadd.f32 %v12625_v21, %v4270_v60  ;;  %v10210_v4 = vpop.f32.mrb[27].mxu1  ;;  %v10688_v59 = vld [vmem:[%s10997_s21 + $0x320] sm:$0xff]  }
 0x34c   : > { %v8843_v5 = vpack.c.bf16 %v4814_v61, %v4814_v61  ;;  %v4815_v6 = vmax.f32 %v3295_v62, 0.0  ;;  %9828 = vmatmul.mubr.msk.bf16.gmra.mrb[132].mxu0 %vm1960_vm3, %v10682_v55  ;;  %v9087_v7 = vpack.c.bf16 %v5058_v1, %v5058_v1  ;;  %v5059_v9 = vmax.f32 %v4271_v3, 0.0  ;;  %10316 = vmatmul.mubr.msk.bf16.gmra.mrb[132].mxu1 %vm1960_vm3, %v10683_v58  ;;  %v10689_v62 = vld [vmem:[%s10997_s21 + $0x6f0] sm:$0xff]  }
 0x34d   : > { %9831 = vmatprep.mubr.msk.bf16.mxu0 %vm10855_vm1, %v10854_v0  ;;  %10319 = vmatprep.mubr.msk.bf16.mxu1 %vm10855_vm1, %v10854_v0 }
 0x34e   : > { %7245 = vst.msk [vmem:[%s11252_s23 + $0x230] sm:$0xf] %vm7104_vm4, %v8843_v5  ;;  %v8844_v10 = vpack.c.bf16 %v4815_v6, %v4815_v6  ;;  %7489 = vst.msk [vmem:[%s11252_s23 + $0x600] sm:$0xf] %vm7104_vm4, %v9087_v7  ;;  %v9088_v11 = vpack.c.bf16 %v5059_v9, %v5059_v9 }
 0x34f   : > { %v3299_v12 = vpop.f32.mrb[28].mxu0  ;;  %v4275_v13 = vpop.f32.mrb[28].mxu1 }
 0x350   : > { %7246 = vst.msk [vmem:[%s11252_s23 + $0x234] sm:$0xf] %vm7104_vm4, %v8844_v10  ;;  %7490 = vst.msk [vmem:[%s11252_s23 + $0x604] sm:$0xf] %vm7104_vm4, %v9088_v11  ;;  %v3300_v14 = vadd.f32 %v12625_v21, %v3299_v12  ;;  %v9725_v15 = vpop.f32.mrb[29].mxu0  ;;  %v4276_v17 = vadd.f32 %v12625_v21, %v4275_v13  ;;  %v10213_v18 = vpop.f32.mrb[29].mxu1 }
 0x351   : > { %v3302_v20 = vpop.f32.mrb[30].mxu0  ;;  %v4278_v8 = vpop.f32.mrb[30].mxu1 }
 0x352   : > { %v4816_v22 = vmax.f32 %v3300_v14, 0.0  ;;  %v3303_v23 = vadd.f32 %v12625_v21, %v3302_v20  ;;  %v9726_v24 = vpop.f32.mrb[31].mxu0  ;;  %v5060_v25 = vmax.f32 %v4276_v17, 0.0  ;;  %v4279_v26 = vadd.f32 %v12625_v21, %v4278_v8  ;;  %v10214_v2 = vpop.f32.mrb[31].mxu1  ;;  %v10690_v20 = vld [vmem:[%s10997_s21 + $0x328] sm:$0xff]  }
 0x354   : > { %v8845_v27 = vpack.c.bf16 %v4816_v22, %v4816_v22  ;;  %v4817_v28 = vmax.f32 %v3303_v23, 0.0  ;;  %9832 = vmatmul.mubr.msk.bf16.gmra.mrb[136].mxu0 %vm1960_vm3, %v10684_v16  ;;  %v9089_v29 = vpack.c.bf16 %v5060_v25, %v5060_v25  ;;  %v5061_v30 = vmax.f32 %v4279_v26, 0.0  ;;  %10320 = vmatmul.mubr.msk.bf16.gmra.mrb[136].mxu1 %vm1960_vm3, %v10685_v19  ;;  %v10691_v23 = vld [vmem:[%s10997_s21 + $0x6f8] sm:$0xff]  }
 0x355   : > { %9835 = vmatprep.mubr.msk.bf16.mxu0 %vm10855_vm1, %v10854_v0  ;;  %10323 = vmatprep.mubr.msk.bf16.mxu1 %vm10855_vm1, %v10854_v0 }
 0x356   : > { %7247 = vst.msk [vmem:[%s11252_s23 + $0x238] sm:$0xf] %vm7104_vm4, %v8845_v27  ;;  %v8846_v31 = vpack.c.bf16 %v4817_v28, %v4817_v28  ;;  %7491 = vst.msk [vmem:[%s11252_s23 + $0x608] sm:$0xf] %vm7104_vm4, %v9089_v29  ;;  %v9090_v32 = vpack.c.bf16 %v5061_v30, %v5061_v30 }
 0x357   : > { %v3307_v33 = vpop.f32.mrb[32].mxu0  ;;  %v4283_v34 = vpop.f32.mrb[32].mxu1 }
 0x358   : > { %7248 = vst.msk [vmem:[%s11252_s23 + $0x23c] sm:$0xf] %vm7104_vm4, %v8846_v31  ;;  %7492 = vst.msk [vmem:[%s11252_s23 + $0x60c] sm:$0xf] %vm7104_vm4, %v9090_v32  ;;  %v3308_v35 = vadd.f32 %v12625_v21, %v3307_v33  ;;  %v9729_v36 = vpop.f32.mrb[33].mxu0  ;;  %v4284_v38 = vadd.f32 %v12625_v21, %v4283_v34  ;;  %v10217_v39 = vpop.f32.mrb[33].mxu1 }
 0x359   : > { %v3310_v41 = vpop.f32.mrb[34].mxu0  ;;  %v4286_v42 = vpop.f32.mrb[34].mxu1 }
 0x35a   : > { %v4818_v43 = vmax.f32 %v3308_v35, 0.0  ;;  %v3311_v44 = vadd.f32 %v12625_v21, %v3310_v41  ;;  %v9730_v45 = vpop.f32.mrb[35].mxu0  ;;  %v5062_v46 = vmax.f32 %v4284_v38, 0.0  ;;  %v4287_v47 = vadd.f32 %v12625_v21, %v4286_v42  ;;  %v10218_v48 = vpop.f32.mrb[35].mxu1  ;;  %v10692_v41 = vld [vmem:[%s10997_s21 + $0x330] sm:$0xff]  }
 0x35c   : > { %v8847_v49 = vpack.c.bf16 %v4818_v43, %v4818_v43  ;;  %v4819_v50 = vmax.f32 %v3311_v44, 0.0  ;;  %9836 = vmatmul.mubr.msk.bf16.gmra.mrb[140].mxu0 %vm1960_vm3, %v10686_v37  ;;  %v9091_v51 = vpack.c.bf16 %v5062_v46, %v5062_v46  ;;  %v5063_v52 = vmax.f32 %v4287_v47, 0.0  ;;  %10324 = vmatmul.mubr.msk.bf16.gmra.mrb[140].mxu1 %vm1960_vm3, %v10687_v40  ;;  %v10693_v44 = vld [vmem:[%s10997_s21 + $0x700] sm:$0xff]  }
 0x35d   : > { %9839 = vmatprep.mubr.msk.bf16.mxu0 %vm10855_vm1, %v10854_v0  ;;  %10327 = vmatprep.mubr.msk.bf16.mxu1 %vm10855_vm1, %v10854_v0 }
 0x35e   : > { %7249 = vst.msk [vmem:[%s11252_s23 + $0x240] sm:$0xf] %vm7104_vm4, %v8847_v49  ;;  %v8848_v53 = vpack.c.bf16 %v4819_v50, %v4819_v50  ;;  %7493 = vst.msk [vmem:[%s11252_s23 + $0x610] sm:$0xf] %vm7104_vm4, %v9091_v51  ;;  %v9092_v54 = vpack.c.bf16 %v5063_v52, %v5063_v52 }
 0x35f   : > { %v3315_v55 = vpop.f32.mrb[36].mxu0  ;;  %v4291_v56 = vpop.f32.mrb[36].mxu1 }
 0x360   : > { %7250 = vst.msk [vmem:[%s11252_s23 + $0x244] sm:$0xf] %vm7104_vm4, %v8848_v53  ;;  %7494 = vst.msk [vmem:[%s11252_s23 + $0x614] sm:$0xf] %vm7104_vm4, %v9092_v54  ;;  %v3316_v57 = vadd.f32 %v12625_v21, %v3315_v55  ;;  %v9733_v58 = vpop.f32.mrb[37].mxu0  ;;  %v4292_v60 = vadd.f32 %v12625_v21, %v4291_v56  ;;  %v10221_v61 = vpop.f32.mrb[37].mxu1 }
 0x361   : > { %v3318_v63 = vpop.f32.mrb[38].mxu0  ;;  %v4294_v1 = vpop.f32.mrb[38].mxu1 }
 0x362   : > { %v4820_v3 = vmax.f32 %v3316_v57, 0.0  ;;  %v3319_v4 = vadd.f32 %v12625_v21, %v3318_v63  ;;  %v9734_v5 = vpop.f32.mrb[39].mxu0  ;;  %v5064_v6 = vmax.f32 %v4292_v60, 0.0  ;;  %v4295_v7 = vadd.f32 %v12625_v21, %v4294_v1  ;;  %v10222_v9 = vpop.f32.mrb[39].mxu1  ;;  %v10694_v63 = vld [vmem:[%s10997_s21 + $0x338] sm:$0xff]  }
 0x364   : > { %v8849_v10 = vpack.c.bf16 %v4820_v3, %v4820_v3  ;;  %v4821_v11 = vmax.f32 %v3319_v4, 0.0  ;;  %9840 = vmatmul.mubr.msk.bf16.gmra.mrb[144].mxu0 %vm1960_vm3, %v10688_v59  ;;  %v9093_v12 = vpack.c.bf16 %v5064_v6, %v5064_v6  ;;  %v5065_v13 = vmax.f32 %v4295_v7, 0.0  ;;  %10328 = vmatmul.mubr.msk.bf16.gmra.mrb[144].mxu1 %vm1960_vm3, %v10689_v62  ;;  %v10695_v4 = vld [vmem:[%s10997_s21 + $0x708] sm:$0xff]  }
 0x365   : > { %9843 = vmatprep.mubr.msk.bf16.mxu0 %vm10855_vm1, %v10854_v0  ;;  %10331 = vmatprep.mubr.msk.bf16.mxu1 %vm10855_vm1, %v10854_v0 }
 0x366   : > { %7251 = vst.msk [vmem:[%s11252_s23 + $0x248] sm:$0xf] %vm7104_vm4, %v8849_v10  ;;  %v8850_v14 = vpack.c.bf16 %v4821_v11, %v4821_v11  ;;  %7495 = vst.msk [vmem:[%s11252_s23 + $0x618] sm:$0xf] %vm7104_vm4, %v9093_v12  ;;  %v9094_v15 = vpack.c.bf16 %v5065_v13, %v5065_v13 }
 0x367   : > { %v3323_v16 = vpop.f32.mrb[40].mxu0  ;;  %v4299_v17 = vpop.f32.mrb[40].mxu1 }
 0x368   : > { %7252 = vst.msk [vmem:[%s11252_s23 + $0x24c] sm:$0xf] %vm7104_vm4, %v8850_v14  ;;  %7496 = vst.msk [vmem:[%s11252_s23 + $0x61c] sm:$0xf] %vm7104_vm4, %v9094_v15  ;;  %v3324_v18 = vadd.f32 %v12625_v21, %v3323_v16  ;;  %v9737_v19 = vpop.f32.mrb[41].mxu0  ;;  %v4300_v8 = vadd.f32 %v12625_v21, %v4299_v17  ;;  %v10225_v22 = vpop.f32.mrb[41].mxu1 }
 0x369   : > { %v3326_v24 = vpop.f32.mrb[42].mxu0  ;;  %v4302_v25 = vpop.f32.mrb[42].mxu1 }
 0x36a   : > { %v4822_v26 = vmax.f32 %v3324_v18, 0.0  ;;  %v3327_v2 = vadd.f32 %v12625_v21, %v3326_v24  ;;  %v9738_v27 = vpop.f32.mrb[43].mxu0  ;;  %v5066_v28 = vmax.f32 %v4300_v8, 0.0  ;;  %v4303_v29 = vadd.f32 %v12625_v21, %v4302_v25  ;;  %v10226_v30 = vpop.f32.mrb[43].mxu1  ;;  %v10696_v24 = vld [vmem:[%s10997_s21 + $0x340] sm:$0xff]  }
 0x36c   : > { %v8851_v31 = vpack.c.bf16 %v4822_v26, %v4822_v26  ;;  %v4823_v32 = vmax.f32 %v3327_v2, 0.0  ;;  %9844 = vmatmul.mubr.msk.bf16.gmra.mrb[148].mxu0 %vm1960_vm3, %v10690_v20  ;;  %v9095_v33 = vpack.c.bf16 %v5066_v28, %v5066_v28  ;;  %v5067_v34 = vmax.f32 %v4303_v29, 0.0  ;;  %10332 = vmatmul.mubr.msk.bf16.gmra.mrb[148].mxu1 %vm1960_vm3, %v10691_v23  ;;  %v10697_v2 = vld [vmem:[%s10997_s21 + $0x710] sm:$0xff]  }
 0x36d   : > { %9847 = vmatprep.mubr.msk.bf16.mxu0 %vm10855_vm1, %v10854_v0  ;;  %10335 = vmatprep.mubr.msk.bf16.mxu1 %vm10855_vm1, %v10854_v0 }
 0x36e   : > { %7253 = vst.msk [vmem:[%s11252_s23 + $0x250] sm:$0xf] %vm7104_vm4, %v8851_v31  ;;  %v8852_v35 = vpack.c.bf16 %v4823_v32, %v4823_v32  ;;  %7497 = vst.msk [vmem:[%s11252_s23 + $0x620] sm:$0xf] %vm7104_vm4, %v9095_v33  ;;  %v9096_v36 = vpack.c.bf16 %v5067_v34, %v5067_v34 }
 0x36f   : > { %v3331_v37 = vpop.f32.mrb[44].mxu0  ;;  %v4307_v38 = vpop.f32.mrb[44].mxu1 }
 0x370   : > { %7254 = vst.msk [vmem:[%s11252_s23 + $0x254] sm:$0xf] %vm7104_vm4, %v8852_v35  ;;  %7498 = vst.msk [vmem:[%s11252_s23 + $0x624] sm:$0xf] %vm7104_vm4, %v9096_v36  ;;  %v3332_v39 = vadd.f32 %v12625_v21, %v3331_v37  ;;  %v9741_v40 = vpop.f32.mrb[45].mxu0  ;;  %v4308_v42 = vadd.f32 %v12625_v21, %v4307_v38  ;;  %v10229_v43 = vpop.f32.mrb[45].mxu1 }
 0x371   : > { %v3334_v45 = vpop.f32.mrb[46].mxu0  ;;  %v4310_v46 = vpop.f32.mrb[46].mxu1 }
 0x372   : > { %v4824_v47 = vmax.f32 %v3332_v39, 0.0  ;;  %v3335_v48 = vadd.f32 %v12625_v21, %v3334_v45  ;;  %v9742_v49 = vpop.f32.mrb[47].mxu0  ;;  %v5068_v50 = vmax.f32 %v4308_v42, 0.0  ;;  %v4311_v51 = vadd.f32 %v12625_v21, %v4310_v46  ;;  %v10230_v52 = vpop.f32.mrb[47].mxu1  ;;  %v10698_v45 = vld [vmem:[%s10997_s21 + $0x348] sm:$0xff]  }
 0x374   : > { %v8853_v53 = vpack.c.bf16 %v4824_v47, %v4824_v47  ;;  %v4825_v54 = vmax.f32 %v3335_v48, 0.0  ;;  %9848 = vmatmul.mubr.msk.bf16.gmra.mrb[152].mxu0 %vm1960_vm3, %v10692_v41  ;;  %v9097_v55 = vpack.c.bf16 %v5068_v50, %v5068_v50  ;;  %v5069_v56 = vmax.f32 %v4311_v51, 0.0  ;;  %10336 = vmatmul.mubr.msk.bf16.gmra.mrb[152].mxu1 %vm1960_vm3, %v10693_v44  ;;  %v10699_v48 = vld [vmem:[%s10997_s21 + $0x718] sm:$0xff]  }
 0x375   : > { %9851 = vmatprep.mubr.msk.bf16.mxu0 %vm10855_vm1, %v10854_v0  ;;  %10339 = vmatprep.mubr.msk.bf16.mxu1 %vm10855_vm1, %v10854_v0 }
 0x376   : > { %7255 = vst.msk [vmem:[%s11252_s23 + $0x258] sm:$0xf] %vm7104_vm4, %v8853_v53  ;;  %v8854_v57 = vpack.c.bf16 %v4825_v54, %v4825_v54  ;;  %7499 = vst.msk [vmem:[%s11252_s23 + $0x628] sm:$0xf] %vm7104_vm4, %v9097_v55  ;;  %v9098_v58 = vpack.c.bf16 %v5069_v56, %v5069_v56 }
 0x377   : > { %v3339_v59 = vpop.f32.mrb[48].mxu0  ;;  %v4315_v60 = vpop.f32.mrb[48].mxu1 }
 0x378   : > { %7256 = vst.msk [vmem:[%s11252_s23 + $0x25c] sm:$0xf] %vm7104_vm4, %v8854_v57  ;;  %7500 = vst.msk [vmem:[%s11252_s23 + $0x62c] sm:$0xf] %vm7104_vm4, %v9098_v58  ;;  %v3340_v61 = vadd.f32 %v12625_v21, %v3339_v59  ;;  %v9745_v62 = vpop.f32.mrb[49].mxu0  ;;  %v4316_v1 = vadd.f32 %v12625_v21, %v4315_v60  ;;  %v10233_v3 = vpop.f32.mrb[49].mxu1 }
 0x379   : > { %v3342_v5 = vpop.f32.mrb[50].mxu0  ;;  %v4318_v6 = vpop.f32.mrb[50].mxu1 }
 0x37a   : > { %v4826_v7 = vmax.f32 %v3340_v61, 0.0  ;;  %v3343_v9 = vadd.f32 %v12625_v21, %v3342_v5  ;;  %v9746_v10 = vpop.f32.mrb[51].mxu0  ;;  %v5070_v11 = vmax.f32 %v4316_v1, 0.0  ;;  %v4319_v12 = vadd.f32 %v12625_v21, %v4318_v6  ;;  %v10234_v13 = vpop.f32.mrb[51].mxu1  ;;  %v10700_v5 = vld [vmem:[%s10997_s21 + $0x350] sm:$0xff]  }
 0x37c   : > { %v8855_v14 = vpack.c.bf16 %v4826_v7, %v4826_v7  ;;  %v4827_v15 = vmax.f32 %v3343_v9, 0.0  ;;  %9852 = vmatmul.mubr.msk.bf16.gmra.mrb[156].mxu0 %vm1960_vm3, %v10694_v63  ;;  %v9099_v16 = vpack.c.bf16 %v5070_v11, %v5070_v11  ;;  %v5071_v17 = vmax.f32 %v4319_v12, 0.0  ;;  %10340 = vmatmul.mubr.msk.bf16.gmra.mrb[156].mxu1 %vm1960_vm3, %v10695_v4  ;;  %v10701_v9 = vld [vmem:[%s10997_s21 + $0x720] sm:$0xff]  }
 0x37d   : > { %9855 = vmatprep.mubr.msk.bf16.mxu0 %vm10855_vm1, %v10854_v0  ;;  %10343 = vmatprep.mubr.msk.bf16.mxu1 %vm10855_vm1, %v10854_v0 }
 0x37e   : > { %7257 = vst.msk [vmem:[%s11252_s23 + $0x260] sm:$0xf] %vm7104_vm4, %v8855_v14  ;;  %v8856_v18 = vpack.c.bf16 %v4827_v15, %v4827_v15  ;;  %7501 = vst.msk [vmem:[%s11252_s23 + $0x630] sm:$0xf] %vm7104_vm4, %v9099_v16  ;;  %v9100_v19 = vpack.c.bf16 %v5071_v17, %v5071_v17 }
 0x37f   : > { %v3347_v20 = vpop.f32.mrb[52].mxu0  ;;  %v4323_v8 = vpop.f32.mrb[52].mxu1 }
 0x380   : > { %7258 = vst.msk [vmem:[%s11252_s23 + $0x264] sm:$0xf] %vm7104_vm4, %v8856_v18  ;;  %7502 = vst.msk [vmem:[%s11252_s23 + $0x634] sm:$0xf] %vm7104_vm4, %v9100_v19  ;;  %v3348_v22 = vadd.f32 %v12625_v21, %v3347_v20  ;;  %v9749_v23 = vpop.f32.mrb[53].mxu0  ;;  %v4324_v25 = vadd.f32 %v12625_v21, %v4323_v8  ;;  %v10237_v26 = vpop.f32.mrb[53].mxu1 }
 0x381   : > { %v3350_v27 = vpop.f32.mrb[54].mxu0  ;;  %v4326_v28 = vpop.f32.mrb[54].mxu1 }
 0x382   : > { %v4828_v29 = vmax.f32 %v3348_v22, 0.0  ;;  %v3351_v30 = vadd.f32 %v12625_v21, %v3350_v27  ;;  %v9750_v31 = vpop.f32.mrb[55].mxu0  ;;  %v5072_v32 = vmax.f32 %v4324_v25, 0.0  ;;  %v4327_v33 = vadd.f32 %v12625_v21, %v4326_v28  ;;  %v10238_v34 = vpop.f32.mrb[55].mxu1  ;;  %v10702_v27 = vld [vmem:[%s10997_s21 + $0x358] sm:$0xff]  }
 0x384   : > { %v8857_v35 = vpack.c.bf16 %v4828_v29, %v4828_v29  ;;  %v4829_v36 = vmax.f32 %v3351_v30, 0.0  ;;  %9856 = vmatmul.mubr.msk.bf16.gmra.mrb[160].mxu0 %vm1960_vm3, %v10696_v24  ;;  %v9101_v37 = vpack.c.bf16 %v5072_v32, %v5072_v32  ;;  %v5073_v38 = vmax.f32 %v4327_v33, 0.0  ;;  %10344 = vmatmul.mubr.msk.bf16.gmra.mrb[160].mxu1 %vm1960_vm3, %v10697_v2  ;;  %v10703_v30 = vld [vmem:[%s10997_s21 + $0x728] sm:$0xff]  }
 0x385   : > { %9859 = vmatprep.mubr.msk.bf16.mxu0 %vm10855_vm1, %v10854_v0  ;;  %10347 = vmatprep.mubr.msk.bf16.mxu1 %vm10855_vm1, %v10854_v0 }
 0x386   : > { %7259 = vst.msk [vmem:[%s11252_s23 + $0x268] sm:$0xf] %vm7104_vm4, %v8857_v35  ;;  %v8858_v39 = vpack.c.bf16 %v4829_v36, %v4829_v36  ;;  %7503 = vst.msk [vmem:[%s11252_s23 + $0x638] sm:$0xf] %vm7104_vm4, %v9101_v37  ;;  %v9102_v40 = vpack.c.bf16 %v5073_v38, %v5073_v38 }
 0x387   : > { %v3355_v41 = vpop.f32.mrb[56].mxu0  ;;  %v4331_v42 = vpop.f32.mrb[56].mxu1 }
 0x388   : > { %7260 = vst.msk [vmem:[%s11252_s23 + $0x26c] sm:$0xf] %vm7104_vm4, %v8858_v39  ;;  %7504 = vst.msk [vmem:[%s11252_s23 + $0x63c] sm:$0xf] %vm7104_vm4, %v9102_v40  ;;  %v3356_v43 = vadd.f32 %v12625_v21, %v3355_v41  ;;  %v9753_v44 = vpop.f32.mrb[57].mxu0  ;;  %v4332_v46 = vadd.f32 %v12625_v21, %v4331_v42  ;;  %v10241_v47 = vpop.f32.mrb[57].mxu1 }
 0x389   : > { %v3358_v49 = vpop.f32.mrb[58].mxu0  ;;  %v4334_v50 = vpop.f32.mrb[58].mxu1 }
 0x38a   : > { %v4830_v51 = vmax.f32 %v3356_v43, 0.0  ;;  %v3359_v52 = vadd.f32 %v12625_v21, %v3358_v49  ;;  %v9754_v53 = vpop.f32.mrb[59].mxu0  ;;  %v5074_v54 = vmax.f32 %v4332_v46, 0.0  ;;  %v4335_v55 = vadd.f32 %v12625_v21, %v4334_v50  ;;  %v10242_v56 = vpop.f32.mrb[59].mxu1  ;;  %v10704_v49 = vld [vmem:[%s10997_s21 + $0x360] sm:$0xff]  }
 0x38c   : > { %v8859_v57 = vpack.c.bf16 %v4830_v51, %v4830_v51  ;;  %v4831_v58 = vmax.f32 %v3359_v52, 0.0  ;;  %9860 = vmatmul.mubr.msk.bf16.gmra.mrb[164].mxu0 %vm1960_vm3, %v10698_v45  ;;  %v9103_v59 = vpack.c.bf16 %v5074_v54, %v5074_v54  ;;  %v5075_v60 = vmax.f32 %v4335_v55, 0.0  ;;  %10348 = vmatmul.mubr.msk.bf16.gmra.mrb[164].mxu1 %vm1960_vm3, %v10699_v48  ;;  %v10705_v52 = vld [vmem:[%s10997_s21 + $0x730] sm:$0xff]  }
 0x38d   : > { %9863 = vmatprep.mubr.msk.bf16.mxu0 %vm10855_vm1, %v10854_v0  ;;  %10351 = vmatprep.mubr.msk.bf16.mxu1 %vm10855_vm1, %v10854_v0 }
 0x38e   : > { %7261 = vst.msk [vmem:[%s11252_s23 + $0x270] sm:$0xf] %vm7104_vm4, %v8859_v57  ;;  %v8860_v61 = vpack.c.bf16 %v4831_v58, %v4831_v58  ;;  %7505 = vst.msk [vmem:[%s11252_s23 + $0x640] sm:$0xf] %vm7104_vm4, %v9103_v59  ;;  %v9104_v62 = vpack.c.bf16 %v5075_v60, %v5075_v60 }
 0x38f   : > { %v3363_v63 = vpop.f32.mrb[60].mxu0  ;;  %v4339_v1 = vpop.f32.mrb[60].mxu1 }
 0x390   : > { %7262 = vst.msk [vmem:[%s11252_s23 + $0x274] sm:$0xf] %vm7104_vm4, %v8860_v61  ;;  %7506 = vst.msk [vmem:[%s11252_s23 + $0x644] sm:$0xf] %vm7104_vm4, %v9104_v62  ;;  %v3364_v3 = vadd.f32 %v12625_v21, %v3363_v63  ;;  %v9757_v4 = vpop.f32.mrb[61].mxu0  ;;  %v4340_v6 = vadd.f32 %v12625_v21, %v4339_v1  ;;  %v10245_v7 = vpop.f32.mrb[61].mxu1 }
 0x391   : > { %v3366_v10 = vpop.f32.mrb[62].mxu0  ;;  %v4342_v11 = vpop.f32.mrb[62].mxu1 }
 0x392   : > { %v4832_v12 = vmax.f32 %v3364_v3, 0.0  ;;  %v3367_v13 = vadd.f32 %v12625_v21, %v3366_v10  ;;  %v9758_v14 = vpop.f32.mrb[63].mxu0  ;;  %v5076_v15 = vmax.f32 %v4340_v6, 0.0  ;;  %v4343_v16 = vadd.f32 %v12625_v21, %v4342_v11  ;;  %v10246_v17 = vpop.f32.mrb[63].mxu1  ;;  %v10706_v10 = vld [vmem:[%s10997_s21 + $0x368] sm:$0xff]  }
 0x394   : > { %v8861_v18 = vpack.c.bf16 %v4832_v12, %v4832_v12  ;;  %v4833_v19 = vmax.f32 %v3367_v13, 0.0  ;;  %9864 = vmatmul.mubr.msk.bf16.gmra.mrb[168].mxu0 %vm1960_vm3, %v10700_v5  ;;  %v9105_v20 = vpack.c.bf16 %v5076_v15, %v5076_v15  ;;  %v5077_v8 = vmax.f32 %v4343_v16, 0.0  ;;  %10352 = vmatmul.mubr.msk.bf16.gmra.mrb[168].mxu1 %vm1960_vm3, %v10701_v9  ;;  %v10707_v13 = vld [vmem:[%s10997_s21 + $0x738] sm:$0xff]  }
 0x395   : > { %9867 = vmatprep.mubr.msk.bf16.mxu0 %vm10855_vm1, %v10854_v0  ;;  %10355 = vmatprep.mubr.msk.bf16.mxu1 %vm10855_vm1, %v10854_v0 }
 0x396   : > { %7263 = vst.msk [vmem:[%s11252_s23 + $0x278] sm:$0xf] %vm7104_vm4, %v8861_v18  ;;  %v8862_v22 = vpack.c.bf16 %v4833_v19, %v4833_v19  ;;  %7507 = vst.msk [vmem:[%s11252_s23 + $0x648] sm:$0xf] %vm7104_vm4, %v9105_v20  ;;  %v9106_v23 = vpack.c.bf16 %v5077_v8, %v5077_v8 }
 0x397   : > { %v3371_v24 = vpop.f32.mrb[64].mxu0  ;;  %v4347_v25 = vpop.f32.mrb[64].mxu1 }
 0x398   : > { %7264 = vst.msk [vmem:[%s11252_s23 + $0x27c] sm:$0xf] %vm7104_vm4, %v8862_v22  ;;  %7508 = vst.msk [vmem:[%s11252_s23 + $0x64c] sm:$0xf] %vm7104_vm4, %v9106_v23  ;;  %v3372_v26 = vadd.f32 %v12625_v21, %v3371_v24  ;;  %v9761_v2 = vpop.f32.mrb[65].mxu0  ;;  %v4348_v28 = vadd.f32 %v12625_v21, %v4347_v25  ;;  %v10249_v29 = vpop.f32.mrb[65].mxu1 }
 0x399   : > { %v3374_v31 = vpop.f32.mrb[66].mxu0  ;;  %v4350_v32 = vpop.f32.mrb[66].mxu1 }
 0x39a   : > { %v4834_v33 = vmax.f32 %v3372_v26, 0.0  ;;  %v3375_v34 = vadd.f32 %v12625_v21, %v3374_v31  ;;  %v9762_v35 = vpop.f32.mrb[67].mxu0  ;;  %v5078_v36 = vmax.f32 %v4348_v28, 0.0  ;;  %v4351_v37 = vadd.f32 %v12625_v21, %v4350_v32  ;;  %v10250_v38 = vpop.f32.mrb[67].mxu1  ;;  %v10708_v31 = vld [vmem:[%s10997_s21 + $0x370] sm:$0xff]  }
 0x39c   : > { %v8863_v39 = vpack.c.bf16 %v4834_v33, %v4834_v33  ;;  %v4835_v40 = vmax.f32 %v3375_v34, 0.0  ;;  %9868 = vmatmul.mubr.msk.bf16.gmra.mrb[172].mxu0 %vm1960_vm3, %v10702_v27  ;;  %v9107_v41 = vpack.c.bf16 %v5078_v36, %v5078_v36  ;;  %v5079_v42 = vmax.f32 %v4351_v37, 0.0  ;;  %10356 = vmatmul.mubr.msk.bf16.gmra.mrb[172].mxu1 %vm1960_vm3, %v10703_v30  ;;  %v10709_v34 = vld [vmem:[%s10997_s21 + $0x740] sm:$0xff]  }
 0x39d   : > { %9871 = vmatprep.mubr.msk.bf16.mxu0 %vm10855_vm1, %v10854_v0  ;;  %10359 = vmatprep.mubr.msk.bf16.mxu1 %vm10855_vm1, %v10854_v0 }
 0x39e   : > { %7265 = vst.msk [vmem:[%s11252_s23 + $0x280] sm:$0xf] %vm7104_vm4, %v8863_v39  ;;  %v8864_v43 = vpack.c.bf16 %v4835_v40, %v4835_v40  ;;  %7509 = vst.msk [vmem:[%s11252_s23 + $0x650] sm:$0xf] %vm7104_vm4, %v9107_v41  ;;  %v9108_v44 = vpack.c.bf16 %v5079_v42, %v5079_v42 }
 0x39f   : > { %v3379_v45 = vpop.f32.mrb[68].mxu0  ;;  %v4355_v46 = vpop.f32.mrb[68].mxu1 }
 0x3a0   : > { %7266 = vst.msk [vmem:[%s11252_s23 + $0x284] sm:$0xf] %vm7104_vm4, %v8864_v43  ;;  %7510 = vst.msk [vmem:[%s11252_s23 + $0x654] sm:$0xf] %vm7104_vm4, %v9108_v44  ;;  %v3380_v47 = vadd.f32 %v12625_v21, %v3379_v45  ;;  %v9765_v48 = vpop.f32.mrb[69].mxu0  ;;  %v4356_v50 = vadd.f32 %v12625_v21, %v4355_v46  ;;  %v10253_v51 = vpop.f32.mrb[69].mxu1 }
 0x3a1   : > { %v3382_v53 = vpop.f32.mrb[70].mxu0  ;;  %v4358_v54 = vpop.f32.mrb[70].mxu1 }
 0x3a2   : > { %v4836_v55 = vmax.f32 %v3380_v47, 0.0  ;;  %v3383_v56 = vadd.f32 %v12625_v21, %v3382_v53  ;;  %v9766_v57 = vpop.f32.mrb[71].mxu0  ;;  %v5080_v58 = vmax.f32 %v4356_v50, 0.0  ;;  %v4359_v59 = vadd.f32 %v12625_v21, %v4358_v54  ;;  %v10254_v60 = vpop.f32.mrb[71].mxu1  ;;  %v10710_v53 = vld [vmem:[%s10997_s21 + $0x378] sm:$0xff]  }
 0x3a4   : > { %v8865_v61 = vpack.c.bf16 %v4836_v55, %v4836_v55  ;;  %v4837_v62 = vmax.f32 %v3383_v56, 0.0  ;;  %9872 = vmatmul.mubr.msk.bf16.gmra.mrb[176].mxu0 %vm1960_vm3, %v10704_v49  ;;  %v9109_v63 = vpack.c.bf16 %v5080_v58, %v5080_v58  ;;  %v5081_v1 = vmax.f32 %v4359_v59, 0.0  ;;  %10360 = vmatmul.mubr.msk.bf16.gmra.mrb[176].mxu1 %vm1960_vm3, %v10705_v52  ;;  %v10711_v56 = vld [vmem:[%s10997_s21 + $0x748] sm:$0xff]  }
 0x3a5   : > { %9875 = vmatprep.mubr.msk.bf16.mxu0 %vm10855_vm1, %v10854_v0  ;;  %10363 = vmatprep.mubr.msk.bf16.mxu1 %vm10855_vm1, %v10854_v0 }
 0x3a6   : > { %7267 = vst.msk [vmem:[%s11252_s23 + $0x288] sm:$0xf] %vm7104_vm4, %v8865_v61  ;;  %v8866_v3 = vpack.c.bf16 %v4837_v62, %v4837_v62  ;;  %7511 = vst.msk [vmem:[%s11252_s23 + $0x658] sm:$0xf] %vm7104_vm4, %v9109_v63  ;;  %v9110_v4 = vpack.c.bf16 %v5081_v1, %v5081_v1 }
 0x3a7   : > { %v3387_v5 = vpop.f32.mrb[72].mxu0  ;;  %v4363_v6 = vpop.f32.mrb[72].mxu1 }
 0x3a8   : > { %7268 = vst.msk [vmem:[%s11252_s23 + $0x28c] sm:$0xf] %vm7104_vm4, %v8866_v3  ;;  %7512 = vst.msk [vmem:[%s11252_s23 + $0x65c] sm:$0xf] %vm7104_vm4, %v9110_v4  ;;  %v3388_v7 = vadd.f32 %v12625_v21, %v3387_v5  ;;  %v9769_v9 = vpop.f32.mrb[73].mxu0  ;;  %v4364_v11 = vadd.f32 %v12625_v21, %v4363_v6  ;;  %v10257_v12 = vpop.f32.mrb[73].mxu1 }
 0x3a9   : > { %v3390_v14 = vpop.f32.mrb[74].mxu0  ;;  %v4366_v15 = vpop.f32.mrb[74].mxu1 }
 0x3aa   : > { %v4838_v16 = vmax.f32 %v3388_v7, 0.0  ;;  %v3391_v17 = vadd.f32 %v12625_v21, %v3390_v14  ;;  %v9770_v18 = vpop.f32.mrb[75].mxu0  ;;  %v5082_v19 = vmax.f32 %v4364_v11, 0.0  ;;  %v4367_v20 = vadd.f32 %v12625_v21, %v4366_v15  ;;  %v10258_v8 = vpop.f32.mrb[75].mxu1  ;;  %v10712_v14 = vld [vmem:[%s10997_s21 + $0x380] sm:$0xff]  }
 0x3ac   : > { %v8867_v22 = vpack.c.bf16 %v4838_v16, %v4838_v16  ;;  %v4839_v23 = vmax.f32 %v3391_v17, 0.0  ;;  %9876 = vmatmul.mubr.msk.bf16.gmra.mrb[180].mxu0 %vm1960_vm3, %v10706_v10  ;;  %v9111_v24 = vpack.c.bf16 %v5082_v19, %v5082_v19  ;;  %v5083_v25 = vmax.f32 %v4367_v20, 0.0  ;;  %10364 = vmatmul.mubr.msk.bf16.gmra.mrb[180].mxu1 %vm1960_vm3, %v10707_v13  ;;  %v10713_v17 = vld [vmem:[%s10997_s21 + $0x750] sm:$0xff]  }
 0x3ad   : > { %9879 = vmatprep.mubr.msk.bf16.mxu0 %vm10855_vm1, %v10854_v0  ;;  %10367 = vmatprep.mubr.msk.bf16.mxu1 %vm10855_vm1, %v10854_v0 }
 0x3ae   : > { %7269 = vst.msk [vmem:[%s11252_s23 + $0x290] sm:$0xf] %vm7104_vm4, %v8867_v22  ;;  %v8868_v26 = vpack.c.bf16 %v4839_v23, %v4839_v23  ;;  %7513 = vst.msk [vmem:[%s11252_s23 + $0x660] sm:$0xf] %vm7104_vm4, %v9111_v24  ;;  %v9112_v2 = vpack.c.bf16 %v5083_v25, %v5083_v25 }
 0x3af   : > { %v3395_v27 = vpop.f32.mrb[76].mxu0  ;;  %v4371_v28 = vpop.f32.mrb[76].mxu1 }
 0x3b0   : > { %7270 = vst.msk [vmem:[%s11252_s23 + $0x294] sm:$0xf] %vm7104_vm4, %v8868_v26  ;;  %7514 = vst.msk [vmem:[%s11252_s23 + $0x664] sm:$0xf] %vm7104_vm4, %v9112_v2  ;;  %v3396_v29 = vadd.f32 %v12625_v21, %v3395_v27  ;;  %v9773_v30 = vpop.f32.mrb[77].mxu0  ;;  %v4372_v32 = vadd.f32 %v12625_v21, %v4371_v28  ;;  %v10261_v33 = vpop.f32.mrb[77].mxu1 }
 0x3b1   : > { %v3398_v35 = vpop.f32.mrb[78].mxu0  ;;  %v4374_v36 = vpop.f32.mrb[78].mxu1 }
 0x3b2   : > { %v4840_v37 = vmax.f32 %v3396_v29, 0.0  ;;  %v3399_v38 = vadd.f32 %v12625_v21, %v3398_v35  ;;  %v9774_v39 = vpop.f32.mrb[79].mxu0  ;;  %v5084_v40 = vmax.f32 %v4372_v32, 0.0  ;;  %v4375_v41 = vadd.f32 %v12625_v21, %v4374_v36  ;;  %v10262_v42 = vpop.f32.mrb[79].mxu1  ;;  %v12985_v32 = vld [vmem:[%s13539_s2] ss:$0 sm:$0xff] }
 0x3b3   : > { %v10714_v35 = vld [vmem:[%s10997_s21 + $0x388] sm:$0xff]  }
 0x3b4   : > { %v8869_v43 = vpack.c.bf16 %v4840_v37, %v4840_v37  ;;  %v4841_v44 = vmax.f32 %v3399_v38, 0.0  ;;  %9880 = vmatmul.mubr.msk.bf16.gmra.mrb[184].mxu0 %vm1960_vm3, %v10708_v31  ;;  %v9113_v45 = vpack.c.bf16 %v5084_v40, %v5084_v40  ;;  %v5085_v46 = vmax.f32 %v4375_v41, 0.0  ;;  %10368 = vmatmul.mubr.msk.bf16.gmra.mrb[184].mxu1 %vm1960_vm3, %v10709_v34  ;;  %v10715_v38 = vld [vmem:[%s10997_s21 + $0x758] sm:$0xff]  }
 0x3b5   : > { %9883 = vmatprep.mubr.msk.bf16.mxu0 %vm10855_vm1, %v10854_v0  ;;  %10371 = vmatprep.mubr.msk.bf16.mxu1 %vm10855_vm1, %v10854_v0 }
 0x3b6   : > { %7271 = vst.msk [vmem:[%s11252_s23 + $0x298] sm:$0xf] %vm7104_vm4, %v8869_v43  ;;  %v8870_v47 = vpack.c.bf16 %v4841_v44, %v4841_v44  ;;  %7515 = vst.msk [vmem:[%s11252_s23 + $0x668] sm:$0xf] %vm7104_vm4, %v9113_v45  ;;  %v9114_v48 = vpack.c.bf16 %v5085_v46, %v5085_v46 }
 0x3b7   : > { %v3403_v49 = vpop.f32.mrb[80].mxu0  ;;  %v4379_v50 = vpop.f32.mrb[80].mxu1 }
 0x3b8   : > { %7272 = vst.msk [vmem:[%s11252_s23 + $0x29c] sm:$0xf] %vm7104_vm4, %v8870_v47  ;;  %7516 = vst.msk [vmem:[%s11252_s23 + $0x66c] sm:$0xf] %vm7104_vm4, %v9114_v48  ;;  %v3404_v51 = vadd.f32 %v12625_v21, %v3403_v49  ;;  %v9777_v52 = vpop.f32.mrb[81].mxu0  ;;  %v4380_v54 = vadd.f32 %v12625_v21, %v4379_v50  ;;  %v10265_v55 = vpop.f32.mrb[81].mxu1 }
 0x3b9   : > { %v3406_v57 = vpop.f32.mrb[82].mxu0  ;;  %v4382_v58 = vpop.f32.mrb[82].mxu1 }
 0x3ba   : > { %v4842_v59 = vmax.f32 %v3404_v51, 0.0  ;;  %v3407_v60 = vadd.f32 %v12625_v21, %v3406_v57  ;;  %v9778_v61 = vpop.f32.mrb[83].mxu0  ;;  %v5086_v62 = vmax.f32 %v4380_v54, 0.0  ;;  %v4383_v63 = vadd.f32 %v12625_v21, %v4382_v58  ;;  %v10266_v1 = vpop.f32.mrb[83].mxu1  ;;  %v10716_v57 = vld [vmem:[%s10997_s21 + $0x390] sm:$0xff]  }
 0x3bc   : > { %v8871_v3 = vpack.c.bf16 %v4842_v59, %v4842_v59  ;;  %v4843_v4 = vmax.f32 %v3407_v60, 0.0  ;;  %9884 = vmatmul.mubr.msk.bf16.gmra.mrb[188].mxu0 %vm1960_vm3, %v10710_v53  ;;  %v9115_v5 = vpack.c.bf16 %v5086_v62, %v5086_v62  ;;  %v5087_v6 = vmax.f32 %v4383_v63, 0.0  ;;  %10372 = vmatmul.mubr.msk.bf16.gmra.mrb[188].mxu1 %vm1960_vm3, %v10711_v56  ;;  %v10717_v60 = vld [vmem:[%s10997_s21 + $0x760] sm:$0xff]  }
 0x3bd   : > { %9887 = vmatprep.mubr.msk.bf16.mxu0 %vm10855_vm1, %v10854_v0  ;;  %10375 = vmatprep.mubr.msk.bf16.mxu1 %vm10855_vm1, %v10854_v0 }
 0x3be   : > { %7273 = vst.msk [vmem:[%s11252_s23 + $0x2a0] sm:$0xf] %vm7104_vm4, %v8871_v3  ;;  %v8872_v7 = vpack.c.bf16 %v4843_v4, %v4843_v4  ;;  %7517 = vst.msk [vmem:[%s11252_s23 + $0x670] sm:$0xf] %vm7104_vm4, %v9115_v5  ;;  %v9116_v9 = vpack.c.bf16 %v5087_v6, %v5087_v6 }
 0x3bf   : > { %v3411_v10 = vpop.f32.mrb[84].mxu0  ;;  %v4387_v11 = vpop.f32.mrb[84].mxu1 }
 0x3c0   : > { %7274 = vst.msk [vmem:[%s11252_s23 + $0x2a4] sm:$0xf] %vm7104_vm4, %v8872_v7  ;;  %7518 = vst.msk [vmem:[%s11252_s23 + $0x674] sm:$0xf] %vm7104_vm4, %v9116_v9  ;;  %v3412_v12 = vadd.f32 %v12625_v21, %v3411_v10  ;;  %v9781_v13 = vpop.f32.mrb[85].mxu0  ;;  %v4388_v15 = vadd.f32 %v12625_v21, %v4387_v11  ;;  %v10269_v16 = vpop.f32.mrb[85].mxu1 }
 0x3c1   : > { %v3414_v18 = vpop.f32.mrb[86].mxu0  ;;  %v4390_v19 = vpop.f32.mrb[86].mxu1 }
 0x3c2   : > { %v4844_v20 = vmax.f32 %v3412_v12, 0.0  ;;  %v3415_v8 = vadd.f32 %v12625_v21, %v3414_v18  ;;  %v9782_v22 = vpop.f32.mrb[87].mxu0  ;;  %v5088_v23 = vmax.f32 %v4388_v15, 0.0  ;;  %v4391_v24 = vadd.f32 %v12625_v21, %v4390_v19  ;;  %v10270_v25 = vpop.f32.mrb[87].mxu1  ;;  %v10718_v18 = vld [vmem:[%s10997_s21 + $0x398] sm:$0xff]  }
 0x3c4   : > { %v8873_v26 = vpack.c.bf16 %v4844_v20, %v4844_v20  ;;  %v4845_v2 = vmax.f32 %v3415_v8, 0.0  ;;  %9888 = vmatmul.mubr.msk.bf16.gmra.mrb[192].mxu0 %vm1960_vm3, %v10712_v14  ;;  %v9117_v27 = vpack.c.bf16 %v5088_v23, %v5088_v23  ;;  %v5089_v28 = vmax.f32 %v4391_v24, 0.0  ;;  %10376 = vmatmul.mubr.msk.bf16.gmra.mrb[192].mxu1 %vm1960_vm3, %v10713_v17  ;;  %v10719_v8 = vld [vmem:[%s10997_s21 + $0x768] sm:$0xff]  }
 0x3c5   : > { %9891 = vmatprep.mubr.msk.bf16.mxu0 %vm10855_vm1, %v10854_v0  ;;  %10379 = vmatprep.mubr.msk.bf16.mxu1 %vm10855_vm1, %v10854_v0 }
 0x3c6   : > { %7275 = vst.msk [vmem:[%s11252_s23 + $0x2a8] sm:$0xf] %vm7104_vm4, %v8873_v26  ;;  %v8874_v21 = vpack.c.bf16 %v4845_v2, %v4845_v2  ;;  %7519 = vst.msk [vmem:[%s11252_s23 + $0x678] sm:$0xf] %vm7104_vm4, %v9117_v27  ;;  %v9118_v29 = vpack.c.bf16 %v5089_v28, %v5089_v28 }
 0x3c7   : > { %v3419_v30 = vpop.f32.mrb[88].mxu0  ;;  %v4395_v31 = vpop.f32.mrb[88].mxu1 }
 0x3c8   : > { %7276 = vst.msk [vmem:[%s11252_s23 + $0x2ac] sm:$0xf] %vm7104_vm4, %v8874_v21  ;;  %7520 = vst.msk [vmem:[%s11252_s23 + $0x67c] sm:$0xf] %vm7104_vm4, %v9118_v29  ;;  %v3420_v33 = vadd.f32 %v12985_v32, %v3419_v30  ;;  %v9785_v34 = vpop.f32.mrb[89].mxu0  ;;  %v4396_v36 = vadd.f32 %v12985_v32, %v4395_v31  ;;  %v10273_v37 = vpop.f32.mrb[89].mxu1 }
 0x3c9   : > { %v3422_v39 = vpop.f32.mrb[90].mxu0  ;;  %v4398_v40 = vpop.f32.mrb[90].mxu1 }
 0x3ca   : > { %v4846_v41 = vmax.f32 %v3420_v33, 0.0  ;;  %v3423_v42 = vadd.f32 %v12985_v32, %v3422_v39  ;;  %v9786_v43 = vpop.f32.mrb[91].mxu0  ;;  %v5090_v44 = vmax.f32 %v4396_v36, 0.0  ;;  %v4399_v45 = vadd.f32 %v12985_v32, %v4398_v40  ;;  %v10274_v46 = vpop.f32.mrb[91].mxu1  ;;  %v10720_v39 = vld [vmem:[%s10997_s21 + $0x3a0] sm:$0xff]  }
 0x3cc   : > { %v8875_v47 = vpack.c.bf16 %v4846_v41, %v4846_v41  ;;  %v4847_v48 = vmax.f32 %v3423_v42, 0.0  ;;  %9892 = vmatmul.mubr.msk.bf16.gmra.mrb[196].mxu0 %vm1960_vm3, %v10714_v35  ;;  %v9119_v49 = vpack.c.bf16 %v5090_v44, %v5090_v44  ;;  %v5091_v50 = vmax.f32 %v4399_v45, 0.0  ;;  %10380 = vmatmul.mubr.msk.bf16.gmra.mrb[196].mxu1 %vm1960_vm3, %v10715_v38  ;;  %v10721_v42 = vld [vmem:[%s10997_s21 + $0x770] sm:$0xff]  }
 0x3cd   : > { %9895 = vmatprep.mubr.msk.bf16.mxu0 %vm10855_vm1, %v10854_v0  ;;  %10383 = vmatprep.mubr.msk.bf16.mxu1 %vm10855_vm1, %v10854_v0 }
 0x3ce   : > { %7277 = vst.msk [vmem:[%s11252_s23 + $0x2b0] sm:$0xf] %vm7104_vm4, %v8875_v47  ;;  %v8876_v51 = vpack.c.bf16 %v4847_v48, %v4847_v48  ;;  %7521 = vst.msk [vmem:[%s11252_s23 + $0x680] sm:$0xf] %vm7104_vm4, %v9119_v49  ;;  %v9120_v52 = vpack.c.bf16 %v5091_v50, %v5091_v50 }
 0x3cf   : > { %v3427_v53 = vpop.f32.mrb[92].mxu0  ;;  %v4403_v54 = vpop.f32.mrb[92].mxu1 }
 0x3d0   : > { %7278 = vst.msk [vmem:[%s11252_s23 + $0x2b4] sm:$0xf] %vm7104_vm4, %v8876_v51  ;;  %7522 = vst.msk [vmem:[%s11252_s23 + $0x684] sm:$0xf] %vm7104_vm4, %v9120_v52  ;;  %v3428_v55 = vadd.f32 %v12985_v32, %v3427_v53  ;;  %v9789_v56 = vpop.f32.mrb[93].mxu0  ;;  %v4404_v58 = vadd.f32 %v12985_v32, %v4403_v54  ;;  %v10277_v59 = vpop.f32.mrb[93].mxu1 }
 0x3d1   : > { %v3430_v61 = vpop.f32.mrb[94].mxu0  ;;  %v4406_v62 = vpop.f32.mrb[94].mxu1 }
 0x3d2   : > { %v4848_v63 = vmax.f32 %v3428_v55, 0.0  ;;  %v3431_v1 = vadd.f32 %v12985_v32, %v3430_v61  ;;  %v9790_v3 = vpop.f32.mrb[95].mxu0  ;;  %v5092_v4 = vmax.f32 %v4404_v58, 0.0  ;;  %v4407_v5 = vadd.f32 %v12985_v32, %v4406_v62  ;;  %v10278_v6 = vpop.f32.mrb[95].mxu1  ;;  %v10722_v61 = vld [vmem:[%s10997_s21 + $0x3a8] sm:$0xff]  }
 0x3d4   : > { %v8877_v7 = vpack.c.bf16 %v4848_v63, %v4848_v63  ;;  %v4849_v9 = vmax.f32 %v3431_v1, 0.0  ;;  %9896 = vmatmul.mubr.msk.bf16.gmra.mrb[200].mxu0 %vm1960_vm3, %v10716_v57  ;;  %v9121_v10 = vpack.c.bf16 %v5092_v4, %v5092_v4  ;;  %v5093_v11 = vmax.f32 %v4407_v5, 0.0  ;;  %10384 = vmatmul.mubr.msk.bf16.gmra.mrb[200].mxu1 %vm1960_vm3, %v10717_v60  ;;  %v10723_v1 = vld [vmem:[%s10997_s21 + $0x778] sm:$0xff]  }
 0x3d5   : > { %9899 = vmatprep.mubr.msk.bf16.mxu0 %vm10855_vm1, %v10854_v0  ;;  %10387 = vmatprep.mubr.msk.bf16.mxu1 %vm10855_vm1, %v10854_v0 }
 0x3d6   : > { %7279 = vst.msk [vmem:[%s11252_s23 + $0x2b8] sm:$0xf] %vm7104_vm4, %v8877_v7  ;;  %v8878_v12 = vpack.c.bf16 %v4849_v9, %v4849_v9  ;;  %7523 = vst.msk [vmem:[%s11252_s23 + $0x688] sm:$0xf] %vm7104_vm4, %v9121_v10  ;;  %v9122_v13 = vpack.c.bf16 %v5093_v11, %v5093_v11 }
 0x3d7   : > { %v3435_v14 = vpop.f32.mrb[96].mxu0  ;;  %v4411_v15 = vpop.f32.mrb[96].mxu1 }
 0x3d8   : > { %7280 = vst.msk [vmem:[%s11252_s23 + $0x2bc] sm:$0xf] %vm7104_vm4, %v8878_v12  ;;  %7524 = vst.msk [vmem:[%s11252_s23 + $0x68c] sm:$0xf] %vm7104_vm4, %v9122_v13  ;;  %v3436_v16 = vadd.f32 %v12985_v32, %v3435_v14  ;;  %v9793_v17 = vpop.f32.mrb[97].mxu0  ;;  %v4412_v19 = vadd.f32 %v12985_v32, %v4411_v15  ;;  %v10281_v20 = vpop.f32.mrb[97].mxu1 }
 0x3d9   : > { %v3438_v22 = vpop.f32.mrb[98].mxu0  ;;  %v4414_v23 = vpop.f32.mrb[98].mxu1 }
 0x3da   : > { %v4850_v24 = vmax.f32 %v3436_v16, 0.0  ;;  %v3439_v25 = vadd.f32 %v12985_v32, %v3438_v22  ;;  %v9794_v26 = vpop.f32.mrb[99].mxu0  ;;  %v5094_v2 = vmax.f32 %v4412_v19, 0.0  ;;  %v4415_v27 = vadd.f32 %v12985_v32, %v4414_v23  ;;  %v10282_v28 = vpop.f32.mrb[99].mxu1  ;;  %v10724_v22 = vld [vmem:[%s10997_s21 + $0x3b0] sm:$0xff]  }
 0x3dc   : > { %v8879_v21 = vpack.c.bf16 %v4850_v24, %v4850_v24  ;;  %v4851_v29 = vmax.f32 %v3439_v25, 0.0  ;;  %9900 = vmatmul.mubr.msk.bf16.gmra.mrb[204].mxu0 %vm1960_vm3, %v10718_v18  ;;  %v9123_v30 = vpack.c.bf16 %v5094_v2, %v5094_v2  ;;  %v5095_v31 = vmax.f32 %v4415_v27, 0.0  ;;  %10388 = vmatmul.mubr.msk.bf16.gmra.mrb[204].mxu1 %vm1960_vm3, %v10719_v8  ;;  %v10725_v25 = vld [vmem:[%s10997_s21 + $0x780] sm:$0xff]  }
 0x3dd   : > { %9903 = vmatprep.mubr.msk.bf16.mxu0 %vm10855_vm1, %v10854_v0  ;;  %10391 = vmatprep.mubr.msk.bf16.mxu1 %vm10855_vm1, %v10854_v0 }
 0x3de   : > { %7281 = vst.msk [vmem:[%s11252_s23 + $0x2c0] sm:$0xf] %vm7104_vm4, %v8879_v21  ;;  %v8880_v33 = vpack.c.bf16 %v4851_v29, %v4851_v29  ;;  %7525 = vst.msk [vmem:[%s11252_s23 + $0x690] sm:$0xf] %vm7104_vm4, %v9123_v30  ;;  %v9124_v34 = vpack.c.bf16 %v5095_v31, %v5095_v31 }
 0x3df   : > { %v3443_v35 = vpop.f32.mrb[100].mxu0  ;;  %v4419_v36 = vpop.f32.mrb[100].mxu1 }
 0x3e0   : > { %7282 = vst.msk [vmem:[%s11252_s23 + $0x2c4] sm:$0xf] %vm7104_vm4, %v8880_v33  ;;  %7526 = vst.msk [vmem:[%s11252_s23 + $0x694] sm:$0xf] %vm7104_vm4, %v9124_v34  ;;  %v3444_v37 = vadd.f32 %v12985_v32, %v3443_v35  ;;  %v9797_v38 = vpop.f32.mrb[101].mxu0  ;;  %v4420_v40 = vadd.f32 %v12985_v32, %v4419_v36  ;;  %v10285_v41 = vpop.f32.mrb[101].mxu1 }
 0x3e1   : > { %v3446_v43 = vpop.f32.mrb[102].mxu0  ;;  %v4422_v44 = vpop.f32.mrb[102].mxu1 }
 0x3e2   : > { %v4852_v45 = vmax.f32 %v3444_v37, 0.0  ;;  %v3447_v46 = vadd.f32 %v12985_v32, %v3446_v43  ;;  %v9798_v47 = vpop.f32.mrb[103].mxu0  ;;  %v5096_v48 = vmax.f32 %v4420_v40, 0.0  ;;  %v4423_v49 = vadd.f32 %v12985_v32, %v4422_v44  ;;  %v10286_v50 = vpop.f32.mrb[103].mxu1  ;;  %v10726_v43 = vld [vmem:[%s10997_s21 + $0x3b8] sm:$0xff]  }
 0x3e4   : > { %v8881_v51 = vpack.c.bf16 %v4852_v45, %v4852_v45  ;;  %v4853_v52 = vmax.f32 %v3447_v46, 0.0  ;;  %9904 = vmatmul.mubr.msk.bf16.gmra.mrb[208].mxu0 %vm1960_vm3, %v10720_v39  ;;  %v9125_v53 = vpack.c.bf16 %v5096_v48, %v5096_v48  ;;  %v5097_v54 = vmax.f32 %v4423_v49, 0.0  ;;  %10392 = vmatmul.mubr.msk.bf16.gmra.mrb[208].mxu1 %vm1960_vm3, %v10721_v42  ;;  %v10727_v46 = vld [vmem:[%s10997_s21 + $0x788] sm:$0xff]  }
 0x3e5   : > { %9907 = vmatprep.mubr.msk.bf16.mxu0 %vm10855_vm1, %v10854_v0  ;;  %10395 = vmatprep.mubr.msk.bf16.mxu1 %vm10855_vm1, %v10854_v0 }
 0x3e6   : > { %7283 = vst.msk [vmem:[%s11252_s23 + $0x2c8] sm:$0xf] %vm7104_vm4, %v8881_v51  ;;  %v8882_v55 = vpack.c.bf16 %v4853_v52, %v4853_v52  ;;  %7527 = vst.msk [vmem:[%s11252_s23 + $0x698] sm:$0xf] %vm7104_vm4, %v9125_v53  ;;  %v9126_v56 = vpack.c.bf16 %v5097_v54, %v5097_v54 }
 0x3e7   : > { %v3451_v57 = vpop.f32.mrb[104].mxu0  ;;  %v4427_v58 = vpop.f32.mrb[104].mxu1 }
 0x3e8   : > { %7284 = vst.msk [vmem:[%s11252_s23 + $0x2cc] sm:$0xf] %vm7104_vm4, %v8882_v55  ;;  %7528 = vst.msk [vmem:[%s11252_s23 + $0x69c] sm:$0xf] %vm7104_vm4, %v9126_v56  ;;  %v3452_v59 = vadd.f32 %v12985_v32, %v3451_v57  ;;  %v9801_v60 = vpop.f32.mrb[105].mxu0  ;;  %v4428_v62 = vadd.f32 %v12985_v32, %v4427_v58  ;;  %v10289_v63 = vpop.f32.mrb[105].mxu1 }
 0x3e9   : > { %v3454_v3 = vpop.f32.mrb[106].mxu0  ;;  %v4430_v4 = vpop.f32.mrb[106].mxu1 }
 0x3ea   : > { %v4854_v5 = vmax.f32 %v3452_v59, 0.0  ;;  %v3455_v6 = vadd.f32 %v12985_v32, %v3454_v3  ;;  %v9802_v7 = vpop.f32.mrb[107].mxu0  ;;  %v5098_v9 = vmax.f32 %v4428_v62, 0.0  ;;  %v4431_v10 = vadd.f32 %v12985_v32, %v4430_v4  ;;  %v10290_v11 = vpop.f32.mrb[107].mxu1  ;;  %v10728_v3 = vld [vmem:[%s10997_s21 + $0x3c0] sm:$0xff]  }
 0x3ec   : > { %v8883_v12 = vpack.c.bf16 %v4854_v5, %v4854_v5  ;;  %v4855_v13 = vmax.f32 %v3455_v6, 0.0  ;;  %9908 = vmatmul.mubr.msk.bf16.gmra.mrb[212].mxu0 %vm1960_vm3, %v10722_v61  ;;  %v9127_v14 = vpack.c.bf16 %v5098_v9, %v5098_v9  ;;  %v5099_v15 = vmax.f32 %v4431_v10, 0.0  ;;  %10396 = vmatmul.mubr.msk.bf16.gmra.mrb[212].mxu1 %vm1960_vm3, %v10723_v1  ;;  %v10729_v6 = vld [vmem:[%s10997_s21 + $0x790] sm:$0xff]  }
 0x3ed   : > { %9911 = vmatprep.mubr.msk.bf16.mxu0 %vm10855_vm1, %v10854_v0  ;;  %10399 = vmatprep.mubr.msk.bf16.mxu1 %vm10855_vm1, %v10854_v0 }
 0x3ee   : > { %7285 = vst.msk [vmem:[%s11252_s23 + $0x2d0] sm:$0xf] %vm7104_vm4, %v8883_v12  ;;  %v8884_v16 = vpack.c.bf16 %v4855_v13, %v4855_v13  ;;  %7529 = vst.msk [vmem:[%s11252_s23 + $0x6a0] sm:$0xf] %vm7104_vm4, %v9127_v14  ;;  %v9128_v17 = vpack.c.bf16 %v5099_v15, %v5099_v15 }
 0x3ef   : > { %v3459_v18 = vpop.f32.mrb[108].mxu0  ;;  %v4435_v19 = vpop.f32.mrb[108].mxu1 }
 0x3f0   : > { %7286 = vst.msk [vmem:[%s11252_s23 + $0x2d4] sm:$0xf] %vm7104_vm4, %v8884_v16  ;;  %7530 = vst.msk [vmem:[%s11252_s23 + $0x6a4] sm:$0xf] %vm7104_vm4, %v9128_v17  ;;  %v3460_v20 = vadd.f32 %v12985_v32, %v3459_v18  ;;  %v9805_v8 = vpop.f32.mrb[109].mxu0  ;;  %v4436_v23 = vadd.f32 %v12985_v32, %v4435_v19  ;;  %v10293_v24 = vpop.f32.mrb[109].mxu1 }
 0x3f1   : > { %v3462_v26 = vpop.f32.mrb[110].mxu0  ;;  %v4438_v2 = vpop.f32.mrb[110].mxu1 }
 0x3f2   : > { %v4856_v27 = vmax.f32 %v3460_v20, 0.0  ;;  %v3463_v28 = vadd.f32 %v12985_v32, %v3462_v26  ;;  %v9806_v21 = vpop.f32.mrb[111].mxu0  ;;  %v5100_v29 = vmax.f32 %v4436_v23, 0.0  ;;  %v4439_v30 = vadd.f32 %v12985_v32, %v4438_v2  ;;  %v10294_v31 = vpop.f32.mrb[111].mxu1  ;;  %v10730_v26 = vld [vmem:[%s10997_s21 + $0x3c8] sm:$0xff]  }
 0x3f4   : > { %v8885_v33 = vpack.c.bf16 %v4856_v27, %v4856_v27  ;;  %v4857_v34 = vmax.f32 %v3463_v28, 0.0  ;;  %9912 = vmatmul.mubr.msk.bf16.gmra.mrb[216].mxu0 %vm1960_vm3, %v10724_v22  ;;  %v9129_v35 = vpack.c.bf16 %v5100_v29, %v5100_v29  ;;  %v5101_v36 = vmax.f32 %v4439_v30, 0.0  ;;  %10400 = vmatmul.mubr.msk.bf16.gmra.mrb[216].mxu1 %vm1960_vm3, %v10725_v25 }
 0x3f5   : > { %9915 = vmatprep.mubr.msk.bf16.mxu0 %vm10855_vm1, %v10854_v0  ;;  %10403 = vmatprep.mubr.msk.bf16.mxu1 %vm10855_vm1, %v10854_v0 }
 0x3f6   : > { %7287 = vst.msk [vmem:[%s11252_s23 + $0x2d8] sm:$0xf] %vm7104_vm4, %v8885_v33  ;;  %v8886_v37 = vpack.c.bf16 %v4857_v34, %v4857_v34  ;;  %7531 = vst.msk [vmem:[%s11252_s23 + $0x6a8] sm:$0xf] %vm7104_vm4, %v9129_v35  ;;  %v9130_v38 = vpack.c.bf16 %v5101_v36, %v5101_v36 }
 0x3f7   : > { %v3467_v39 = vpop.f32.mrb[112].mxu0  ;;  %v4443_v40 = vpop.f32.mrb[112].mxu1 }
 0x3f8   : > { %7288 = vst.msk [vmem:[%s11252_s23 + $0x2dc] sm:$0xf] %vm7104_vm4, %v8886_v37  ;;  %7532 = vst.msk [vmem:[%s11252_s23 + $0x6ac] sm:$0xf] %vm7104_vm4, %v9130_v38  ;;  %v3468_v41 = vadd.f32 %v12985_v32, %v3467_v39  ;;  %v9809_v42 = vpop.f32.mrb[113].mxu0  ;;  %v4444_v44 = vadd.f32 %v12985_v32, %v4443_v40  ;;  %v10297_v45 = vpop.f32.mrb[113].mxu1 }
 0x3f9   : > { %v3470_v47 = vpop.f32.mrb[114].mxu0  ;;  %v4446_v48 = vpop.f32.mrb[114].mxu1 }
 0x3fa   : > { %v4858_v49 = vmax.f32 %v3468_v41, 0.0  ;;  %v3471_v50 = vadd.f32 %v12985_v32, %v3470_v47  ;;  %v9810_v51 = vpop.f32.mrb[115].mxu0  ;;  %v5102_v52 = vmax.f32 %v4444_v44, 0.0  ;;  %v4447_v53 = vadd.f32 %v12985_v32, %v4446_v48  ;;  %v10298_v54 = vpop.f32.mrb[115].mxu1 }
 0x3fc   : > { %v8887_v55 = vpack.c.bf16 %v4858_v49, %v4858_v49  ;;  %v4859_v56 = vmax.f32 %v3471_v50, 0.0  ;;  %9916 = vmatmul.mubr.msk.bf16.gmra.mrb[220].mxu0 %vm1960_vm3, %v10726_v43  ;;  %v9131_v57 = vpack.c.bf16 %v5102_v52, %v5102_v52  ;;  %v5103_v58 = vmax.f32 %v4447_v53, 0.0  ;;  %10404 = vmatmul.mubr.msk.bf16.gmra.mrb[220].mxu1 %vm1960_vm3, %v10727_v46 }
 0x3fd   : > { %9919 = vmatprep.mubr.msk.bf16.mxu0 %vm10855_vm1, %v10854_v0  ;;  %10407 = vmatprep.mubr.msk.bf16.mxu1 %vm10855_vm1, %v10854_v0 }
 0x3fe   : > { %7289 = vst.msk [vmem:[%s11252_s23 + $0x2e0] sm:$0xf] %vm7104_vm4, %v8887_v55  ;;  %v8888_v59 = vpack.c.bf16 %v4859_v56, %v4859_v56  ;;  %7533 = vst.msk [vmem:[%s11252_s23 + $0x6b0] sm:$0xf] %vm7104_vm4, %v9131_v57  ;;  %v9132_v60 = vpack.c.bf16 %v5103_v58, %v5103_v58 }
 0x3ff   : > { %v3475_v61 = vpop.f32.mrb[116].mxu0  ;;  %v4451_v62 = vpop.f32.mrb[116].mxu1 }
 0x400   : > { %7290 = vst.msk [vmem:[%s11252_s23 + $0x2e4] sm:$0xf] %vm7104_vm4, %v8888_v59  ;;  %7534 = vst.msk [vmem:[%s11252_s23 + $0x6b4] sm:$0xf] %vm7104_vm4, %v9132_v60  ;;  %v3476_v63 = vadd.f32 %v12985_v32, %v3475_v61  ;;  %v9813_v1 = vpop.f32.mrb[117].mxu0  ;;  %v4452_v4 = vadd.f32 %v12985_v32, %v4451_v62  ;;  %v10301_v5 = vpop.f32.mrb[117].mxu1 }
 0x401   : > { %v3478_v7 = vpop.f32.mrb[118].mxu0  ;;  %v4454_v9 = vpop.f32.mrb[118].mxu1 }
 0x402   : > { %v4860_v10 = vmax.f32 %v3476_v63, 0.0  ;;  %v3479_v11 = vadd.f32 %v12985_v32, %v3478_v7  ;;  %v9814_v12 = vpop.f32.mrb[119].mxu0  ;;  %v5104_v13 = vmax.f32 %v4452_v4, 0.0  ;;  %v4455_v14 = vadd.f32 %v12985_v32, %v4454_v9  ;;  %v10302_v15 = vpop.f32.mrb[119].mxu1 }
 0x404   : > { %v8889_v16 = vpack.c.bf16 %v4860_v10, %v4860_v10  ;;  %v4861_v17 = vmax.f32 %v3479_v11, 0.0  ;;  %9920 = vmatmul.mubr.msk.bf16.gmra.mrb[224].mxu0 %vm1960_vm3, %v10728_v3  ;;  %v9133_v18 = vpack.c.bf16 %v5104_v13, %v5104_v13  ;;  %v5105_v19 = vmax.f32 %v4455_v14, 0.0  ;;  %10408 = vmatmul.mubr.msk.bf16.gmra.mrb[224].mxu1 %vm1960_vm3, %v10729_v6 }
 0x405   : > { %9923 = vmatprep.mubr.msk.bf16.mxu0 %vm10855_vm1, %v10854_v0 }
 0x406   : > { %7291 = vst.msk [vmem:[%s11252_s23 + $0x2e8] sm:$0xf] %vm7104_vm4, %v8889_v16  ;;  %v8890_v20 = vpack.c.bf16 %v4861_v17, %v4861_v17  ;;  %7535 = vst.msk [vmem:[%s11252_s23 + $0x6b8] sm:$0xf] %vm7104_vm4, %v9133_v18  ;;  %v9134_v8 = vpack.c.bf16 %v5105_v19, %v5105_v19 }
 0x407   : > { %v3483_v22 = vpop.f32.mrb[120].mxu0  ;;  %v4459_v23 = vpop.f32.mrb[120].mxu1 }
 0x408   : > { %7292 = vst.msk [vmem:[%s11252_s23 + $0x2ec] sm:$0xf] %vm7104_vm4, %v8890_v20  ;;  %7536 = vst.msk [vmem:[%s11252_s23 + $0x6bc] sm:$0xf] %vm7104_vm4, %v9134_v8  ;;  %v3484_v24 = vadd.f32 %v12985_v32, %v3483_v22  ;;  %v9817_v25 = vpop.f32.mrb[121].mxu0  ;;  %v4460_v2 = vadd.f32 %v12985_v32, %v4459_v23  ;;  %v10305_v0 = vpop.f32.mrb[121].mxu1 }
 0x409   : > { %v3486_v27 = vpop.f32.mrb[122].mxu0  ;;  %v4462_v28 = vpop.f32.mrb[122].mxu1 }
 0x40a   : > { %v4862_v21 = vmax.f32 %v3484_v24, 0.0  ;;  %v3487_v29 = vadd.f32 %v12985_v32, %v3486_v27  ;;  %v9818_v30 = vpop.f32.mrb[123].mxu0  ;;  %v5106_v31 = vmax.f32 %v4460_v2, 0.0  ;;  %v4463_v33 = vadd.f32 %v12985_v32, %v4462_v28  ;;  %v10306_v34 = vpop.f32.mrb[123].mxu1 }
 0x40c   : > { %v8891_v35 = vpack.c.bf16 %v4862_v21, %v4862_v21  ;;  %v4863_v36 = vmax.f32 %v3487_v29, 0.0  ;;  %9924 = vmatmul.mubr.msk.bf16.gmra.mrb[228].mxu0 %vm1960_vm3, %v10730_v26  ;;  %v9135_v37 = vpack.c.bf16 %v5106_v31, %v5106_v31  ;;  %v5107_v38 = vmax.f32 %v4463_v33, 0.0 }
 0x40e   : > { %7293 = vst.msk [vmem:[%s11252_s23 + $0x2f0] sm:$0xf] %vm7104_vm4, %v8891_v35  ;;  %v8892_v39 = vpack.c.bf16 %v4863_v36, %v4863_v36  ;;  %7537 = vst.msk [vmem:[%s11252_s23 + $0x6c0] sm:$0xf] %vm7104_vm4, %v9135_v37  ;;  %v9136_v40 = vpack.c.bf16 %v5107_v38, %v5107_v38 }
 0x40f   : > { %v3491_v41 = vpop.f32.mrb[124].mxu0  ;;  %v4467_v42 = vpop.f32.mrb[124].mxu1 }
 0x410   : > { %7294 = vst.msk [vmem:[%s11252_s23 + $0x2f4] sm:$0xf] %vm7104_vm4, %v8892_v39  ;;  %7538 = vst.msk [vmem:[%s11252_s23 + $0x6c4] sm:$0xf] %vm7104_vm4, %v9136_v40  ;;  %v3492_v43 = vadd.f32 %v12985_v32, %v3491_v41  ;;  %v9821_v44 = vpop.f32.mrb[125].mxu0  ;;  %v4468_v45 = vadd.f32 %v12985_v32, %v4467_v42  ;;  %v10309_v46 = vpop.f32.mrb[125].mxu1 }
 0x411   : > { %v3494_v47 = vpop.f32.mrb[126].mxu0  ;;  %v4470_v48 = vpop.f32.mrb[126].mxu1 }
 0x412   : > { %v4864_v49 = vmax.f32 %v3492_v43, 0.0  ;;  %v3495_v50 = vadd.f32 %v12985_v32, %v3494_v47  ;;  %v9822_v51 = vpop.f32.mrb[127].mxu0  ;;  %v5108_v52 = vmax.f32 %v4468_v45, 0.0  ;;  %v4471_v53 = vadd.f32 %v12985_v32, %v4470_v48  ;;  %v10310_v54 = vpop.f32.mrb[127].mxu1 }
 0x414   : > { %v8893_v55 = vpack.c.bf16 %v4864_v49, %v4864_v49  ;;  %v4865_v56 = vmax.f32 %v3495_v50, 0.0  ;;  %v9137_v57 = vpack.c.bf16 %v5108_v52, %v5108_v52  ;;  %v5109_v58 = vmax.f32 %v4471_v53, 0.0 }
 0x416   : > { %7295 = vst.msk [vmem:[%s11252_s23 + $0x2f8] sm:$0xf] %vm7104_vm4, %v8893_v55  ;;  %v8894_v59 = vpack.c.bf16 %v4865_v56, %v4865_v56  ;;  %7539 = vst.msk [vmem:[%s11252_s23 + $0x6c8] sm:$0xf] %vm7104_vm4, %v9137_v57  ;;  %v9138_v60 = vpack.c.bf16 %v5109_v58, %v5109_v58 }
 0x417   : > { %v3499_v61 = vpop.f32.mrb[128].mxu0  ;;  %v4475_v62 = vpop.f32.mrb[128].mxu1 }
 0x418   : > { %7296 = vst.msk [vmem:[%s11252_s23 + $0x2fc] sm:$0xf] %vm7104_vm4, %v8894_v59  ;;  %7540 = vst.msk [vmem:[%s11252_s23 + $0x6cc] sm:$0xf] %vm7104_vm4, %v9138_v60  ;;  %v3500_v63 = vadd.f32 %v12985_v32, %v3499_v61  ;;  %v9825_v1 = vpop.f32.mrb[129].mxu0  ;;  %v4476_v3 = vadd.f32 %v12985_v32, %v4475_v62  ;;  %v10313_v4 = vpop.f32.mrb[129].mxu1 }
 0x419   : > { %v3502_v5 = vpop.f32.mrb[130].mxu0  ;;  %v4478_v6 = vpop.f32.mrb[130].mxu1 }
 0x41a   : > { %v4866_v7 = vmax.f32 %v3500_v63, 0.0  ;;  %v3503_v9 = vadd.f32 %v12985_v32, %v3502_v5  ;;  %v9826_v10 = vpop.f32.mrb[131].mxu0  ;;  %v5110_v11 = vmax.f32 %v4476_v3, 0.0  ;;  %v4479_v12 = vadd.f32 %v12985_v32, %v4478_v6  ;;  %v10314_v13 = vpop.f32.mrb[131].mxu1 }
 0x41c   : > { %v8895_v14 = vpack.c.bf16 %v4866_v7, %v4866_v7  ;;  %v4867_v15 = vmax.f32 %v3503_v9, 0.0  ;;  %v9139_v16 = vpack.c.bf16 %v5110_v11, %v5110_v11  ;;  %v5111_v17 = vmax.f32 %v4479_v12, 0.0 }
 0x41e   : > { %7297 = vst.msk [vmem:[%s11252_s23 + $0x300] sm:$0xf] %vm7104_vm4, %v8895_v14  ;;  %v8896_v18 = vpack.c.bf16 %v4867_v15, %v4867_v15  ;;  %7541 = vst.msk [vmem:[%s11252_s23 + $0x6d0] sm:$0xf] %vm7104_vm4, %v9139_v16  ;;  %v9140_v19 = vpack.c.bf16 %v5111_v17, %v5111_v17 }
 0x41f   : > { %v3507_v20 = vpop.f32.mrb[132].mxu0  ;;  %v4483_v8 = vpop.f32.mrb[132].mxu1 }
 0x420   : > { %7298 = vst.msk [vmem:[%s11252_s23 + $0x304] sm:$0xf] %vm7104_vm4, %v8896_v18  ;;  %7542 = vst.msk [vmem:[%s11252_s23 + $0x6d4] sm:$0xf] %vm7104_vm4, %v9140_v19  ;;  %v3508_v22 = vadd.f32 %v12985_v32, %v3507_v20  ;;  %v9829_v23 = vpop.f32.mrb[133].mxu0  ;;  %v4484_v24 = vadd.f32 %v12985_v32, %v4483_v8  ;;  %v10317_v25 = vpop.f32.mrb[133].mxu1 }
 0x421   : > { %v3510_v26 = vpop.f32.mrb[134].mxu0  ;;  %v4486_v2 = vpop.f32.mrb[134].mxu1 }
 0x422   : > { %v4868_v0 = vmax.f32 %v3508_v22, 0.0  ;;  %v3511_v27 = vadd.f32 %v12985_v32, %v3510_v26  ;;  %v9830_v28 = vpop.f32.mrb[135].mxu0  ;;  %v5112_v21 = vmax.f32 %v4484_v24, 0.0  ;;  %v4487_v29 = vadd.f32 %v12985_v32, %v4486_v2  ;;  %v10318_v30 = vpop.f32.mrb[135].mxu1 }
 0x424   : > { %v8897_v31 = vpack.c.bf16 %v4868_v0, %v4868_v0  ;;  %v4869_v33 = vmax.f32 %v3511_v27, 0.0  ;;  %v9141_v34 = vpack.c.bf16 %v5112_v21, %v5112_v21  ;;  %v5113_v35 = vmax.f32 %v4487_v29, 0.0 }
 0x426   : > { %7299 = vst.msk [vmem:[%s11252_s23 + $0x308] sm:$0xf] %vm7104_vm4, %v8897_v31  ;;  %v8898_v36 = vpack.c.bf16 %v4869_v33, %v4869_v33  ;;  %7543 = vst.msk [vmem:[%s11252_s23 + $0x6d8] sm:$0xf] %vm7104_vm4, %v9141_v34  ;;  %v9142_v37 = vpack.c.bf16 %v5113_v35, %v5113_v35 }
 0x427   : > { %v3515_v38 = vpop.f32.mrb[136].mxu0  ;;  %v4491_v39 = vpop.f32.mrb[136].mxu1 }
 0x428   : > { %7300 = vst.msk [vmem:[%s11252_s23 + $0x30c] sm:$0xf] %vm7104_vm4, %v8898_v36  ;;  %7544 = vst.msk [vmem:[%s11252_s23 + $0x6dc] sm:$0xf] %vm7104_vm4, %v9142_v37  ;;  %v3516_v40 = vadd.f32 %v12985_v32, %v3515_v38  ;;  %v9833_v41 = vpop.f32.mrb[137].mxu0  ;;  %v4492_v42 = vadd.f32 %v12985_v32, %v4491_v39  ;;  %v10321_v43 = vpop.f32.mrb[137].mxu1 }
 0x429   : > { %v3518_v44 = vpop.f32.mrb[138].mxu0  ;;  %v4494_v45 = vpop.f32.mrb[138].mxu1 }
 0x42a   : > { %v4870_v46 = vmax.f32 %v3516_v40, 0.0  ;;  %v3519_v47 = vadd.f32 %v12985_v32, %v3518_v44  ;;  %v9834_v48 = vpop.f32.mrb[139].mxu0  ;;  %v5114_v49 = vmax.f32 %v4492_v42, 0.0  ;;  %v4495_v50 = vadd.f32 %v12985_v32, %v4494_v45  ;;  %v10322_v51 = vpop.f32.mrb[139].mxu1 }
 0x42c   : > { %v8899_v52 = vpack.c.bf16 %v4870_v46, %v4870_v46  ;;  %v4871_v53 = vmax.f32 %v3519_v47, 0.0  ;;  %v9143_v54 = vpack.c.bf16 %v5114_v49, %v5114_v49  ;;  %v5115_v55 = vmax.f32 %v4495_v50, 0.0 }
 0x42e   : > { %7301 = vst.msk [vmem:[%s11252_s23 + $0x310] sm:$0xf] %vm7104_vm4, %v8899_v52  ;;  %v8900_v56 = vpack.c.bf16 %v4871_v53, %v4871_v53  ;;  %7545 = vst.msk [vmem:[%s11252_s23 + $0x6e0] sm:$0xf] %vm7104_vm4, %v9143_v54  ;;  %v9144_v57 = vpack.c.bf16 %v5115_v55, %v5115_v55 }
 0x42f   : > { %v3523_v58 = vpop.f32.mrb[140].mxu0  ;;  %v4499_v59 = vpop.f32.mrb[140].mxu1 }
 0x430   : > { %7302 = vst.msk [vmem:[%s11252_s23 + $0x314] sm:$0xf] %vm7104_vm4, %v8900_v56  ;;  %7546 = vst.msk [vmem:[%s11252_s23 + $0x6e4] sm:$0xf] %vm7104_vm4, %v9144_v57  ;;  %v3524_v60 = vadd.f32 %v12985_v32, %v3523_v58  ;;  %v9837_v61 = vpop.f32.mrb[141].mxu0  ;;  %v4500_v62 = vadd.f32 %v12985_v32, %v4499_v59  ;;  %v10325_v63 = vpop.f32.mrb[141].mxu1 }
 0x431   : > { %v3526_v1 = vpop.f32.mrb[142].mxu0  ;;  %v4502_v3 = vpop.f32.mrb[142].mxu1 }
 0x432   : > { %v4872_v4 = vmax.f32 %v3524_v60, 0.0  ;;  %v3527_v5 = vadd.f32 %v12985_v32, %v3526_v1  ;;  %v9838_v6 = vpop.f32.mrb[143].mxu0  ;;  %v5116_v7 = vmax.f32 %v4500_v62, 0.0  ;;  %v4503_v9 = vadd.f32 %v12985_v32, %v4502_v3  ;;  %v10326_v10 = vpop.f32.mrb[143].mxu1 }
 0x434   : > { %v8901_v11 = vpack.c.bf16 %v4872_v4, %v4872_v4  ;;  %v4873_v12 = vmax.f32 %v3527_v5, 0.0  ;;  %v9145_v13 = vpack.c.bf16 %v5116_v7, %v5116_v7  ;;  %v5117_v14 = vmax.f32 %v4503_v9, 0.0 }
 0x436   : > { %7303 = vst.msk [vmem:[%s11252_s23 + $0x318] sm:$0xf] %vm7104_vm4, %v8901_v11  ;;  %v8902_v15 = vpack.c.bf16 %v4873_v12, %v4873_v12  ;;  %7547 = vst.msk [vmem:[%s11252_s23 + $0x6e8] sm:$0xf] %vm7104_vm4, %v9145_v13  ;;  %v9146_v16 = vpack.c.bf16 %v5117_v14, %v5117_v14 }
 0x437   : > { %v3531_v17 = vpop.f32.mrb[144].mxu0  ;;  %v4507_v18 = vpop.f32.mrb[144].mxu1 }
 0x438   : > { %7304 = vst.msk [vmem:[%s11252_s23 + $0x31c] sm:$0xf] %vm7104_vm4, %v8902_v15  ;;  %7548 = vst.msk [vmem:[%s11252_s23 + $0x6ec] sm:$0xf] %vm7104_vm4, %v9146_v16  ;;  %v3532_v19 = vadd.f32 %v12985_v32, %v3531_v17  ;;  %v9841_v20 = vpop.f32.mrb[145].mxu0  ;;  %v4508_v8 = vadd.f32 %v12985_v32, %v4507_v18  ;;  %v10329_v22 = vpop.f32.mrb[145].mxu1 }
 0x439   : > { %v3534_v23 = vpop.f32.mrb[146].mxu0  ;;  %v4510_v24 = vpop.f32.mrb[146].mxu1 }
 0x43a   : > { %v4874_v25 = vmax.f32 %v3532_v19, 0.0  ;;  %v3535_v26 = vadd.f32 %v12985_v32, %v3534_v23  ;;  %v9842_v2 = vpop.f32.mrb[147].mxu0  ;;  %v5118_v0 = vmax.f32 %v4508_v8, 0.0  ;;  %v4511_v27 = vadd.f32 %v12985_v32, %v4510_v24  ;;  %v10330_v28 = vpop.f32.mrb[147].mxu1 }
 0x43c   : > { %v8903_v21 = vpack.c.bf16 %v4874_v25, %v4874_v25  ;;  %v4875_v29 = vmax.f32 %v3535_v26, 0.0  ;;  %v9147_v30 = vpack.c.bf16 %v5118_v0, %v5118_v0  ;;  %v5119_v31 = vmax.f32 %v4511_v27, 0.0 }
 0x43e   : > { %7305 = vst.msk [vmem:[%s11252_s23 + $0x320] sm:$0xf] %vm7104_vm4, %v8903_v21  ;;  %v8904_v33 = vpack.c.bf16 %v4875_v29, %v4875_v29  ;;  %7549 = vst.msk [vmem:[%s11252_s23 + $0x6f0] sm:$0xf] %vm7104_vm4, %v9147_v30  ;;  %v9148_v34 = vpack.c.bf16 %v5119_v31, %v5119_v31 }
 0x43f   : > { %v3539_v35 = vpop.f32.mrb[148].mxu0  ;;  %v4515_v36 = vpop.f32.mrb[148].mxu1 }
 0x440   : > { %7306 = vst.msk [vmem:[%s11252_s23 + $0x324] sm:$0xf] %vm7104_vm4, %v8904_v33  ;;  %7550 = vst.msk [vmem:[%s11252_s23 + $0x6f4] sm:$0xf] %vm7104_vm4, %v9148_v34  ;;  %v3540_v37 = vadd.f32 %v12985_v32, %v3539_v35  ;;  %v9845_v38 = vpop.f32.mrb[149].mxu0  ;;  %v4516_v39 = vadd.f32 %v12985_v32, %v4515_v36  ;;  %v10333_v40 = vpop.f32.mrb[149].mxu1 }
 0x441   : > { %v3542_v41 = vpop.f32.mrb[150].mxu0  ;;  %v4518_v42 = vpop.f32.mrb[150].mxu1 }
 0x442   : > { %v4876_v43 = vmax.f32 %v3540_v37, 0.0  ;;  %v3543_v44 = vadd.f32 %v12985_v32, %v3542_v41  ;;  %v9846_v45 = vpop.f32.mrb[151].mxu0  ;;  %v5120_v46 = vmax.f32 %v4516_v39, 0.0  ;;  %v4519_v47 = vadd.f32 %v12985_v32, %v4518_v42  ;;  %v10334_v48 = vpop.f32.mrb[151].mxu1 }
 0x444   : > { %v8905_v49 = vpack.c.bf16 %v4876_v43, %v4876_v43  ;;  %v4877_v50 = vmax.f32 %v3543_v44, 0.0  ;;  %v9149_v51 = vpack.c.bf16 %v5120_v46, %v5120_v46  ;;  %v5121_v52 = vmax.f32 %v4519_v47, 0.0 }
 0x446   : > { %7307 = vst.msk [vmem:[%s11252_s23 + $0x328] sm:$0xf] %vm7104_vm4, %v8905_v49  ;;  %v8906_v53 = vpack.c.bf16 %v4877_v50, %v4877_v50  ;;  %7551 = vst.msk [vmem:[%s11252_s23 + $0x6f8] sm:$0xf] %vm7104_vm4, %v9149_v51  ;;  %v9150_v54 = vpack.c.bf16 %v5121_v52, %v5121_v52 }
 0x447   : > { %v3547_v55 = vpop.f32.mrb[152].mxu0  ;;  %v4523_v56 = vpop.f32.mrb[152].mxu1 }
 0x448   : > { %7308 = vst.msk [vmem:[%s11252_s23 + $0x32c] sm:$0xf] %vm7104_vm4, %v8906_v53  ;;  %7552 = vst.msk [vmem:[%s11252_s23 + $0x6fc] sm:$0xf] %vm7104_vm4, %v9150_v54  ;;  %v3548_v57 = vadd.f32 %v12985_v32, %v3547_v55  ;;  %v9849_v58 = vpop.f32.mrb[153].mxu0  ;;  %v4524_v59 = vadd.f32 %v12985_v32, %v4523_v56  ;;  %v10337_v60 = vpop.f32.mrb[153].mxu1 }
 0x449   : > { %v3550_v61 = vpop.f32.mrb[154].mxu0  ;;  %v4526_v62 = vpop.f32.mrb[154].mxu1 }
 0x44a   : > { %v4878_v63 = vmax.f32 %v3548_v57, 0.0  ;;  %v3551_v1 = vadd.f32 %v12985_v32, %v3550_v61  ;;  %v9850_v3 = vpop.f32.mrb[155].mxu0  ;;  %v5122_v4 = vmax.f32 %v4524_v59, 0.0  ;;  %v4527_v5 = vadd.f32 %v12985_v32, %v4526_v62  ;;  %v10338_v6 = vpop.f32.mrb[155].mxu1  ;;  %v13284_v61 = vld [vmem:[%s13539_s2] ss:$0 sm:$0xff] }
 0x44c   : > { %v8907_v7 = vpack.c.bf16 %v4878_v63, %v4878_v63  ;;  %v4879_v9 = vmax.f32 %v3551_v1, 0.0  ;;  %v9151_v10 = vpack.c.bf16 %v5122_v4, %v5122_v4  ;;  %v5123_v11 = vmax.f32 %v4527_v5, 0.0 }
 0x44e   : > { %7309 = vst.msk [vmem:[%s11252_s23 + $0x330] sm:$0xf] %vm7104_vm4, %v8907_v7  ;;  %v8908_v12 = vpack.c.bf16 %v4879_v9, %v4879_v9  ;;  %7553 = vst.msk [vmem:[%s11252_s23 + $0x700] sm:$0xf] %vm7104_vm4, %v9151_v10  ;;  %v9152_v13 = vpack.c.bf16 %v5123_v11, %v5123_v11 }
 0x44f   : > { %v3555_v14 = vpop.f32.mrb[156].mxu0  ;;  %v4531_v15 = vpop.f32.mrb[156].mxu1 }
 0x450   : > { %7310 = vst.msk [vmem:[%s11252_s23 + $0x334] sm:$0xf] %vm7104_vm4, %v8908_v12  ;;  %7554 = vst.msk [vmem:[%s11252_s23 + $0x704] sm:$0xf] %vm7104_vm4, %v9152_v13  ;;  %v3556_v16 = vadd.f32 %v12985_v32, %v3555_v14  ;;  %v9853_v17 = vpop.f32.mrb[157].mxu0  ;;  %v4532_v18 = vadd.f32 %v12985_v32, %v4531_v15  ;;  %v10341_v19 = vpop.f32.mrb[157].mxu1 }
 0x451   : > { %v3558_v20 = vpop.f32.mrb[158].mxu0  ;;  %v4534_v8 = vpop.f32.mrb[158].mxu1 }
 0x452   : > { %v4880_v22 = vmax.f32 %v3556_v16, 0.0  ;;  %v3559_v23 = vadd.f32 %v12985_v32, %v3558_v20  ;;  %v9854_v24 = vpop.f32.mrb[159].mxu0  ;;  %v5124_v25 = vmax.f32 %v4532_v18, 0.0  ;;  %v4535_v26 = vadd.f32 %v12985_v32, %v4534_v8  ;;  %v10342_v2 = vpop.f32.mrb[159].mxu1 }
 0x454   : > { %v8909_v0 = vpack.c.bf16 %v4880_v22, %v4880_v22  ;;  %v4881_v27 = vmax.f32 %v3559_v23, 0.0  ;;  %v9153_v28 = vpack.c.bf16 %v5124_v25, %v5124_v25  ;;  %v5125_v21 = vmax.f32 %v4535_v26, 0.0 }
 0x456   : > { %7311 = vst.msk [vmem:[%s11252_s23 + $0x338] sm:$0xf] %vm7104_vm4, %v8909_v0  ;;  %v8910_v29 = vpack.c.bf16 %v4881_v27, %v4881_v27  ;;  %7555 = vst.msk [vmem:[%s11252_s23 + $0x708] sm:$0xf] %vm7104_vm4, %v9153_v28  ;;  %v9154_v30 = vpack.c.bf16 %v5125_v21, %v5125_v21 }
 0x457   : > { %v3563_v31 = vpop.f32.mrb[160].mxu0  ;;  %v4539_v33 = vpop.f32.mrb[160].mxu1 }
 0x458   : > { %7312 = vst.msk [vmem:[%s11252_s23 + $0x33c] sm:$0xf] %vm7104_vm4, %v8910_v29  ;;  %7556 = vst.msk [vmem:[%s11252_s23 + $0x70c] sm:$0xf] %vm7104_vm4, %v9154_v30  ;;  %v3564_v34 = vadd.f32 %v12985_v32, %v3563_v31  ;;  %v9857_v35 = vpop.f32.mrb[161].mxu0  ;;  %v4540_v36 = vadd.f32 %v12985_v32, %v4539_v33  ;;  %v10345_v37 = vpop.f32.mrb[161].mxu1 }
 0x459   : > { %v3566_v38 = vpop.f32.mrb[162].mxu0  ;;  %v4542_v39 = vpop.f32.mrb[162].mxu1 }
 0x45a   : > { %v4882_v40 = vmax.f32 %v3564_v34, 0.0  ;;  %v3567_v41 = vadd.f32 %v12985_v32, %v3566_v38  ;;  %v9858_v42 = vpop.f32.mrb[163].mxu0  ;;  %v5126_v43 = vmax.f32 %v4540_v36, 0.0  ;;  %v4543_v44 = vadd.f32 %v12985_v32, %v4542_v39  ;;  %v10346_v45 = vpop.f32.mrb[163].mxu1 }
 0x45c   : > { %v8911_v46 = vpack.c.bf16 %v4882_v40, %v4882_v40  ;;  %v4883_v47 = vmax.f32 %v3567_v41, 0.0  ;;  %v9155_v48 = vpack.c.bf16 %v5126_v43, %v5126_v43  ;;  %v5127_v49 = vmax.f32 %v4543_v44, 0.0 }
 0x45e   : > { %7313 = vst.msk [vmem:[%s11252_s23 + $0x340] sm:$0xf] %vm7104_vm4, %v8911_v46  ;;  %v8912_v50 = vpack.c.bf16 %v4883_v47, %v4883_v47  ;;  %7557 = vst.msk [vmem:[%s11252_s23 + $0x710] sm:$0xf] %vm7104_vm4, %v9155_v48  ;;  %v9156_v51 = vpack.c.bf16 %v5127_v49, %v5127_v49 }
 0x45f   : > { %v3571_v52 = vpop.f32.mrb[164].mxu0  ;;  %v4547_v53 = vpop.f32.mrb[164].mxu1 }
 0x460   : > { %7314 = vst.msk [vmem:[%s11252_s23 + $0x344] sm:$0xf] %vm7104_vm4, %v8912_v50  ;;  %7558 = vst.msk [vmem:[%s11252_s23 + $0x714] sm:$0xf] %vm7104_vm4, %v9156_v51  ;;  %v3572_v54 = vadd.f32 %v12985_v32, %v3571_v52  ;;  %v9861_v55 = vpop.f32.mrb[165].mxu0  ;;  %v4548_v56 = vadd.f32 %v12985_v32, %v4547_v53  ;;  %v10349_v57 = vpop.f32.mrb[165].mxu1 }
 0x461   : > { %v3574_v58 = vpop.f32.mrb[166].mxu0  ;;  %v4550_v59 = vpop.f32.mrb[166].mxu1 }
 0x462   : > { %v4884_v60 = vmax.f32 %v3572_v54, 0.0  ;;  %v3575_v62 = vadd.f32 %v13284_v61, %v3574_v58  ;;  %v9862_v63 = vpop.f32.mrb[167].mxu0  ;;  %v5128_v1 = vmax.f32 %v4548_v56, 0.0  ;;  %v4551_v3 = vadd.f32 %v13284_v61, %v4550_v59  ;;  %v10350_v4 = vpop.f32.mrb[167].mxu1 }
 0x464   : > { %v8913_v32 = vpack.c.bf16 %v4884_v60, %v4884_v60  ;;  %v4885_v5 = vmax.f32 %v3575_v62, 0.0  ;;  %v9157_v6 = vpack.c.bf16 %v5128_v1, %v5128_v1  ;;  %v5129_v7 = vmax.f32 %v4551_v3, 0.0 }
 0x466   : > { %7315 = vst.msk [vmem:[%s11252_s23 + $0x348] sm:$0xf] %vm7104_vm4, %v8913_v32  ;;  %v8914_v9 = vpack.c.bf16 %v4885_v5, %v4885_v5  ;;  %7559 = vst.msk [vmem:[%s11252_s23 + $0x718] sm:$0xf] %vm7104_vm4, %v9157_v6  ;;  %v9158_v10 = vpack.c.bf16 %v5129_v7, %v5129_v7 }
 0x467   : > { %v3579_v11 = vpop.f32.mrb[168].mxu0  ;;  %v4555_v12 = vpop.f32.mrb[168].mxu1 }
 0x468   : > { %7316 = vst.msk [vmem:[%s11252_s23 + $0x34c] sm:$0xf] %vm7104_vm4, %v8914_v9  ;;  %7560 = vst.msk [vmem:[%s11252_s23 + $0x71c] sm:$0xf] %vm7104_vm4, %v9158_v10  ;;  %v3580_v13 = vadd.f32 %v13284_v61, %v3579_v11  ;;  %v9865_v14 = vpop.f32.mrb[169].mxu0  ;;  %v4556_v15 = vadd.f32 %v13284_v61, %v4555_v12  ;;  %v10353_v16 = vpop.f32.mrb[169].mxu1 }
 0x469   : > { %v3582_v17 = vpop.f32.mrb[170].mxu0  ;;  %v4558_v18 = vpop.f32.mrb[170].mxu1 }
 0x46a   : > { %v4886_v19 = vmax.f32 %v3580_v13, 0.0  ;;  %v3583_v20 = vadd.f32 %v13284_v61, %v3582_v17  ;;  %v9866_v8 = vpop.f32.mrb[171].mxu0  ;;  %v5130_v22 = vmax.f32 %v4556_v15, 0.0  ;;  %v4559_v23 = vadd.f32 %v13284_v61, %v4558_v18  ;;  %v10354_v24 = vpop.f32.mrb[171].mxu1 }
 0x46c   : > { %v8915_v25 = vpack.c.bf16 %v4886_v19, %v4886_v19  ;;  %v4887_v26 = vmax.f32 %v3583_v20, 0.0  ;;  %v9159_v2 = vpack.c.bf16 %v5130_v22, %v5130_v22  ;;  %v5131_v0 = vmax.f32 %v4559_v23, 0.0 }
 0x46e   : > { %7317 = vst.msk [vmem:[%s11252_s23 + $0x350] sm:$0xf] %vm7104_vm4, %v8915_v25  ;;  %v8916_v27 = vpack.c.bf16 %v4887_v26, %v4887_v26  ;;  %7561 = vst.msk [vmem:[%s11252_s23 + $0x720] sm:$0xf] %vm7104_vm4, %v9159_v2  ;;  %v9160_v28 = vpack.c.bf16 %v5131_v0, %v5131_v0 }
 0x46f   : > { %v3587_v21 = vpop.f32.mrb[172].mxu0  ;;  %v4563_v29 = vpop.f32.mrb[172].mxu1 }
 0x470   : > { %7318 = vst.msk [vmem:[%s11252_s23 + $0x354] sm:$0xf] %vm7104_vm4, %v8916_v27  ;;  %7562 = vst.msk [vmem:[%s11252_s23 + $0x724] sm:$0xf] %vm7104_vm4, %v9160_v28  ;;  %v3588_v30 = vadd.f32 %v13284_v61, %v3587_v21  ;;  %v9869_v31 = vpop.f32.mrb[173].mxu0  ;;  %v4564_v33 = vadd.f32 %v13284_v61, %v4563_v29  ;;  %v10357_v34 = vpop.f32.mrb[173].mxu1 }
 0x471   : > { %v3590_v35 = vpop.f32.mrb[174].mxu0  ;;  %v4566_v36 = vpop.f32.mrb[174].mxu1 }
 0x472   : > { %v4888_v37 = vmax.f32 %v3588_v30, 0.0  ;;  %v3591_v38 = vadd.f32 %v13284_v61, %v3590_v35  ;;  %v9870_v39 = vpop.f32.mrb[175].mxu0  ;;  %v5132_v40 = vmax.f32 %v4564_v33, 0.0  ;;  %v4567_v41 = vadd.f32 %v13284_v61, %v4566_v36  ;;  %v10358_v42 = vpop.f32.mrb[175].mxu1 }
 0x474   : > { %v8917_v43 = vpack.c.bf16 %v4888_v37, %v4888_v37  ;;  %v4889_v44 = vmax.f32 %v3591_v38, 0.0  ;;  %v9161_v45 = vpack.c.bf16 %v5132_v40, %v5132_v40  ;;  %v5133_v46 = vmax.f32 %v4567_v41, 0.0 }
 0x476   : > { %7319 = vst.msk [vmem:[%s11252_s23 + $0x358] sm:$0xf] %vm7104_vm4, %v8917_v43  ;;  %v8918_v47 = vpack.c.bf16 %v4889_v44, %v4889_v44  ;;  %7563 = vst.msk [vmem:[%s11252_s23 + $0x728] sm:$0xf] %vm7104_vm4, %v9161_v45  ;;  %v9162_v48 = vpack.c.bf16 %v5133_v46, %v5133_v46 }
 0x477   : > { %v3595_v49 = vpop.f32.mrb[176].mxu0  ;;  %v4571_v50 = vpop.f32.mrb[176].mxu1 }
 0x478   : > { %7320 = vst.msk [vmem:[%s11252_s23 + $0x35c] sm:$0xf] %vm7104_vm4, %v8918_v47  ;;  %7564 = vst.msk [vmem:[%s11252_s23 + $0x72c] sm:$0xf] %vm7104_vm4, %v9162_v48  ;;  %v3596_v51 = vadd.f32 %v13284_v61, %v3595_v49  ;;  %v9873_v52 = vpop.f32.mrb[177].mxu0  ;;  %v4572_v53 = vadd.f32 %v13284_v61, %v4571_v50  ;;  %v10361_v54 = vpop.f32.mrb[177].mxu1 }
 0x479   : > { %v3598_v55 = vpop.f32.mrb[178].mxu0  ;;  %v4574_v56 = vpop.f32.mrb[178].mxu1 }
 0x47a   : > { %v4890_v57 = vmax.f32 %v3596_v51, 0.0  ;;  %v3599_v58 = vadd.f32 %v13284_v61, %v3598_v55  ;;  %v9874_v59 = vpop.f32.mrb[179].mxu0  ;;  %v5134_v60 = vmax.f32 %v4572_v53, 0.0  ;;  %v4575_v62 = vadd.f32 %v13284_v61, %v4574_v56  ;;  %v10362_v63 = vpop.f32.mrb[179].mxu1 }
 0x47c   : > { %v8919_v1 = vpack.c.bf16 %v4890_v57, %v4890_v57  ;;  %v4891_v3 = vmax.f32 %v3599_v58, 0.0  ;;  %v9163_v4 = vpack.c.bf16 %v5134_v60, %v5134_v60  ;;  %v5135_v32 = vmax.f32 %v4575_v62, 0.0 }
 0x47e   : > { %7321 = vst.msk [vmem:[%s11252_s23 + $0x360] sm:$0xf] %vm7104_vm4, %v8919_v1  ;;  %v8920_v5 = vpack.c.bf16 %v4891_v3, %v4891_v3  ;;  %7565 = vst.msk [vmem:[%s11252_s23 + $0x730] sm:$0xf] %vm7104_vm4, %v9163_v4  ;;  %v9164_v6 = vpack.c.bf16 %v5135_v32, %v5135_v32 }
 0x47f   : > { %v3603_v7 = vpop.f32.mrb[180].mxu0  ;;  %v4579_v9 = vpop.f32.mrb[180].mxu1 }
 0x480   : > { %7322 = vst.msk [vmem:[%s11252_s23 + $0x364] sm:$0xf] %vm7104_vm4, %v8920_v5  ;;  %7566 = vst.msk [vmem:[%s11252_s23 + $0x734] sm:$0xf] %vm7104_vm4, %v9164_v6  ;;  %v3604_v10 = vadd.f32 %v13284_v61, %v3603_v7  ;;  %v9877_v11 = vpop.f32.mrb[181].mxu0  ;;  %v4580_v12 = vadd.f32 %v13284_v61, %v4579_v9  ;;  %v10365_v13 = vpop.f32.mrb[181].mxu1 }
 0x481   : > { %v3606_v14 = vpop.f32.mrb[182].mxu0  ;;  %v4582_v15 = vpop.f32.mrb[182].mxu1 }
 0x482   : > { %v4892_v16 = vmax.f32 %v3604_v10, 0.0  ;;  %v3607_v17 = vadd.f32 %v13284_v61, %v3606_v14  ;;  %v9878_v18 = vpop.f32.mrb[183].mxu0  ;;  %v5136_v19 = vmax.f32 %v4580_v12, 0.0  ;;  %v4583_v20 = vadd.f32 %v13284_v61, %v4582_v15  ;;  %v10366_v8 = vpop.f32.mrb[183].mxu1 }
 0x484   : > { %v8921_v22 = vpack.c.bf16 %v4892_v16, %v4892_v16  ;;  %v4893_v23 = vmax.f32 %v3607_v17, 0.0  ;;  %v9165_v24 = vpack.c.bf16 %v5136_v19, %v5136_v19  ;;  %v5137_v25 = vmax.f32 %v4583_v20, 0.0 }
 0x486   : > { %7323 = vst.msk [vmem:[%s11252_s23 + $0x368] sm:$0xf] %vm7104_vm4, %v8921_v22  ;;  %v8922_v26 = vpack.c.bf16 %v4893_v23, %v4893_v23  ;;  %7567 = vst.msk [vmem:[%s11252_s23 + $0x738] sm:$0xf] %vm7104_vm4, %v9165_v24  ;;  %v9166_v2 = vpack.c.bf16 %v5137_v25, %v5137_v25 }
 0x487   : > { %v3611_v0 = vpop.f32.mrb[184].mxu0  ;;  %v4587_v27 = vpop.f32.mrb[184].mxu1 }
 0x488   : > { %7324 = vst.msk [vmem:[%s11252_s23 + $0x36c] sm:$0xf] %vm7104_vm4, %v8922_v26  ;;  %7568 = vst.msk [vmem:[%s11252_s23 + $0x73c] sm:$0xf] %vm7104_vm4, %v9166_v2  ;;  %v3612_v28 = vadd.f32 %v13284_v61, %v3611_v0  ;;  %v9881_v21 = vpop.f32.mrb[185].mxu0  ;;  %v4588_v29 = vadd.f32 %v13284_v61, %v4587_v27  ;;  %v10369_v30 = vpop.f32.mrb[185].mxu1 }
 0x489   : > { %v3614_v31 = vpop.f32.mrb[186].mxu0  ;;  %v4590_v33 = vpop.f32.mrb[186].mxu1 }
 0x48a   : > { %v4894_v34 = vmax.f32 %v3612_v28, 0.0  ;;  %v3615_v35 = vadd.f32 %v13284_v61, %v3614_v31  ;;  %v9882_v36 = vpop.f32.mrb[187].mxu0  ;;  %v5138_v37 = vmax.f32 %v4588_v29, 0.0  ;;  %v4591_v38 = vadd.f32 %v13284_v61, %v4590_v33  ;;  %v10370_v39 = vpop.f32.mrb[187].mxu1 }
 0x48c   : > { %v8923_v40 = vpack.c.bf16 %v4894_v34, %v4894_v34  ;;  %v4895_v41 = vmax.f32 %v3615_v35, 0.0  ;;  %v9167_v42 = vpack.c.bf16 %v5138_v37, %v5138_v37  ;;  %v5139_v43 = vmax.f32 %v4591_v38, 0.0 }
 0x48e   : > { %7325 = vst.msk [vmem:[%s11252_s23 + $0x370] sm:$0xf] %vm7104_vm4, %v8923_v40  ;;  %v8924_v44 = vpack.c.bf16 %v4895_v41, %v4895_v41  ;;  %7569 = vst.msk [vmem:[%s11252_s23 + $0x740] sm:$0xf] %vm7104_vm4, %v9167_v42  ;;  %v9168_v45 = vpack.c.bf16 %v5139_v43, %v5139_v43 }
 0x48f   : > { %v3619_v46 = vpop.f32.mrb[188].mxu0  ;;  %v4595_v47 = vpop.f32.mrb[188].mxu1 }
 0x490   : > { %7326 = vst.msk [vmem:[%s11252_s23 + $0x374] sm:$0xf] %vm7104_vm4, %v8924_v44  ;;  %7570 = vst.msk [vmem:[%s11252_s23 + $0x744] sm:$0xf] %vm7104_vm4, %v9168_v45  ;;  %v3620_v48 = vadd.f32 %v13284_v61, %v3619_v46  ;;  %v9885_v49 = vpop.f32.mrb[189].mxu0  ;;  %v4596_v50 = vadd.f32 %v13284_v61, %v4595_v47  ;;  %v10373_v51 = vpop.f32.mrb[189].mxu1 }
 0x491   : > { %v3622_v52 = vpop.f32.mrb[190].mxu0  ;;  %v4598_v53 = vpop.f32.mrb[190].mxu1 }
 0x492   : > { %v4896_v54 = vmax.f32 %v3620_v48, 0.0  ;;  %v3623_v55 = vadd.f32 %v13284_v61, %v3622_v52  ;;  %v9886_v56 = vpop.f32.mrb[191].mxu0  ;;  %v5140_v57 = vmax.f32 %v4596_v50, 0.0  ;;  %v4599_v58 = vadd.f32 %v13284_v61, %v4598_v53  ;;  %v10374_v59 = vpop.f32.mrb[191].mxu1 }
 0x494   : > { %v8925_v60 = vpack.c.bf16 %v4896_v54, %v4896_v54  ;;  %v4897_v62 = vmax.f32 %v3623_v55, 0.0  ;;  %v9169_v63 = vpack.c.bf16 %v5140_v57, %v5140_v57  ;;  %v5141_v1 = vmax.f32 %v4599_v58, 0.0 }
 0x496   : > { %7327 = vst.msk [vmem:[%s11252_s23 + $0x378] sm:$0xf] %vm7104_vm4, %v8925_v60  ;;  %v8926_v3 = vpack.c.bf16 %v4897_v62, %v4897_v62  ;;  %7571 = vst.msk [vmem:[%s11252_s23 + $0x748] sm:$0xf] %vm7104_vm4, %v9169_v63  ;;  %v9170_v4 = vpack.c.bf16 %v5141_v1, %v5141_v1 }
 0x497   : > { %v3627_v32 = vpop.f32.mrb[192].mxu0  ;;  %v4603_v5 = vpop.f32.mrb[192].mxu1 }
 0x498   : > { %7328 = vst.msk [vmem:[%s11252_s23 + $0x37c] sm:$0xf] %vm7104_vm4, %v8926_v3  ;;  %7572 = vst.msk [vmem:[%s11252_s23 + $0x74c] sm:$0xf] %vm7104_vm4, %v9170_v4  ;;  %v3628_v6 = vadd.f32 %v13284_v61, %v3627_v32  ;;  %v9889_v7 = vpop.f32.mrb[193].mxu0  ;;  %v4604_v9 = vadd.f32 %v13284_v61, %v4603_v5  ;;  %v10377_v10 = vpop.f32.mrb[193].mxu1 }
 0x499   : > { %v3630_v11 = vpop.f32.mrb[194].mxu0  ;;  %v4606_v12 = vpop.f32.mrb[194].mxu1 }
 0x49a   : > { %v4898_v13 = vmax.f32 %v3628_v6, 0.0  ;;  %v3631_v14 = vadd.f32 %v13284_v61, %v3630_v11  ;;  %v9890_v15 = vpop.f32.mrb[195].mxu0  ;;  %v5142_v16 = vmax.f32 %v4604_v9, 0.0  ;;  %v4607_v17 = vadd.f32 %v13284_v61, %v4606_v12  ;;  %v10378_v18 = vpop.f32.mrb[195].mxu1 }
 0x49c   : > { %v8927_v19 = vpack.c.bf16 %v4898_v13, %v4898_v13  ;;  %v4899_v20 = vmax.f32 %v3631_v14, 0.0  ;;  %v9171_v8 = vpack.c.bf16 %v5142_v16, %v5142_v16  ;;  %v5143_v22 = vmax.f32 %v4607_v17, 0.0 }
 0x49e   : > { %7329 = vst.msk [vmem:[%s11252_s23 + $0x380] sm:$0xf] %vm7104_vm4, %v8927_v19  ;;  %v8928_v23 = vpack.c.bf16 %v4899_v20, %v4899_v20  ;;  %7573 = vst.msk [vmem:[%s11252_s23 + $0x750] sm:$0xf] %vm7104_vm4, %v9171_v8  ;;  %v9172_v24 = vpack.c.bf16 %v5143_v22, %v5143_v22 }
 0x49f   : > { %v3635_v25 = vpop.f32.mrb[196].mxu0  ;;  %v4611_v26 = vpop.f32.mrb[196].mxu1 }
 0x4a0   : > { %7330 = vst.msk [vmem:[%s11252_s23 + $0x384] sm:$0xf] %vm7104_vm4, %v8928_v23  ;;  %7574 = vst.msk [vmem:[%s11252_s23 + $0x754] sm:$0xf] %vm7104_vm4, %v9172_v24  ;;  %v3636_v2 = vadd.f32 %v13284_v61, %v3635_v25  ;;  %v9893_v0 = vpop.f32.mrb[197].mxu0  ;;  %v4612_v27 = vadd.f32 %v13284_v61, %v4611_v26  ;;  %v10381_v28 = vpop.f32.mrb[197].mxu1 }
 0x4a1   : > { %v3638_v21 = vpop.f32.mrb[198].mxu0  ;;  %v4614_v29 = vpop.f32.mrb[198].mxu1 }
 0x4a2   : > { %v4900_v30 = vmax.f32 %v3636_v2, 0.0  ;;  %v3639_v31 = vadd.f32 %v13284_v61, %v3638_v21  ;;  %v9894_v33 = vpop.f32.mrb[199].mxu0  ;;  %v5144_v34 = vmax.f32 %v4612_v27, 0.0  ;;  %v4615_v35 = vadd.f32 %v13284_v61, %v4614_v29  ;;  %v10382_v36 = vpop.f32.mrb[199].mxu1 }
 0x4a4   : > { %v8929_v37 = vpack.c.bf16 %v4900_v30, %v4900_v30  ;;  %v4901_v38 = vmax.f32 %v3639_v31, 0.0  ;;  %v9173_v39 = vpack.c.bf16 %v5144_v34, %v5144_v34  ;;  %v5145_v40 = vmax.f32 %v4615_v35, 0.0 }
 0x4a6   : > { %7331 = vst.msk [vmem:[%s11252_s23 + $0x388] sm:$0xf] %vm7104_vm4, %v8929_v37  ;;  %v8930_v41 = vpack.c.bf16 %v4901_v38, %v4901_v38  ;;  %7575 = vst.msk [vmem:[%s11252_s23 + $0x758] sm:$0xf] %vm7104_vm4, %v9173_v39  ;;  %v9174_v42 = vpack.c.bf16 %v5145_v40, %v5145_v40 }
 0x4a7   : > { %v3643_v43 = vpop.f32.mrb[200].mxu0  ;;  %v4619_v44 = vpop.f32.mrb[200].mxu1 }
 0x4a8   : > { %7332 = vst.msk [vmem:[%s11252_s23 + $0x38c] sm:$0xf] %vm7104_vm4, %v8930_v41  ;;  %7576 = vst.msk [vmem:[%s11252_s23 + $0x75c] sm:$0xf] %vm7104_vm4, %v9174_v42  ;;  %v3644_v45 = vadd.f32 %v13284_v61, %v3643_v43  ;;  %v9897_v46 = vpop.f32.mrb[201].mxu0  ;;  %v4620_v47 = vadd.f32 %v13284_v61, %v4619_v44  ;;  %v10385_v48 = vpop.f32.mrb[201].mxu1 }
 0x4a9   : > { %v3646_v49 = vpop.f32.mrb[202].mxu0  ;;  %v4622_v50 = vpop.f32.mrb[202].mxu1 }
 0x4aa   : > { %v4902_v51 = vmax.f32 %v3644_v45, 0.0  ;;  %v3647_v52 = vadd.f32 %v13284_v61, %v3646_v49  ;;  %v9898_v53 = vpop.f32.mrb[203].mxu0  ;;  %v5146_v54 = vmax.f32 %v4620_v47, 0.0  ;;  %v4623_v55 = vadd.f32 %v13284_v61, %v4622_v50  ;;  %v10386_v56 = vpop.f32.mrb[203].mxu1 }
 0x4ac   : > { %v8931_v57 = vpack.c.bf16 %v4902_v51, %v4902_v51  ;;  %v4903_v58 = vmax.f32 %v3647_v52, 0.0  ;;  %v9175_v59 = vpack.c.bf16 %v5146_v54, %v5146_v54  ;;  %v5147_v60 = vmax.f32 %v4623_v55, 0.0 }
 0x4ae   : > { %7333 = vst.msk [vmem:[%s11252_s23 + $0x390] sm:$0xf] %vm7104_vm4, %v8931_v57  ;;  %v8932_v62 = vpack.c.bf16 %v4903_v58, %v4903_v58  ;;  %7577 = vst.msk [vmem:[%s11252_s23 + $0x760] sm:$0xf] %vm7104_vm4, %v9175_v59  ;;  %v9176_v63 = vpack.c.bf16 %v5147_v60, %v5147_v60 }
 0x4af   : > { %v3651_v1 = vpop.f32.mrb[204].mxu0  ;;  %v4627_v3 = vpop.f32.mrb[204].mxu1 }
 0x4b0   : > { %7334 = vst.msk [vmem:[%s11252_s23 + $0x394] sm:$0xf] %vm7104_vm4, %v8932_v62  ;;  %7578 = vst.msk [vmem:[%s11252_s23 + $0x764] sm:$0xf] %vm7104_vm4, %v9176_v63  ;;  %v3652_v4 = vadd.f32 %v13284_v61, %v3651_v1  ;;  %v9901_v32 = vpop.f32.mrb[205].mxu0  ;;  %v4628_v5 = vadd.f32 %v13284_v61, %v4627_v3  ;;  %v10389_v6 = vpop.f32.mrb[205].mxu1 }
 0x4b1   : > { %v3654_v7 = vpop.f32.mrb[206].mxu0  ;;  %v4630_v9 = vpop.f32.mrb[206].mxu1 }
 0x4b2   : > { %v4904_v10 = vmax.f32 %v3652_v4, 0.0  ;;  %v3655_v11 = vadd.f32 %v13284_v61, %v3654_v7  ;;  %v9902_v12 = vpop.f32.mrb[207].mxu0  ;;  %v5148_v13 = vmax.f32 %v4628_v5, 0.0  ;;  %v4631_v14 = vadd.f32 %v13284_v61, %v4630_v9  ;;  %v10390_v15 = vpop.f32.mrb[207].mxu1 }
 0x4b4   : > { %v8933_v16 = vpack.c.bf16 %v4904_v10, %v4904_v10  ;;  %v4905_v17 = vmax.f32 %v3655_v11, 0.0  ;;  %v9177_v18 = vpack.c.bf16 %v5148_v13, %v5148_v13  ;;  %v5149_v19 = vmax.f32 %v4631_v14, 0.0 }
 0x4b6   : > { %7335 = vst.msk [vmem:[%s11252_s23 + $0x398] sm:$0xf] %vm7104_vm4, %v8933_v16  ;;  %v8934_v20 = vpack.c.bf16 %v4905_v17, %v4905_v17  ;;  %7579 = vst.msk [vmem:[%s11252_s23 + $0x768] sm:$0xf] %vm7104_vm4, %v9177_v18  ;;  %v9178_v8 = vpack.c.bf16 %v5149_v19, %v5149_v19 }
 0x4b7   : > { %v3659_v22 = vpop.f32.mrb[208].mxu0  ;;  %v4635_v23 = vpop.f32.mrb[208].mxu1 }
 0x4b8   : > { %7336 = vst.msk [vmem:[%s11252_s23 + $0x39c] sm:$0xf] %vm7104_vm4, %v8934_v20  ;;  %7580 = vst.msk [vmem:[%s11252_s23 + $0x76c] sm:$0xf] %vm7104_vm4, %v9178_v8  ;;  %v3660_v24 = vadd.f32 %v13284_v61, %v3659_v22  ;;  %v9905_v25 = vpop.f32.mrb[209].mxu0  ;;  %v4636_v26 = vadd.f32 %v13284_v61, %v4635_v23  ;;  %v10393_v2 = vpop.f32.mrb[209].mxu1 }
 0x4b9   : > { %v3662_v0 = vpop.f32.mrb[210].mxu0  ;;  %v4638_v27 = vpop.f32.mrb[210].mxu1 }
 0x4ba   : > { %v4906_v28 = vmax.f32 %v3660_v24, 0.0  ;;  %v3663_v21 = vadd.f32 %v13284_v61, %v3662_v0  ;;  %v9906_v29 = vpop.f32.mrb[211].mxu0  ;;  %v5150_v30 = vmax.f32 %v4636_v26, 0.0  ;;  %v4639_v31 = vadd.f32 %v13284_v61, %v4638_v27  ;;  %v10394_v33 = vpop.f32.mrb[211].mxu1 }
 0x4bc   : > { %v8935_v34 = vpack.c.bf16 %v4906_v28, %v4906_v28  ;;  %v4907_v35 = vmax.f32 %v3663_v21, 0.0  ;;  %v9179_v36 = vpack.c.bf16 %v5150_v30, %v5150_v30  ;;  %v5151_v37 = vmax.f32 %v4639_v31, 0.0 }
 0x4be   : > { %7337 = vst.msk [vmem:[%s11252_s23 + $0x3a0] sm:$0xf] %vm7104_vm4, %v8935_v34  ;;  %v8936_v38 = vpack.c.bf16 %v4907_v35, %v4907_v35  ;;  %7581 = vst.msk [vmem:[%s11252_s23 + $0x770] sm:$0xf] %vm7104_vm4, %v9179_v36  ;;  %v9180_v39 = vpack.c.bf16 %v5151_v37, %v5151_v37 }
 0x4bf   : > { %v3667_v40 = vpop.f32.mrb[212].mxu0  ;;  %v4643_v41 = vpop.f32.mrb[212].mxu1 }
 0x4c0   : > { %7338 = vst.msk [vmem:[%s11252_s23 + $0x3a4] sm:$0xf] %vm7104_vm4, %v8936_v38  ;;  %7582 = vst.msk [vmem:[%s11252_s23 + $0x774] sm:$0xf] %vm7104_vm4, %v9180_v39  ;;  %v3668_v42 = vadd.f32 %v13284_v61, %v3667_v40  ;;  %v9909_v43 = vpop.f32.mrb[213].mxu0  ;;  %v4644_v44 = vadd.f32 %v13284_v61, %v4643_v41  ;;  %v10397_v45 = vpop.f32.mrb[213].mxu1 }
 0x4c1   : > { %v3670_v46 = vpop.f32.mrb[214].mxu0  ;;  %v4646_v47 = vpop.f32.mrb[214].mxu1 }
 0x4c2   : > { %v4908_v48 = vmax.f32 %v3668_v42, 0.0  ;;  %v3671_v49 = vadd.f32 %v13284_v61, %v3670_v46  ;;  %v9910_v50 = vpop.f32.mrb[215].mxu0  ;;  %v5152_v51 = vmax.f32 %v4644_v44, 0.0  ;;  %v4647_v52 = vadd.f32 %v13284_v61, %v4646_v47  ;;  %v10398_v53 = vpop.f32.mrb[215].mxu1 }
 0x4c4   : > { %v8937_v54 = vpack.c.bf16 %v4908_v48, %v4908_v48  ;;  %v4909_v55 = vmax.f32 %v3671_v49, 0.0  ;;  %v9181_v56 = vpack.c.bf16 %v5152_v51, %v5152_v51  ;;  %v5153_v57 = vmax.f32 %v4647_v52, 0.0 }
 0x4c6   : > { %7339 = vst.msk [vmem:[%s11252_s23 + $0x3a8] sm:$0xf] %vm7104_vm4, %v8937_v54  ;;  %v8938_v58 = vpack.c.bf16 %v4909_v55, %v4909_v55  ;;  %7583 = vst.msk [vmem:[%s11252_s23 + $0x778] sm:$0xf] %vm7104_vm4, %v9181_v56  ;;  %v9182_v59 = vpack.c.bf16 %v5153_v57, %v5153_v57 }
 0x4c7   : > { %v3675_v60 = vpop.f32.mrb[216].mxu0  ;;  %v4651_v62 = vpop.f32.mrb[216].mxu1 }
 0x4c8   : > { %7340 = vst.msk [vmem:[%s11252_s23 + $0x3ac] sm:$0xf] %vm7104_vm4, %v8938_v58  ;;  %7584 = vst.msk [vmem:[%s11252_s23 + $0x77c] sm:$0xf] %vm7104_vm4, %v9182_v59  ;;  %v3676_v63 = vadd.f32 %v13284_v61, %v3675_v60  ;;  %v9913_v1 = vpop.f32.mrb[217].mxu0  ;;  %v4652_v3 = vadd.f32 %v13284_v61, %v4651_v62  ;;  %v10401_v4 = vpop.f32.mrb[217].mxu1 }
 0x4c9   : > { %v3678_v32 = vpop.f32.mrb[218].mxu0  ;;  %v4654_v5 = vpop.f32.mrb[218].mxu1 }
 0x4ca   : > { %v4910_v6 = vmax.f32 %v3676_v63, 0.0  ;;  %v3679_v7 = vadd.f32 %v13284_v61, %v3678_v32  ;;  %v9914_v9 = vpop.f32.mrb[219].mxu0  ;;  %v5154_v10 = vmax.f32 %v4652_v3, 0.0  ;;  %v4655_v11 = vadd.f32 %v13284_v61, %v4654_v5  ;;  %v10402_v12 = vpop.f32.mrb[219].mxu1 }
 0x4cc   : > { %v8939_v13 = vpack.c.bf16 %v4910_v6, %v4910_v6  ;;  %v4911_v14 = vmax.f32 %v3679_v7, 0.0  ;;  %v9183_v15 = vpack.c.bf16 %v5154_v10, %v5154_v10  ;;  %v5155_v16 = vmax.f32 %v4655_v11, 0.0 }
 0x4ce   : > { %7341 = vst.msk [vmem:[%s11252_s23 + $0x3b0] sm:$0xf] %vm7104_vm4, %v8939_v13  ;;  %v8940_v17 = vpack.c.bf16 %v4911_v14, %v4911_v14  ;;  %7585 = vst.msk [vmem:[%s11252_s23 + $0x780] sm:$0xf] %vm7104_vm4, %v9183_v15  ;;  %v9184_v18 = vpack.c.bf16 %v5155_v16, %v5155_v16 }
 0x4cf   : > { %v3683_v19 = vpop.f32.mrb[220].mxu0  ;;  %v4659_v20 = vpop.f32.mrb[220].mxu1 }
 0x4d0   : > { %7342 = vst.msk [vmem:[%s11252_s23 + $0x3b4] sm:$0xf] %vm7104_vm4, %v8940_v17  ;;  %7586 = vst.msk [vmem:[%s11252_s23 + $0x784] sm:$0xf] %vm7104_vm4, %v9184_v18  ;;  %v3684_v8 = vadd.f32 %v13284_v61, %v3683_v19  ;;  %v9917_v22 = vpop.f32.mrb[221].mxu0  ;;  %v4660_v23 = vadd.f32 %v13284_v61, %v4659_v20  ;;  %v10405_v24 = vpop.f32.mrb[221].mxu1 }
 0x4d1   : > { %v3686_v25 = vpop.f32.mrb[222].mxu0  ;;  %v4662_v26 = vpop.f32.mrb[222].mxu1 }
 0x4d2   : > { %v4912_v2 = vmax.f32 %v3684_v8, 0.0  ;;  %v3687_v0 = vadd.f32 %v13284_v61, %v3686_v25  ;;  %v9918_v27 = vpop.f32.mrb[223].mxu0  ;;  %v5156_v28 = vmax.f32 %v4660_v23, 0.0  ;;  %v4663_v21 = vadd.f32 %v13284_v61, %v4662_v26  ;;  %v10406_v29 = vpop.f32.mrb[223].mxu1 }
 0x4d4   : > { %v8941_v30 = vpack.c.bf16 %v4912_v2, %v4912_v2  ;;  %v4913_v31 = vmax.f32 %v3687_v0, 0.0  ;;  %v9185_v33 = vpack.c.bf16 %v5156_v28, %v5156_v28  ;;  %v5157_v34 = vmax.f32 %v4663_v21, 0.0 }
 0x4d6   : > { %7343 = vst.msk [vmem:[%s11252_s23 + $0x3b8] sm:$0xf] %vm7104_vm4, %v8941_v30  ;;  %v8942_v35 = vpack.c.bf16 %v4913_v31, %v4913_v31  ;;  %7587 = vst.msk [vmem:[%s11252_s23 + $0x788] sm:$0xf] %vm7104_vm4, %v9185_v33  ;;  %v9186_v36 = vpack.c.bf16 %v5157_v34, %v5157_v34 }
 0x4d7   : > { %v3691_v37 = vpop.f32.mrb[224].mxu0  ;;  %v4667_v38 = vpop.f32.mrb[224].mxu1 }
 0x4d8   : > { %7344 = vst.msk [vmem:[%s11252_s23 + $0x3bc] sm:$0xf] %vm7104_vm4, %v8942_v35  ;;  %7588 = vst.msk [vmem:[%s11252_s23 + $0x78c] sm:$0xf] %vm7104_vm4, %v9186_v36  ;;  %v3692_v39 = vadd.f32 %v13284_v61, %v3691_v37  ;;  %v9921_v40 = vpop.f32.mrb[225].mxu0  ;;  %v4668_v41 = vadd.f32 %v13284_v61, %v4667_v38  ;;  %v10409_v42 = vpop.f32.mrb[225].mxu1 }
 0x4d9   : > { %v3694_v43 = vpop.f32.mrb[226].mxu0  ;;  %v4670_v44 = vpop.f32.mrb[226].mxu1 }
 0x4da   : > { %v4914_v45 = vmax.f32 %v3692_v39, 0.0  ;;  %v3695_v46 = vadd.f32 %v13284_v61, %v3694_v43  ;;  %v9922_v47 = vpop.f32.mrb[227].mxu0  ;;  %v5158_v48 = vmax.f32 %v4668_v41, 0.0  ;;  %v4671_v49 = vadd.f32 %v13284_v61, %v4670_v44  ;;  %v10410_v50 = vpop.f32.mrb[227].mxu1 }
 0x4dc   : > { %v8943_v51 = vpack.c.bf16 %v4914_v45, %v4914_v45  ;;  %v4915_v52 = vmax.f32 %v3695_v46, 0.0  ;;  %v9187_v53 = vpack.c.bf16 %v5158_v48, %v5158_v48  ;;  %v5159_v54 = vmax.f32 %v4671_v49, 0.0 }
 0x4de   : > { %7345 = vst.msk [vmem:[%s11252_s23 + $0x3c0] sm:$0xf] %vm7104_vm4, %v8943_v51  ;;  %v8944_v55 = vpack.c.bf16 %v4915_v52, %v4915_v52  ;;  %7589 = vst.msk [vmem:[%s11252_s23 + $0x790] sm:$0xf] %vm7104_vm4, %v9187_v53  ;;  %v9188_v56 = vpack.c.bf16 %v5159_v54, %v5159_v54 }
 0x4df   : > { %v3699_v57 = vpop.f32.mrb[228].mxu0 }
 0x4e0   : > { %7346 = vst.msk [vmem:[%s11252_s23 + $0x3c4] sm:$0xf] %vm7104_vm4, %v8944_v55  ;;  %7590 = vst.msk [vmem:[%s11252_s23 + $0x794] sm:$0xf] %vm7104_vm4, %v9188_v56  ;;  %v3700_v58 = vadd.f32 %v13284_v61, %v3699_v57  ;;  %v9925_v59 = vpop.f32.mrb[229].mxu0 }
 0x4e1   : > { %v3702_v60 = vpop.f32.mrb[230].mxu0 }
 0x4e2   : > { %v4916_v62 = vmax.f32 %v3700_v58, 0.0  ;;  %v3703_v63 = vadd.f32 %v13284_v61, %v3702_v60  ;;  %v9926_v1 = vpop.f32.mrb[231].mxu0 }
 0x4e4   : > { %v8945_v3 = vpack.c.bf16 %v4916_v62, %v4916_v62  ;;  %v4917_v4 = vmax.f32 %v3703_v63, 0.0 }
 0x4e6   : > { %7347 = vst.msk [vmem:[%s11252_s23 + $0x3c8] sm:$0xf] %vm7104_vm4, %v8945_v3  ;;  %v8946_v32 = vpack.c.bf16 %v4917_v4, %v4917_v4 }
 0x4e8   : > { %7348 = vst.msk [vmem:[%s11252_s23 + $0x3cc] sm:$0xf] %vm7104_vm4, %v8946_v32 }
 0x4e9   : > { %10780 = shalt.err (!%p10777_p3)
}
 0x4ea   : > { %s10781_s23 = scalar_lea.hbm %s13483_s29, 31104  ;;  %s10785_s24 = scalar_lea.hbm %s13540_s3, 746496 }
 0x4eb   : > { %p10782_p5 = scmp.ne.s32.totalorder %s13483_s29, %s10781_s23  ;;  %p10786_p0 = scmp.lt.u32.totalorder %s13483_s29, %s13540_s3 }
 0x4ec   : > { %p10787_p2 = scmp.lt.u32.totalorder %s10785_s24, %s10781_s23  ;;  %p10789_p8 = scmp.lt.u32.totalorder %s10781_s23, %s13483_s29 }
 0x4ed   : > { %p10783_p6 = pnand %p10782_p5, %p13548_p9 }
 0x4ee   : > { %p10788_p4 = por %p10787_p2, %p10786_p0 }
 0x4ef   : > { %p10784_p7 = pneg %p10783_p6 }
 0x4f0   : > { %p10790_p11 = por %p10789_p8, %p10788_p4 }
 0x4f2   : > { %p10791_p13 = pnand %p10790_p11, %p10784_p7 }
 0x4f4   : > { %10794 = shalt.err (!%p10791_p13)
}
 0x4f5   : > { %s10858_s7 = smov 64   ;;  %s10859_s9 = smov 4  }
 0x4f6   : > { %10419 = dma.vmem_to_hbm [thread:$0]  (%p13548_p9), %s13485_s10, 31104, %s13483_s29, %s7592_s15, %s10858_s7, %s10858_s7, %s10859_s9  }
 0x4f7 PF: > { %p10430_p10 = scmp.ge.s32.totalorder %s10849_s17, 2  ;;  %s7621_s22 = sand.u32 1, %s10829_s12  }
 0x4f8   : > { %p13549_p12 = scmp.ne.s32.totalorder %s13545_s27, 0  ;;  %s7622_s28 = scalar_lea.sflag [#allocation4], %s7621_s22 }
 0x4fa   : > { %p10426_p1 = pnand %p10430_p10, %p13549_p12 }
 0x4fc   : > { %10824 = dma.done.wait (!%p10426_p1), %s7622_s28, 31104  }
 0x4fd   : > { %10826 = vsyncadd (!%p10426_p1), %s7622_s28, 4294936192  ;;  %s19_s17 = sadd.s32 1, %s10849_s17   ;;  %s13550_s12 = smov %s10833_s13 }
 0x4fe   : > { %p16_p3 = scmp.ge.s32.totalorder %s19_s17, 26   ;;  %s13551_s13 = smov %s10837_s14 }
 0x4ff   : > { %s13552_s14 = smov %s10936_s26  ;;  %s13553_s15 = smov %s10845_s16 }
 0x500   : > { %s13554_s16 = smov %s13556_s20  ;;  %18 = sbr.rel (!%p16_p3) target bundleno = 6 (0x6), region = 83 }
 0x507   :  { %7627 = vsyncpa [#allocation3], 1 }
 0x508   :  { %7629 = vsyncpa [#allocation3 + $0x1], 1 }
 0x509   :  { %7630 = vsyncpa [#allocation4], 1 }
 0x50a   :  { %7632 = vsyncpa [#allocation4 + $0x1], 1 }

</bundles_post_ra>
